<compile_context>
chip_gen: v7x
topology: tpu7x:2x2x1
jax: 0.10.0
libtpu: 0.0.40
codegen_flags: <defaults>
</compile_context>

<pallas_src>
import math
import functools

import jax
import jax.numpy as jnp
import numpy as np
from jax.experimental import pallas as pl
from jax.experimental.pallas import tpu as pltpu

LN_EPS = 1e-5  # nn.LayerNorm default


def _mlp_kernel(x_ref, g_ref, b_ref, w1_ref, b1_ref, w2_ref, b2_ref, o_ref,
                *, use_residual):
    # x tile: (TM, D). Elementwise math in f32; matmuls feed the MXU with the
    # weights' dtype (bf16 on the fast path) and accumulate in f32.
    x = x_ref[...].astype(jnp.float32)

    # LayerNorm over the feature axis — matches nn.LayerNorm(in_dim).
    mean = jnp.mean(x, axis=-1, keepdims=True)
    centered = x - mean
    var = jnp.mean(centered * centered, axis=-1, keepdims=True)
    xn = centered * jax.lax.rsqrt(var + LN_EPS)
    xn = xn * g_ref[...].astype(jnp.float32) + b_ref[...].astype(jnp.float32)

    mxu_dtype = w1_ref.dtype

    # fc1 + exact GELU (erf form — PyTorch nn.GELU() default).
    h = jnp.dot(xn.astype(mxu_dtype), w1_ref[...],
                preferred_element_type=jnp.float32)
    h = h + b1_ref[...].astype(jnp.float32)
    h = 0.5 * h * (1.0 + jax.lax.erf(h * (1.0 / math.sqrt(2.0))))

    # fc2
    y = jnp.dot(h.astype(mxu_dtype), w2_ref[...],
                preferred_element_type=jnp.float32)
    y = y + b2_ref[...].astype(jnp.float32)

    if use_residual:
        y = y + x  # residual is the *pre-layernorm* input

    o_ref[...] = y.astype(o_ref.dtype)


def mlp_pallas(x, params, *, use_residual=True, row_tile=256,
               mxu_dtype=jnp.bfloat16):
    """x: [B, S, D]. params: dict of gamma, beta, w1 [D,H], b1, w2 [H,out], b2."""
    B, S, D = x.shape
    H = params["w1"].shape[1]
    out_dim = params["w2"].shape[1]
    assert params["w1"].shape == (D, H)
    if use_residual:
        assert out_dim == D

    rows = B * S
    # Shrink the row tile for tiny inputs (keep it a multiple of 8 sublanes)
    # so we never pad to a whole mostly-empty tile.
    row_tile = max(8, min(row_tile, pl.cdiv(rows, 8) * 8))
    n_tiles = pl.cdiv(rows, row_tile)
    padded_rows = n_tiles * row_tile

    x2d = x.reshape(rows, D)
    if padded_rows != rows:
        # Zero rows are safe through LayerNorm (eps > 0) and are sliced off.
        x2d = jnp.pad(x2d, ((0, padded_rows - rows), (0, 0)))

    gamma = params["gamma"].reshape(1, D).astype(jnp.float32)
    beta = params["beta"].reshape(1, D).astype(jnp.float32)
    w1 = params["w1"].astype(mxu_dtype)
    b1 = params["b1"].reshape(1, H).astype(jnp.float32)
    w2 = params["w2"].astype(mxu_dtype)
    b2 = params["b2"].reshape(1, out_dim).astype(jnp.float32)

    kernel = functools.partial(_mlp_kernel, use_residual=use_residual)

    # VMEM budget: weights (x buffer count), double-buffered row tiles in/out,
    # plus the (TM, H) hidden activation; 1.5x headroom, clamped to [32, 64]
    # MiB so the limit is valid on v7x (64 MiB physical VMEM per TC).
    wbytes = jnp.dtype(mxu_dtype).itemsize

    def vmem_bytes(weight_bufs):
        weights = (D * H + H * out_dim) * wbytes * weight_bufs
        io = (row_tile * (D + out_dim)) * 4 * 2
        act = row_tile * H * 4 * 2
        total = int((weights + io + act) * 1.5)
        return int(min(max(total, 32 << 20), 64 << 20))

    flops = 2 * padded_rows * D * H + 2 * padded_rows * H * out_dim
    bytes_accessed = (rows * (D + out_dim) * x.dtype.itemsize
                      + (D * H + H * out_dim) * wbytes
                      + (2 * D + H + out_dim) * 4)
    cost = pl.CostEstimate(flops=int(flops),
                           transcendentals=int(padded_rows * H),
                           bytes_accessed=int(bytes_accessed))

    def build(single_buffer_weights):
        # Weights/biases have a constant block index -> single-buffer them to
        # halve their VMEM footprint (decisive at transformer scale on v7x).
        extra = ({"pipeline_mode": pl.Buffered(1)}
                 if single_buffer_weights else {})
        const = lambda shape: pl.BlockSpec(shape, lambda i: (0, 0), **extra)
        return pl.pallas_call(
            kernel,
            out_shape=jax.ShapeDtypeStruct((padded_rows, out_dim), x.dtype),
            grid_spec=pltpu.PrefetchScalarGridSpec(
                num_scalar_prefetch=0,
                grid=(n_tiles,),
                in_specs=[
                    pl.BlockSpec((row_tile, D), lambda i: (i, 0)),  # x rows
                    const((1, D)),          # gamma
                    const((1, D)),          # beta
                    const((D, H)),          # w1
                    const((1, H)),          # b1
                    const((H, out_dim)),    # w2
                    const((1, out_dim)),    # b2
                ],
                out_specs=pl.BlockSpec((row_tile, out_dim), lambda i: (i, 0)),
            ),
            compiler_params=pltpu.CompilerParams(
                dimension_semantics=("parallel",),
                vmem_limit_bytes=vmem_bytes(1 if single_buffer_weights else 2)),
            cost_estimate=cost,
        )

    args = (x2d, gamma, beta, w1, b1, w2, b2)
    try:
        out2d = jax.block_until_ready(build(True)(*args))
    except Exception:
        # pipeline_mode=pl.Buffered(1) unsupported on this jax version/backend:
        # fall back to default double-buffered constant blocks.
        out2d = jax.block_until_ready(build(False)(*args))

    out2d = out2d[:rows]
    return out2d.reshape(B, S, out_dim)


def mlp_reference(x, params, *, use_residual=True):
    """Pure-JAX reference mirroring the PyTorch forward."""
    residual = x
    mean = jnp.mean(x, axis=-1, keepdims=True)
    var = jnp.mean((x - mean) ** 2, axis=-1, keepdims=True)
    xn = (x - mean) / jnp.sqrt(var + LN_EPS)
    xn = xn * params["gamma"] + params["beta"]
    h = xn @ params["w1"] + params["b1"]
    h = 0.5 * h * (1.0 + jax.lax.erf(h / math.sqrt(2.0)))
    y = h @ params["w2"] + params["b2"]
    if use_residual:
        y = y + residual
    return y


def init_params(key, in_dim, hidden_dim, out_dim):
    k1, k2, k3, k4 = jax.random.split(key, 4)
    # Deterministic synthetic init (uniform, Linear-style scaling).
    lim1 = 1.0 / math.sqrt(in_dim)
    lim2 = 1.0 / math.sqrt(hidden_dim)
    return {
        "gamma": jnp.ones((in_dim,), jnp.float32),     # LayerNorm weight
        "beta": jnp.zeros((in_dim,), jnp.float32),     # LayerNorm bias
        "w1": jax.random.uniform(k1, (in_dim, hidden_dim), jnp.float32,
                                 -lim1, lim1),         # fc1 weight^T
        "b1": jax.random.uniform(k2, (hidden_dim,), jnp.float32, -lim1, lim1),
        "w2": jax.random.uniform(k3, (hidden_dim, out_dim), jnp.float32,
                                 -lim2, lim2),         # fc2 weight^T
        "b2": jax.random.uniform(k4, (out_dim,), jnp.float32, -lim2, lim2),
    }


if __name__ == "__main__":
    # Lane-dense small shapes (multiples of 128 on feature/hidden dims).
    B, S = 2, 256
    in_dim = out_dim = 128
    hidden_dim = 256

    key = jax.random.PRNGKey(0)
    kx, kp = jax.random.split(key)
    x = jax.random.normal(kx, (B, S, in_dim), jnp.float32)
    params = init_params(kp, in_dim, hidden_dim, out_dim)

    y_ref = mlp_reference(x, params, use_residual=True)

    # f32 MXU operands: tight-ish check against the reference.
    y_f32 = jax.block_until_ready(
        mlp_pallas(x, params, use_residual=True, row_tile=256,
                   mxu_dtype=jnp.float32))
    np.testing.assert_allclose(np.asarray(y_f32), np.asarray(y_ref),
                               rtol=1e-2, atol=1e-2)

    # bf16 MXU operands with f32 accumulation (fast path on v6e/v7x).
    y_bf16 = jax.block_until_ready(
        mlp_pallas(x, params, use_residual=True, row_tile=256,
                   mxu_dtype=jnp.bfloat16))
    np.testing.assert_allclose(np.asarray(y_bf16), np.asarray(y_ref),
                               rtol=4e-2, atol=4e-2)

    print("KERNEL_OK")
</pallas_src>

<mosaic_0001>
module attributes {stable_mosaic.version = 11 : i64} {
  func.func @_mlp_kernel(%arg0: i32, %arg1: memref<256x128xf32, #tpu.memory_space<vmem>>, %arg2: memref<1x128xf32, #tpu.memory_space<vmem>>, %arg3: memref<1x128xf32, #tpu.memory_space<vmem>>, %arg4: memref<128x256xf32, #tpu.memory_space<vmem>>, %arg5: memref<1x256xf32, #tpu.memory_space<vmem>>, %arg6: memref<256x128xf32, #tpu.memory_space<vmem>>, %arg7: memref<1x128xf32, #tpu.memory_space<vmem>>, %arg8: memref<256x128xf32, #tpu.memory_space<vmem>>) attributes {dimension_semantics = [#tpu.dimension_semantics<parallel>], iteration_bounds = array<i64: 2>, scalar_prefetch = 0 : i64, scratch_operands = 0 : i64, tpu.core_type = #tpu.core_type<tc>, window_params = [{transform_indices = @transform_0, window_bounds = array<i64: 256, 128>}, {pipeline_mode = #tpu.pipeline_mode<synchronous>, transform_indices = @transform_1, window_bounds = array<i64: 1, 128>}, {pipeline_mode = #tpu.pipeline_mode<synchronous>, transform_indices = @transform_2, window_bounds = array<i64: 1, 128>}, {pipeline_mode = #tpu.pipeline_mode<synchronous>, transform_indices = @transform_3, window_bounds = array<i64: 128, 256>}, {pipeline_mode = #tpu.pipeline_mode<synchronous>, transform_indices = @transform_4, window_bounds = array<i64: 1, 256>}, {pipeline_mode = #tpu.pipeline_mode<synchronous>, transform_indices = @transform_5, window_bounds = array<i64: 256, 128>}, {pipeline_mode = #tpu.pipeline_mode<synchronous>, transform_indices = @transform_6, window_bounds = array<i64: 1, 128>}, {transform_indices = @transform_7, window_bounds = array<i64: 256, 128>}]} {
    %c0 = arith.constant 0 : index
    %c0_0 = arith.constant 0 : index
    %0 = vector.load %arg1[%c0, %c0_0] : memref<256x128xf32, #tpu.memory_space<vmem>>, vector<256x128xf32>
    %cst = arith.constant dense<0.000000e+00> : vector<256xf32>
    %1 = vector.multi_reduction <add>, %0, %cst [1] : vector<256x128xf32> to vector<256xf32>
    %2 = vector.shape_cast %1 : vector<256xf32> to vector<256x1xf32>
    %cst_1 = arith.constant 1.280000e+02 : f32
    %3 = vector.broadcast %cst_1 : f32 to vector<256x1xf32>
    %4 = arith.divf %2, %3 : vector<256x1xf32>
    %5 = vector.broadcast %4 : vector<256x1xf32> to vector<256x128xf32>
    %6 = arith.subf %0, %5 : vector<256x128xf32>
    %7 = arith.mulf %6, %6 : vector<256x128xf32>
    %cst_2 = arith.constant dense<0.000000e+00> : vector<256xf32>
    %8 = vector.multi_reduction <add>, %7, %cst_2 [1] : vector<256x128xf32> to vector<256xf32>
    %9 = vector.shape_cast %8 : vector<256xf32> to vector<256x1xf32>
    %cst_3 = arith.constant 1.280000e+02 : f32
    %10 = vector.broadcast %cst_3 : f32 to vector<256x1xf32>
    %11 = arith.divf %9, %10 : vector<256x1xf32>
    %cst_4 = arith.constant 9.99999974E-6 : f32
    %12 = vector.broadcast %cst_4 : f32 to vector<256x1xf32>
    %13 = arith.addf %11, %12 : vector<256x1xf32>
    %14 = math.rsqrt %13 : vector<256x1xf32>
    %15 = vector.broadcast %14 : vector<256x1xf32> to vector<256x128xf32>
    %16 = arith.mulf %6, %15 : vector<256x128xf32>
    %c0_5 = arith.constant 0 : index
    %c0_6 = arith.constant 0 : index
    %17 = vector.load %arg2[%c0_5, %c0_6] : memref<1x128xf32, #tpu.memory_space<vmem>>, vector<1x128xf32>
    %18 = vector.broadcast %17 : vector<1x128xf32> to vector<256x128xf32>
    %19 = arith.mulf %16, %18 : vector<256x128xf32>
    %c0_7 = arith.constant 0 : index
    %c0_8 = arith.constant 0 : index
    %20 = vector.load %arg3[%c0_7, %c0_8] : memref<1x128xf32, #tpu.memory_space<vmem>>, vector<1x128xf32>
    %21 = vector.broadcast %20 : vector<1x128xf32> to vector<256x128xf32>
    %22 = arith.addf %19, %21 : vector<256x128xf32>
    %c0_9 = arith.constant 0 : index
    %c0_10 = arith.constant 0 : index
    %23 = vector.load %arg4[%c0_9, %c0_10] : memref<128x256xf32, #tpu.memory_space<vmem>>, vector<128x256xf32>
    %cst_11 = arith.constant dense<0.000000e+00> : vector<256x256xf32>
    %24 = tpu.matmul %22, %23, %cst_11 {dimension_numbers = #tpu.dot_dimension_numbers<[1], [0], [0], [1], [0, 0, 1, 1], [], []>} : vector<256x128xf32>, vector<128x256xf32>, vector<256x256xf32> -> vector<256x256xf32>
    %c0_12 = arith.constant 0 : index
    %c0_13 = arith.constant 0 : index
    %25 = vector.load %arg5[%c0_12, %c0_13] : memref<1x256xf32, #tpu.memory_space<vmem>>, vector<1x256xf32>
    %26 = vector.broadcast %25 : vector<1x256xf32> to vector<256x256xf32>
    %27 = arith.addf %24, %26 : vector<256x256xf32>
    %cst_14 = arith.constant 5.000000e-01 : f32
    %28 = vector.broadcast %cst_14 : f32 to vector<256x256xf32>
    %29 = arith.mulf %28, %27 : vector<256x256xf32>
    %cst_15 = arith.constant 0.707106769 : f32
    %30 = vector.broadcast %cst_15 : f32 to vector<256x256xf32>
    %31 = arith.mulf %27, %30 : vector<256x256xf32>
    %32 = math.erf %31 : vector<256x256xf32>
    %cst_16 = arith.constant 1.000000e+00 : f32
    %33 = vector.broadcast %cst_16 : f32 to vector<256x256xf32>
    %34 = arith.addf %33, %32 : vector<256x256xf32>
    %35 = arith.mulf %29, %34 : vector<256x256xf32>
    %c0_17 = arith.constant 0 : index
    %c0_18 = arith.constant 0 : index
    %36 = vector.load %arg6[%c0_17, %c0_18] : memref<256x128xf32, #tpu.memory_space<vmem>>, vector<256x128xf32>
    %cst_19 = arith.constant dense<0.000000e+00> : vector<256x128xf32>
    %37 = tpu.matmul %35, %36, %cst_19 {dimension_numbers = #tpu.dot_dimension_numbers<[1], [0], [0], [1], [0, 0, 1, 1], [], []>} : vector<256x256xf32>, vector<256x128xf32>, vector<256x128xf32> -> vector<256x128xf32>
    %c0_20 = arith.constant 0 : index
    %c0_21 = arith.constant 0 : index
    %38 = vector.load %arg7[%c0_20, %c0_21] : memref<1x128xf32, #tpu.memory_space<vmem>>, vector<1x128xf32>
    %39 = vector.broadcast %38 : vector<1x128xf32> to vector<256x128xf32>
    %40 = arith.addf %37, %39 : vector<256x128xf32>
    %41 = arith.addf %40, %0 : vector<256x128xf32>
    %c0_22 = arith.constant 0 : index
    %c0_23 = arith.constant 0 : index
    %42 = vector.load %arg8[%c0_22, %c0_23] : memref<256x128xf32, #tpu.memory_space<vmem>>, vector<256x128xf32>
    tpu.vector_store %arg8[%c0_22, %c0_23], %41 {strides = array<i32>} : memref<256x128xf32, #tpu.memory_space<vmem>>, vector<256x128xf32>,
    return
  }
  func.func @transform_0(%arg0: i32) -> (i32, i32) {
    %c0_i32 = arith.constant 0 : i32
    %c0_i32_0 = arith.constant 0 : i32
    return %arg0, %c0_i32 : i32, i32
  }
  func.func @transform_1(%arg0: i32) -> (i32, i32) {
    %c0_i32 = arith.constant 0 : i32
    %c0_i32_0 = arith.constant 0 : i32
    %c0_i32_1 = arith.constant 0 : i32
    return %c0_i32, %c0_i32_0 : i32, i32
  }
  func.func @transform_2(%arg0: i32) -> (i32, i32) {
    %c0_i32 = arith.constant 0 : i32
    %c0_i32_0 = arith.constant 0 : i32
    %c0_i32_1 = arith.constant 0 : i32
    return %c0_i32, %c0_i32_0 : i32, i32
  }
  func.func @transform_3(%arg0: i32) -> (i32, i32) {
    %c0_i32 = arith.constant 0 : i32
    %c0_i32_0 = arith.constant 0 : i32
    %c0_i32_1 = arith.constant 0 : i32
    return %c0_i32, %c0_i32_0 : i32, i32
  }
  func.func @transform_4(%arg0: i32) -> (i32, i32) {
    %c0_i32 = arith.constant 0 : i32
    %c0_i32_0 = arith.constant 0 : i32
    %c0_i32_1 = arith.constant 0 : i32
    return %c0_i32, %c0_i32_0 : i32, i32
  }
  func.func @transform_5(%arg0: i32) -> (i32, i32) {
    %c0_i32 = arith.constant 0 : i32
    %c0_i32_0 = arith.constant 0 : i32
    %c0_i32_1 = arith.constant 0 : i32
    return %c0_i32, %c0_i32_0 : i32, i32
  }
  func.func @transform_6(%arg0: i32) -> (i32, i32) {
    %c0_i32 = arith.constant 0 : i32
    %c0_i32_0 = arith.constant 0 : i32
    %c0_i32_1 = arith.constant 0 : i32
    return %c0_i32, %c0_i32_0 : i32, i32
  }
  func.func @transform_7(%arg0: i32) -> (i32, i32) {
    %c0_i32 = arith.constant 0 : i32
    %c0_i32_0 = arith.constant 0 : i32
    return %arg0, %c0_i32 : i32, i32
  }
}

module attributes {stable_mosaic.version = 11 : i64} {
  func.func @_mlp_kernel(%arg0: i32, %arg1: memref<256x128xf32, #tpu.memory_space<vmem>>, %arg2: memref<1x128xf32, #tpu.memory_space<vmem>>, %arg3: memref<1x128xf32, #tpu.memory_space<vmem>>, %arg4: memref<128x256xf32, #tpu.memory_space<vmem>>, %arg5: memref<1x256xf32, #tpu.memory_space<vmem>>, %arg6: memref<256x128xf32, #tpu.memory_space<vmem>>, %arg7: memref<1x128xf32, #tpu.memory_space<vmem>>, %arg8: memref<256x128xf32, #tpu.memory_space<vmem>>) attributes {dimension_semantics = [#tpu.dimension_semantics<parallel>], iteration_bounds = array<i64: 2>, scalar_prefetch = 0 : i64, scratch_operands = 0 : i64, tpu.core_type = #tpu.core_type<tc>, window_params = [{transform_indices = @transform_0, window_bounds = array<i64: 256, 128>}, {pipeline_mode = #tpu.pipeline_mode<synchronous>, transform_indices = @transform_1, window_bounds = array<i64: 1, 128>}, {pipeline_mode = #tpu.pipeline_mode<synchronous>, transform_indices = @transform_2, window_bounds = array<i64: 1, 128>}, {pipeline_mode = #tpu.pipeline_mode<synchronous>, transform_indices = @transform_3, window_bounds = array<i64: 128, 256>}, {pipeline_mode = #tpu.pipeline_mode<synchronous>, transform_indices = @transform_4, window_bounds = array<i64: 1, 256>}, {pipeline_mode = #tpu.pipeline_mode<synchronous>, transform_indices = @transform_5, window_bounds = array<i64: 256, 128>}, {pipeline_mode = #tpu.pipeline_mode<synchronous>, transform_indices = @transform_6, window_bounds = array<i64: 1, 128>}, {transform_indices = @transform_7, window_bounds = array<i64: 256, 128>}]} {
    %c0 = arith.constant 0 : index
    %c0_0 = arith.constant 0 : index
    %0 = vector.load %arg1[%c0, %c0_0] : memref<256x128xf32, #tpu.memory_space<vmem>>, vector<256x128xf32>
    %cst = arith.constant dense<0.000000e+00> : vector<256xf32>
    %1 = vector.multi_reduction <add>, %0, %cst [1] : vector<256x128xf32> to vector<256xf32>
    %2 = vector.shape_cast %1 : vector<256xf32> to vector<256x1xf32>
    %cst_1 = arith.constant 1.280000e+02 : f32
    %3 = vector.broadcast %cst_1 : f32 to vector<256x1xf32>
    %4 = arith.divf %2, %3 : vector<256x1xf32>
    %5 = vector.broadcast %4 : vector<256x1xf32> to vector<256x128xf32>
    %6 = arith.subf %0, %5 : vector<256x128xf32>
    %7 = arith.mulf %6, %6 : vector<256x128xf32>
    %cst_2 = arith.constant dense<0.000000e+00> : vector<256xf32>
    %8 = vector.multi_reduction <add>, %7, %cst_2 [1] : vector<256x128xf32> to vector<256xf32>
    %9 = vector.shape_cast %8 : vector<256xf32> to vector<256x1xf32>
    %cst_3 = arith.constant 1.280000e+02 : f32
    %10 = vector.broadcast %cst_3 : f32 to vector<256x1xf32>
    %11 = arith.divf %9, %10 : vector<256x1xf32>
    %cst_4 = arith.constant 9.99999974E-6 : f32
    %12 = vector.broadcast %cst_4 : f32 to vector<256x1xf32>
    %13 = arith.addf %11, %12 : vector<256x1xf32>
    %14 = math.rsqrt %13 : vector<256x1xf32>
    %15 = vector.broadcast %14 : vector<256x1xf32> to vector<256x128xf32>
    %16 = arith.mulf %6, %15 : vector<256x128xf32>
    %c0_5 = arith.constant 0 : index
    %c0_6 = arith.constant 0 : index
    %17 = vector.load %arg2[%c0_5, %c0_6] : memref<1x128xf32, #tpu.memory_space<vmem>>, vector<1x128xf32>
    %18 = vector.broadcast %17 : vector<1x128xf32> to vector<256x128xf32>
    %19 = arith.mulf %16, %18 : vector<256x128xf32>
    %c0_7 = arith.constant 0 : index
    %c0_8 = arith.constant 0 : index
    %20 = vector.load %arg3[%c0_7, %c0_8] : memref<1x128xf32, #tpu.memory_space<vmem>>, vector<1x128xf32>
    %21 = vector.broadcast %20 : vector<1x128xf32> to vector<256x128xf32>
    %22 = arith.addf %19, %21 : vector<256x128xf32>
    %c0_9 = arith.constant 0 : index
    %c0_10 = arith.constant 0 : index
    %23 = vector.load %arg4[%c0_9, %c0_10] : memref<128x256xf32, #tpu.memory_space<vmem>>, vector<128x256xf32>
    %cst_11 = arith.constant dense<0.000000e+00> : vector<256x256xf32>
    %24 = tpu.matmul %22, %23, %cst_11 {dimension_numbers = #tpu.dot_dimension_numbers<[1], [0], [0], [1], [0, 0, 1, 1], [], []>} : vector<256x128xf32>, vector<128x256xf32>, vector<256x256xf32> -> vector<256x256xf32>
    %c0_12 = arith.constant 0 : index
    %c0_13 = arith.constant 0 : index
    %25 = vector.load %arg5[%c0_12, %c0_13] : memref<1x256xf32, #tpu.memory_space<vmem>>, vector<1x256xf32>
    %26 = vector.broadcast %25 : vector<1x256xf32> to vector<256x256xf32>
    %27 = arith.addf %24, %26 : vector<256x256xf32>
    %cst_14 = arith.constant 5.000000e-01 : f32
    %28 = vector.broadcast %cst_14 : f32 to vector<256x256xf32>
    %29 = arith.mulf %28, %27 : vector<256x256xf32>
    %cst_15 = arith.constant 0.707106769 : f32
    %30 = vector.broadcast %cst_15 : f32 to vector<256x256xf32>
    %31 = arith.mulf %27, %30 : vector<256x256xf32>
    %32 = math.erf %31 : vector<256x256xf32>
    %cst_16 = arith.constant 1.000000e+00 : f32
    %33 = vector.broadcast %cst_16 : f32 to vector<256x256xf32>
    %34 = arith.addf %33, %32 : vector<256x256xf32>
    %35 = arith.mulf %29, %34 : vector<256x256xf32>
    %c0_17 = arith.constant 0 : index
    %c0_18 = arith.constant 0 : index
    %36 = vector.load %arg6[%c0_17, %c0_18] : memref<256x128xf32, #tpu.memory_space<vmem>>, vector<256x128xf32>
    %cst_19 = arith.constant dense<0.000000e+00> : vector<256x128xf32>
    %37 = tpu.matmul %35, %36, %cst_19 {dimension_numbers = #tpu.dot_dimension_numbers<[1], [0], [0], [1], [0, 0, 1, 1], [], []>} : vector<256x256xf32>, vector<256x128xf32>, vector<256x128xf32> -> vector<256x128xf32>
    %c0_20 = arith.constant 0 : index
    %c0_21 = arith.constant 0 : index
    %38 = vector.load %arg7[%c0_20, %c0_21] : memref<1x128xf32, #tpu.memory_space<vmem>>, vector<1x128xf32>
    %39 = vector.broadcast %38 : vector<1x128xf32> to vector<256x128xf32>
    %40 = arith.addf %37, %39 : vector<256x128xf32>
    %41 = arith.addf %40, %0 : vector<256x128xf32>
    %c0_22 = arith.constant 0 : index
    %c0_23 = arith.constant 0 : index
    %42 = vector.load %arg8[%c0_22, %c0_23] : memref<256x128xf32, #tpu.memory_space<vmem>>, vector<256x128xf32>
    tpu.vector_store %arg8[%c0_22, %c0_23], %41 {strides = array<i32>} : memref<256x128xf32, #tpu.memory_space<vmem>>, vector<256x128xf32>,
    return
  }
  func.func @transform_0(%arg0: i32) -> (i32, i32) {
    %c0_i32 = arith.constant 0 : i32
    %c0_i32_0 = arith.constant 0 : i32
    return %arg0, %c0_i32 : i32, i32
  }
  func.func @transform_1(%arg0: i32) -> (i32, i32) {
    %c0_i32 = arith.constant 0 : i32
    %c0_i32_0 = arith.constant 0 : i32
    %c0_i32_1 = arith.constant 0 : i32
    return %c0_i32, %c0_i32_0 : i32, i32
  }
  func.func @transform_2(%arg0: i32) -> (i32, i32) {
    %c0_i32 = arith.constant 0 : i32
    %c0_i32_0 = arith.constant 0 : i32
    %c0_i32_1 = arith.constant 0 : i32
    return %c0_i32, %c0_i32_0 : i32, i32
  }
  func.func @transform_3(%arg0: i32) -> (i32, i32) {
    %c0_i32 = arith.constant 0 : i32
    %c0_i32_0 = arith.constant 0 : i32
    %c0_i32_1 = arith.constant 0 : i32
    return %c0_i32, %c0_i32_0 : i32, i32
  }
  func.func @transform_4(%arg0: i32) -> (i32, i32) {
    %c0_i32 = arith.constant 0 : i32
    %c0_i32_0 = arith.constant 0 : i32
    %c0_i32_1 = arith.constant 0 : i32
    return %c0_i32, %c0_i32_0 : i32, i32
  }
  func.func @transform_5(%arg0: i32) -> (i32, i32) {
    %c0_i32 = arith.constant 0 : i32
    %c0_i32_0 = arith.constant 0 : i32
    %c0_i32_1 = arith.constant 0 : i32
    return %c0_i32, %c0_i32_0 : i32, i32
  }
  func.func @transform_6(%arg0: i32) -> (i32, i32) {
    %c0_i32 = arith.constant 0 : i32
    %c0_i32_0 = arith.constant 0 : i32
    %c0_i32_1 = arith.constant 0 : i32
    return %c0_i32, %c0_i32_0 : i32, i32
  }
  func.func @transform_7(%arg0: i32) -> (i32, i32) {
    %c0_i32 = arith.constant 0 : i32
    %c0_i32_0 = arith.constant 0 : i32
    return %arg0, %c0_i32 : i32, i32
  }
}

</mosaic_0001>

<bundles_post_ra>
// kernel: tpu_custom_call.1
= control target key start
LH: loop header
LB: loop body
LE: loop exit
PB: predicated region body
PF: predicated region fallthrough
CT: control target
= control target key end

     0   :  { %12 = vsyncpa [#allocation3], 0  ;;  %s3556_s0 = inlined_call_operand.hbm [shape: f32[512,128], index: 0, kind: input, shape index: {}]   ;;  %s3557_s1 = inlined_call_operand.vmem [shape: f32[1,128], index: 1, kind: input, shape index: {}]   ;;  %s3558_s2 = inlined_call_operand.vmem [shape: f32[1,128], index: 2, kind: input, shape index: {}]   ;;  %s3559_s3 = inlined_call_operand.hbm [shape: f32[128,256], index: 3, kind: input, shape index: {}]   ;;  %s3560_s4 = inlined_call_operand.vmem [shape: f32[1,256], index: 4, kind: input, shape index: {}]   ;;  %s3561_s5 = inlined_call_operand.hbm [shape: f32[256,128], index: 5, kind: input, shape index: {}]   ;;  %s3562_s6 = inlined_call_operand.vmem [shape: f32[1,128], index: 6, kind: input, shape index: {}]   ;;  %s3563_s7 = inlined_call_operand.hbm [shape: f32[512,128], index: 7, kind: output, shape index: {}]  }
   0x1   :  { %14 = vsyncpa [#allocation3 + $0x1], 0 }
   0x2   :  { %15 = vsyncpa [#allocation6], 0 }
   0x3   :  { %16 = vsyncpa [#allocation4], 0 }
   0x4   :  { %18 = vsyncpa [#allocation4 + $0x1], 0  ;;  %s2490_s24 = smov 0   ;;  %s2492_s25 = smov 0  }
   0x5   :  { %s2494_s26 = smov 0   ;;  %s2496_s27 = smov 0  }
   0x6 LB: > { %s2511_s28 = sadd.s32 4294967295, %s2436_s27   ;;  %s1846_s29 = sadd.s32 4294967294, %s2436_s27   ;;  %s2436_s27 = sphi %s2496_s27, %s3585_s27   ;;  %s2432_s26 = sphi %s2494_s26, %s3584_s26   ;;  %s2428_s25 = sphi %s2492_s25, %s3583_s25   ;;  %s2424_s24 = sphi %s2490_s24, %s3582_s24  }
   0x7   : > { %p44_p0 = scmp.ne.s32.totalorder %s2428_s25, %s2424_s24  ;;  %p3564_p1 = scmp.eq.s32.totalorder %s2511_s28, 0 }
   0x8   : > { %p200_p3 = scmp.eq.s32.totalorder %s1846_s29, 1  ;;  %p1847_p5 = scmp.ge.s32.totalorder %s2436_s27, 1 }
   0x9   : > { %p2520_p4 = por %p3564_p1, %p44_p0  ;;  %p207_p7 = scmp.lt.s32.totalorder %s2436_s27, 3 }
   0xa   : > { %p2525_p6 = por %p200_p3, %p44_p0  ;;  %s2438_s10 = smov [#allocation5]  }
   0xb   : > { %s3568_s30 = scalar_select %p2520_p4, 1, 0 }
   0xc   : > { %s3569_s8 = scalar_select %p2525_p6, 1, 0 }
   0xd   : > { %p2530_p8 = pnand %p1847_p5, %p207_p7  ;;  %s225_s11 = sshll.u32 %s2438_s10, 4  ;;  %s2534_s11 = int_to_ptr.vmem [resolvable:$true] %s225_s11 }
   0xe   : > { %s2439_s13 = smov [#allocation7]   ;;  %s2280_s17 = scalar_lea.hbm %s3559_s3, 4096 }
   0xf   : > { %p1993_p9 = pneg %p2530_p8  ;;  %s241_s14 = sshll.u32 %s2439_s13, 4  ;;  %s2545_s14 = int_to_ptr.vmem [resolvable:$true] %s241_s14 }
  0x10   : > { %p2281_p12 = scmp.ne.s32.totalorder %s3559_s3, %s2280_s17  ;;  %p2287_p5 = scmp.lt.u32.totalorder %s2280_s17, %s3559_s3 }
  0x11   : > { %p2541_p11 = pnand %p1993_p9, %p3564_p1 }
  0x13   : > { %p2282_p13 = pneg %p2541_p11 }
  0x15   : > { %p2283_p0 = pnand %p2282_p13, %p2281_p12 }
  0x17   : > { %p2284_p3 = pneg %p2283_p0 }
  0x19   : > { %p2289_p7 = pnand %p2287_p5, %p2284_p3 }
  0x1b   : > { %2292 = shalt.err (!%p2289_p7)
}
  0x1c   : > { %s2293_s22 = scalar_lea.vmem %s2534_s11, 4096  ;;  %p2301_p2 = scmp.lt.s32.totalorder %s2534_s11, %s2534_s11 }
  0x1d   : > { %p2294_p9 = scmp.ne.s32.totalorder %s2534_s11, %s2293_s22  ;;  %p2302_p12 = scmp.lt.s32.totalorder %s2293_s22, %s2293_s22 }
  0x1f   : > { %p2296_p10 = pnand %p2294_p9, %p2282_p13  ;;  %p2303_p0 = por %p2302_p12, %p2301_p2 }
  0x21   : > { %p2297_p1 = pneg %p2296_p10 }
  0x23   : > { %p2304_p6 = pnand %p2303_p0, %p2297_p1 }
  0x25   : > { %2307 = shalt.err (!%p2304_p6)
}
  0x26   : > { %s2440_s23 = smov 256   ;;  %s2441_s29 = smov 16  }
  0x27   : > { %1996 = dma.hbm_to_vmem [thread:$0]  (!%p2541_p11), %s3559_s3, 4096, %s2534_s11, [#allocation6], %s2440_s23, %s2440_s23, %s2441_s29  }
  0x28   : > { %s2308_s17 = scalar_lea.hbm %s3561_s5, 4096 }
  0x29   : > { %p2309_p2 = scmp.ne.s32.totalorder %s3561_s5, %s2308_s17  ;;  %p2315_p10 = scmp.lt.u32.totalorder %s2308_s17, %s3561_s5 }
  0x2b   : > { %p2311_p1 = pnand %p2309_p2, %p2282_p13 }
  0x2d   : > { %p2312_p6 = pneg %p2311_p1 }
  0x2f   : > { %p2317_p3 = pnand %p2315_p10, %p2312_p6 }
  0x31   : > { %2320 = shalt.err (!%p2317_p3)
}
  0x32   : > { %s2321_s11 = scalar_lea.vmem %s2545_s14, 4096  ;;  %p2329_p12 = scmp.lt.s32.totalorder %s2545_s14, %s2545_s14 }
  0x33   : > { %p2322_p5 = scmp.ne.s32.totalorder %s2545_s14, %s2321_s11  ;;  %p2330_p0 = scmp.lt.s32.totalorder %s2321_s11, %s2321_s11 }
  0x35   : > { %p2324_p7 = pnand %p2322_p5, %p2282_p13  ;;  %p2331_p2 = por %p2330_p0, %p2329_p12 }
  0x37   : > { %p2325_p9 = pneg %p2324_p7 }
  0x39   : > { %p2332_p1 = pnand %p2331_p2, %p2325_p9 }
  0x3b   : > { %2335 = shalt.err (!%p2332_p1)
}
  0x3c   : > { %s3565_s22 = smov 128   ;;  %s2443_s23 = smov 8  }
  0x3d   : > { %1999 = dma.hbm_to_vmem [thread:$0]  (!%p2541_p11), %s3561_s5, 4096, %s2545_s14, [#allocation6], %s3565_s22, %s3565_s22, %s2443_s23  }
  0x3e   : > { %s2603_s13 = sadd.s32 1, %s2436_s27   ;;  %s31_s16 = sadd.s32 1, %s2432_s26 }
  0x3f   : > { %s28_s15 = ssub.s32 %s2436_s27, %s2603_s13  ;;  %p38_p6 = scmp.ne.s32.totalorder %s2432_s26, %s2428_s25 }
  0x40   : > { %p29_p13 = scmp.eq.s32.totalorder %s28_s15, 0  ;;  %p39_p10 = scmp.eq.s32.totalorder %s2436_s27, 0 }
  0x41   : > { %p3572_p5 = scmp.eq.s32.totalorder %s2511_s28, 1  ;;  %p2010_p9 = scmp.lt.s32.totalorder %s2436_s27, 2 }
  0x42   : > { %s2612_s17 = scalar_select %p29_p13, %s2432_s26, %s31_s16  }
  0x43   : > { %p40_p3 = por %p39_p10, %p38_p6  ;;  %p2616_p7 = por %p3572_p5, %p38_p6 }
  0x44   : > { %s258_s18 = sand.u32 1, %s2432_s26   ;;  %s1867_s14 = sshll.u32 %s2436_s27, 12 }
  0x45   : > { %s3573_s12 = scalar_select %p2616_p7, 1, 0 }
  0x46   : > { %s1851_s19 = sshll.u32 %s258_s18, 8  ;;  %s2626_s11 = scalar_lea.hbm %s3556_s0, %s1867_s14 }
  0x47   : > { %s262_s29 = scalar_lea.vmem [#allocation2], %s1851_s19  ;;  %p2630_p11 = pnand %p2010_p9, %p40_p3 }
  0x48   : > { %s269_s10 = sshll.u32 %s262_s29, 4  ;;  %s2634_s16 = scalar_lea.sflag [#allocation3], %s258_s18  ;;  %s2628_s10 = int_to_ptr.vmem [resolvable:$true] %s269_s10 }
  0x49   : > { %s2336_s22 = scalar_lea.hbm %s2626_s11, 4096  ;;  %p2338_p0 = pneg %p2630_p11 }
  0x4a   : > { %p2337_p12 = scmp.ne.s32.totalorder %s2626_s11, %s2336_s22  ;;  %s2341_s20 = scalar_lea.hbm %s3556_s0, 8192 }
  0x4b   : > { %p2342_p13 = scmp.lt.u32.totalorder %s2626_s11, %s3556_s0  ;;  %p2343_p6 = scmp.lt.u32.totalorder %s2341_s20, %s2336_s22 }
  0x4c   : > { %p2339_p2 = pnand %p2338_p0, %p2337_p12  ;;  %p2345_p3 = scmp.lt.u32.totalorder %s2336_s22, %s2626_s11 }
  0x4d   : > { %p2344_p10 = por %p2343_p6, %p2342_p13 }
  0x4e   : > { %p2340_p1 = pneg %p2339_p2 }
  0x4f   : > { %p2346_p5 = por %p2345_p3, %p2344_p10 }
  0x51   : > { %p2347_p9 = pnand %p2346_p5, %p2340_p1 }
  0x53   : > { %2350 = shalt.err (!%p2347_p9)
}
  0x54   : > { %s2351_s18 = scalar_lea.vmem %s2628_s10, 4096  ;;  %s2444_s19 = smov [#allocation2]  }
  0x55   : > { %p2352_p12 = scmp.ne.s32.totalorder %s2628_s10, %s2351_s18  ;;  %s2356_s14 = sshll.u32 %s2444_s19, 4  ;;  %s2357_s14 = int_to_ptr.vmem [resolvable:$false] %s2356_s14 }
  0x56   : > { %s2358_s21 = scalar_lea.vmem %s2357_s14, 8192  ;;  %p2359_p4 = scmp.lt.s32.totalorder %s2628_s10, %s2357_s14 }
  0x57   : > { %p2354_p2 = pnand %p2352_p12, %p2338_p0  ;;  %p2360_p13 = scmp.lt.s32.totalorder %s2358_s21, %s2351_s18 }
  0x59   : > { %p2355_p7 = pneg %p2354_p2  ;;  %p2361_p6 = por %p2360_p13, %p2359_p4 }
  0x5b   : > { %p2362_p10 = pnand %p2361_p6, %p2355_p7 }
  0x5d   : > { %2365 = shalt.err (!%p2362_p10)
}
  0x5e   : > { %s3575_s22 = smov 128   ;;  %281 = sbr.rel (%p2530_p8) target bundleno = 1005 (0x3ed), region = 48 }
  0x5f   : > { %2003 = dma.hbm_to_vmem [thread:$0]  (!%p2630_p11), %s2626_s11, 4096, %s2628_s10, %s2634_s16, %s3575_s22, %s3575_s22, %s2443_s23  }
  0x60   : > { %s2668_s20 = sand.u32 (!%p2530_p8), 1, %s2428_s25   ;;  %p3576_p4 = scmp.ne.s32.totalorder (!%p2530_p8), %s3568_s30, 0 }
  0x61   : > { %s1855_s29 = sshll.u32 (!%p2530_p8), %s2668_s20, 8  ;;  %s284_s18 = scalar_lea.sflag (!%p2530_p8), [#allocation3], %s2668_s20 }
  0x62   : > { %s2674_s15 = scalar_lea.vmem (!%p2530_p8), [#allocation2], %s1855_s29 }
  0x65   : > { %2411 = dma.done.wait (%p3576_p4), %s284_s18, 4096  }
  0x66   : > { %2413 = vsyncadd (%p3576_p4), %s284_s18, 4294963200  ;;  %p3577_p7 = scmp.eq.s32.totalorder %s2511_s28, 0 }
  0x68   : > { %2415 = dma.done.wait (%p3577_p7), [#allocation6], 8192   ;;  %p3578_p8 = pmov %p3577_p7 }
  0x69   : > { %v2685_v0 = vld [vmem:[%s2674_s15 + $0x10] sm:$0xff]  ;;  %v2688_v1 = vld [vmem:[%s2674_s15] sm:$0xff]  ;;  %v2693_v2 = vld [vmem:[%s2674_s15 + $0x18] sm:$0xff]  ;;  %s3409_s21 = scalar_lea.vmem [#allocation8], %s1855_s29  ;;  %s1868_s22 = sshll.u32 %s2511_s28, 12 }
  0x6a   : > { %2417 = vsyncadd (%p3578_p8), [#allocation6], 4294959104  ;;  %364 = vadd.xlane.f32.xlu1 %v2685_v0  ;;  %360 = vadd.xlane.f32.xlu0 %v2688_v1  ;;  %v2696_v3 = vld [vmem:[%s2674_s15 + $0x8] sm:$0xff]  ;;  %v2704_v5 = vld [vmem:[%s2674_s15 + $0x20] sm:$0xff]  ;;  %s1754_s29 = sshll.u32 %s3409_s21, 4  ;;  %s3508_s9 = scalar_lea.hbm %s3563_s7, %s1868_s22  ;;  %s3510_s29 = int_to_ptr.vmem [resolvable:$true] %s1754_s29 }
  0x6b   : > { %v2701_v4 = vld [vmem:[%s2674_s15 + $0x28] sm:$0xff]  ;;  %v2709_v6 = vld [vmem:[%s2674_s15 + $0x38] sm:$0xff]  ;;  %v2712_v7 = vld [vmem:[%s2674_s15 + $0x30] sm:$0xff]  ;;  %s1741_s28 = scalar_lea.sflag [#allocation4], %s2668_s20  ;;  %s2366_s23 = scalar_lea.vmem %s3510_s29, 4096 }
  0x6c   : > { %v2717_v8 = vld [vmem:[%s2674_s15 + $0x48] sm:$0xff]  ;;  %v2720_v9 = vld [vmem:[%s2674_s15 + $0x40] sm:$0xff]  ;;  %v2725_v10 = vld [vmem:[%s2674_s15 + $0x58] sm:$0xff]  ;;  %p2367_p11 = scmp.ne.s32.totalorder %s3510_s29, %s2366_s23  ;;  %p3579_p0 = scmp.ne.s32.totalorder %s3573_s12, 0 }
  0x6d   : > { %v2728_v11 = vld [vmem:[%s2674_s15 + $0x50] sm:$0xff]  ;;  %v2733_v12 = vld [vmem:[%s2674_s15 + $0x68] sm:$0xff]  ;;  %v2736_v13 = vld [vmem:[%s2674_s15 + $0x60] sm:$0xff]  ;;  %s2447_s11 = smov [#allocation8]  }
  0x6e   : > { %366 = vadd.xlane.f32.xlu1 %v2693_v2  ;;  %362 = vadd.xlane.f32.xlu0 %v2696_v3  ;;  %v2741_v14 = vld [vmem:[%s2674_s15 + $0x78] sm:$0xff]  ;;  %v2744_v15 = vld [vmem:[%s2674_s15 + $0x70] sm:$0xff]  ;;  %v2749_v16 = vld [vmem:[%s2674_s15 + $0x88] sm:$0xff]  ;;  %p2368_p1 = pnand %p2367_p11, %p3579_p0  ;;  %s2370_s10 = sshll.u32 %s2447_s11, 4  ;;  %s2371_s10 = int_to_ptr.vmem [resolvable:$false] %s2370_s10 }
  0x6f   : > { %v2752_v17 = vld [vmem:[%s2674_s15 + $0x80] sm:$0xff]  ;;  %v2757_v18 = vld [vmem:[%s2674_s15 + $0x98] sm:$0xff]  ;;  %v2760_v19 = vld [vmem:[%s2674_s15 + $0x90] sm:$0xff]  ;;  %s2372_s16 = scalar_lea.vmem %s2371_s10, 8192  ;;  %p2373_p5 = scmp.lt.s32.totalorder %s3510_s29, %s2371_s10 }
  0x70   : > { %v2765_v20 = vld [vmem:[%s2674_s15 + $0xa0] sm:$0xff]  ;;  %v2769_v21 = vld [vmem:[%s2674_s15 + $0xa8] sm:$0xff]  ;;  %v2773_v22 = vld [vmem:[%s2674_s15 + $0xb0] sm:$0xff]  ;;  %p2369_p3 = pneg %p2368_p1  ;;  %p2374_p9 = scmp.lt.s32.totalorder %s2372_s16, %s2366_s23 }
  0x71   : > { %v2777_v23 = vld [vmem:[%s2674_s15 + $0xb8] sm:$0xff]  ;;  %v2781_v24 = vld [vmem:[%s2674_s15 + $0xc0] sm:$0xff]  ;;  %v2785_v25 = vld [vmem:[%s2674_s15 + $0xc8] sm:$0xff] }
  0x72   : > { %370 = vadd.xlane.f32.xlu1 %v2701_v4  ;;  %368 = vadd.xlane.f32.xlu0 %v2704_v5  ;;  %v2789_v26 = vld [vmem:[%s2674_s15 + $0xd0] sm:$0xff]  ;;  %v2793_v27 = vld [vmem:[%s2674_s15 + $0xd8] sm:$0xff]  ;;  %v2797_v28 = vld [vmem:[%s2674_s15 + $0xe0] sm:$0xff]  ;;  %p2375_p12 = por %p2374_p9, %p2373_p5 }
  0x73   : > { %v2801_v29 = vld [vmem:[%s2674_s15 + $0xe8] sm:$0xff]  ;;  %v2805_v30 = vld [vmem:[%s2674_s15 + $0xf0] sm:$0xff]  ;;  %v2809_v31 = vld [vmem:[%s2674_s15 + $0xf8] sm:$0xff] }
  0x74   : > { %v792_v32 = vld [vmem:[#allocation5 + $0x8] sm:$0xff]  ;;  %v794_v33 = vld [vmem:[#allocation5 + $0x18] sm:$0xff]  ;;  %v791_v34 = vld [vmem:[#allocation5] sm:$0xff]  ;;  %p2376_p2 = pnand %p2375_p12, %p2369_p3 }
  0x75   : > { %v1869_v35 = vpack.c.bf16 %v794_v33, %v792_v32  ;;  %v793_v36 = vld [vmem:[#allocation5 + $0x10] sm:$0xff]  ;;  %v796_v37 = vld [vmem:[#allocation5 + $0x28] sm:$0xff]  ;;  %v798_v38 = vld [vmem:[#allocation5 + $0x38] sm:$0xff] }
  0x76   : > { %374 = vadd.xlane.f32.xlu1 %v2709_v6  ;;  %372 = vadd.xlane.f32.xlu0 %v2712_v7  ;;  %v1871_v39 = vpack.c.bf16 %v793_v36, %v791_v34  ;;  %v1873_v40 = vpack.c.bf16 %v798_v38, %v796_v37  ;;  %v795_v41 = vld [vmem:[#allocation5 + $0x20] sm:$0xff]  ;;  %v797_v42 = vld [vmem:[#allocation5 + $0x30] sm:$0xff]  ;;  %v800_v43 = vld [vmem:[#allocation5 + $0x48] sm:$0xff] }
  0x77   : > { %1870 = vmatprep.subr.bf16.mxu0 %v1869_v35  ;;  %v802_v44 = vld [vmem:[#allocation5 + $0x58] sm:$0xff]  ;;  %v1875_v45 = vpack.c.bf16 %v797_v42, %v795_v41  ;;  %v799_v47 = vld [vmem:[#allocation5 + $0x40] sm:$0xff]  ;;  %v801_v48 = vld [vmem:[#allocation5 + $0x50] sm:$0xff] }
  0x78   : > { %1872 = vmatpush1.bf16.msra.mxu0 %v1871_v39  ;;  %v1877_v46 = vpack.c.bf16 %v802_v44, %v800_v43  ;;  %v1879_v49 = vpack.c.bf16 %v801_v48, %v799_v47  ;;  %v804_v41 = vld [vmem:[#allocation5 + $0x68] sm:$0xff]  ;;  %v806_v42 = vld [vmem:[#allocation5 + $0x78] sm:$0xff] }
  0x79   : > { %1874 = vmatprep.subr.bf16.mxu0 %v1873_v40  ;;  %v1881_v44 = vpack.c.bf16 %v806_v42, %v804_v41 }
  0x7a   : > { %378 = vadd.xlane.f32.xlu1 %v2717_v8  ;;  %376 = vadd.xlane.f32.xlu0 %v2720_v9 }
  0x7c   : > { %1876 = vmatpush1.bf16.msra.mxu0 %v1875_v45  ;;  %v805_v45 = vld [vmem:[#allocation5 + $0x70] sm:$0xff] }
  0x7d   : > { %1878 = vmatprep.subr.bf16.mxu0 %v1877_v46 }
  0x7e   : > { %382 = vadd.xlane.f32.xlu1 %v2725_v10  ;;  %380 = vadd.xlane.f32.xlu0 %v2728_v11 }
  0x80   : > { %1880 = vmatpush1.bf16.msra.mxu0 %v1879_v49  ;;  %v808_v49 = vld [vmem:[#allocation5 + $0x88] sm:$0xff] }
  0x81   : > { %1882 = vmatprep.subr.bf16.mxu0 %v1881_v44 }
  0x82   : > { %386 = vadd.xlane.f32.xlu1 %v2733_v12  ;;  %384 = vadd.xlane.f32.xlu0 %v2736_v13 }
  0x86   : > { %390 = vadd.xlane.f32.xlu1 %v2741_v14  ;;  %388 = vadd.xlane.f32.xlu0 %v2744_v15 }
  0x8a   : > { %394 = vadd.xlane.f32.xlu1 %v2749_v16  ;;  %392 = vadd.xlane.f32.xlu0 %v2752_v17 }
  0x8e   : > { %398 = vadd.xlane.f32.xlu1 %v2757_v18  ;;  %396 = vadd.xlane.f32.xlu0 %v2760_v19 }
  0x92   : > { %400 = vadd.xlane.f32.xlu1 %v2765_v20 }
  0x96   : > { %402 = vadd.xlane.f32.xlu1 %v2769_v21 }
  0x9a   : > { %404 = vadd.xlane.f32.xlu1 %v2773_v22 }
  0x9e   : > { %406 = vadd.xlane.f32.xlu1 %v2777_v23 }
  0xa2   : > { %408 = vadd.xlane.f32.xlu1 %v2781_v24 }
  0xa6   : > { %410 = vadd.xlane.f32.xlu1 %v2785_v25 }
  0xaa   : > { %412 = vadd.xlane.f32.xlu1 %v2789_v26 }
  0xae   : > { %414 = vadd.xlane.f32.xlu1 %v2793_v27 }
  0xb2   : > { %416 = vadd.xlane.f32.xlu1 %v2797_v28 }
  0xb6   : > { %418 = vadd.xlane.f32.xlu1 %v2801_v29 }
  0xba   : > { %420 = vadd.xlane.f32.xlu1 %v2805_v30 }
  0xbe   : > { %422 = vadd.xlane.f32.xlu1 %v2809_v31 }
  0xf7   : > { %v365_v50 = vpop.xlane.xlu1 %364  ;;  %v361_v51 = vpop.xlane.xlu0 %360 }
  0xf8   : > { %v425_v52 = vmul.f32 0.0078125, %v361_v51  ;;  %v427_v53 = vmul.f32 0.0078125, %v365_v50  ;;  %v810_v50 = vld [vmem:[#allocation5 + $0x98] sm:$0xff] }
  0xfa   : > { %v2813_v54 = vsub.f32 %v2688_v1, %v425_v52  ;;  %v2818_v59 = vsub.f32 %v2685_v0, %v427_v53  ;;  %v1885_v53 = vpack.c.bf16 %v810_v50, %v808_v49  ;;  %v817_v49 = vld [vmem:[#allocation5 + $0xd0] sm:$0xff] }
  0xfb   : > { %v367_v55 = vpop.xlane.xlu1 %366  ;;  %v363_v56 = vpop.xlane.xlu0 %362 }
  0xfc   : > { %v426_v57 = vmul.f32 0.0078125, %v363_v56  ;;  %v489_v58 = vmul.f32 %v2813_v54, %v2813_v54  ;;  %v428_v60 = vmul.f32 0.0078125, %v367_v55  ;;  %v491_v33 = vmul.f32 %v2818_v59, %v2818_v59  ;;  %v807_v55 = vld [vmem:[#allocation5 + $0x80] sm:$0xff]  ;;  %v809_v56 = vld [vmem:[#allocation5 + $0x90] sm:$0xff] }
  0xfe   : > { %v2821_v61 = vsub.f32 %v2696_v3, %v426_v57  ;;  %521 = vadd.xlane.f32.xlu0 %v489_v58  ;;  %v2826_v32 = vsub.f32 %v2693_v2, %v428_v60  ;;  %v1887_v58 = vpack.c.bf16 %v809_v56, %v807_v55  ;;  %v820_v56 = vld [vmem:[#allocation5 + $0xe8] sm:$0xff] }
  0xff   : > { %v371_v62 = vpop.xlane.xlu1 %370  ;;  %v369_v63 = vpop.xlane.xlu0 %368 }
 0x100   : > { %v490_v1 = vmul.f32 %v2821_v61, %v2821_v61  ;;  %v429_v34 = vmul.f32 0.0078125, %v369_v63  ;;  %v430_v35 = vmul.f32 0.0078125, %v371_v62  ;;  %v492_v36 = vmul.f32 %v2826_v32, %v2826_v32 }
 0x102   : > { %523 = vadd.xlane.f32.xlu0 %v490_v1  ;;  %v2831_v3 = vsub.f32 %v2704_v5, %v429_v34  ;;  %v2836_v39 = vsub.f32 %v2701_v4, %v430_v35  ;;  %v803_v5 = vld [vmem:[#allocation5 + $0x60] sm:$0xff]  ;;  %v812_v1 = vld [vmem:[#allocation5 + $0xa8] sm:$0xff] }
 0x103   : > { %v375_v0 = vpop.xlane.xlu1 %374  ;;  %v373_v38 = vpop.xlane.xlu0 %372  ;;  %v1883_v46 = vpack.c.bf16 %v805_v45, %v803_v5  ;;  %v811_v35 = vld [vmem:[#allocation5 + $0xa0] sm:$0xff]  ;;  %v816_v5 = vld [vmem:[#allocation5 + $0xc8] sm:$0xff]  ;;  %v818_v45 = vld [vmem:[#allocation5 + $0xd8] sm:$0xff] }
 0x104   : > { %v493_v2 = vmul.f32 %v2831_v3, %v2831_v3  ;;  %v431_v40 = vmul.f32 0.0078125, %v373_v38  ;;  %v432_v47 = vmul.f32 0.0078125, %v375_v0  ;;  %v494_v4 = vmul.f32 %v2836_v39, %v2836_v39 }
 0x105   : > { %1884 = vmatpush1.bf16.msra.mxu0 %v1883_v46 }
 0x106   : > { %525 = vadd.xlane.f32.xlu0 %v491_v33  ;;  %v2843_v48 = vsub.f32 %v2712_v7, %v431_v40  ;;  %1886 = vmatprep.subr.bf16.mxu0 %v1885_v53  ;;  %v2848_v60 = vsub.f32 %v2709_v6, %v432_v47  ;;  %v814_v33 = vld [vmem:[#allocation5 + $0xb8] sm:$0xff]  ;;  %v1893_v47 = vpack.c.bf16 %v818_v45, %v816_v5 }
 0x107   : > { %v379_v37 = vpop.xlane.xlu1 %378  ;;  %v377_v52 = vpop.xlane.xlu0 %376  ;;  %v1889_v0 = vpack.c.bf16 %v814_v33, %v812_v1  ;;  %v821_v1 = vld [vmem:[#allocation5 + $0xf0] sm:$0xff] }
 0x108   : > { %v495_v62 = vmul.f32 %v2843_v48, %v2843_v48  ;;  %v433_v63 = vmul.f32 0.0078125, %v377_v52  ;;  %v434_v40 = vmul.f32 0.0078125, %v379_v37  ;;  %v496_v44 = vmul.f32 %v2848_v60, %v2848_v60 }
 0x109   : > { %1888 = vmatpush1.bf16.msra.mxu0 %v1887_v58 }
 0x10a   : > { %527 = vadd.xlane.f32.xlu0 %v492_v36  ;;  %v813_v36 = vld [vmem:[#allocation5 + $0xb0] sm:$0xff]  ;;  %1890 = vmatprep.subr.bf16.mxu0 %v1889_v0  ;;  %v2861_v42 = vsub.f32 %v2720_v9, %v433_v63  ;;  %v2868_v9 = vsub.f32 %v2717_v8, %v434_v40  ;;  %v819_v63 = vld [vmem:[#allocation5 + $0xe0] sm:$0xff] }
 0x10b   : > { %v2840_v43 = vpop.xlane.xlu1 %382 }
 0x10c   : > { %v497_v53 = vmul.f32 %v2861_v42, %v2861_v42 }
 0x10e   : > { %529 = vadd.xlane.f32.xlu0 %v493_v2  ;;  %v381_v2 = vpop.xlane.xlu0 %380 }
 0x10f   : > { %v387_v51 = vpop.xlane.xlu1 %386  ;;  %v435_v55 = vmul.f32 0.0078125, %v381_v2 }
 0x110   : > { %v438_v57 = vmul.f32 0.0078125, %v387_v51 }
 0x112   : > { %v2851_v7 = vsub.f32 %v2733_v12, %v438_v57  ;;  %531 = vadd.xlane.f32.xlu0 %v494_v4  ;;  %v1891_v12 = vpack.c.bf16 %v813_v36, %v811_v35  ;;  %v815_v4 = vld [vmem:[#allocation5 + $0xc0] sm:$0xff]  ;;  %v385_v37 = vpop.xlane.xlu0 %384  ;;  %v822_v57 = vld [vmem:[#allocation5 + $0xf8] sm:$0xff]  ;;  %v2882_v35 = vsub.f32 %v2728_v11, %v435_v55  ;;  %v498_v36 = vmul.f32 %v2868_v9, %v2868_v9 }
 0x113   : > { %v391_v34 = vpop.xlane.xlu1 %390  ;;  %v1895_v51 = vpack.c.bf16 %v817_v49, %v815_v4 }
 0x114   : > { %v440_v38 = vmul.f32 0.0078125, %v391_v34  ;;  %v502_v6 = vmul.f32 %v2851_v7, %v2851_v7  ;;  %1892 = vmatpush1.bf16.msra.mxu0 %v1891_v12  ;;  %v436_v34 = vmul.f32 0.0078125, %v2840_v43  ;;  %v2445_v12 = vmov 0.0  }
 0x115   : > { %1894 = vmatprep.subr.bf16.mxu0 %v1893_v47  ;;  %899 = vmatprep.mubr.f32.mxu0 %v2445_v12  ;;  %v499_v11 = vmul.f32 %v2882_v35, %v2882_v35  ;;  %v437_v43 = vmul.f32 0.0078125, %v385_v37 }
 0x116   : > { %v2858_v41 = vsub.f32 %v2741_v14, %v440_v38  ;;  %547 = vadd.xlane.f32.xlu1 %v502_v6  ;;  %533 = vadd.xlane.f32.xlu0 %v495_v62  ;;  %v1897_v62 = vpack.c.bf16 %v822_v57, %v820_v56  ;;  %v389_v6 = vpop.xlane.xlu0 %388 }
 0x117   : > { %v395_v46 = vpop.xlane.xlu1 %394  ;;  %v439_v47 = vmul.f32 0.0078125, %v389_v6 }
 0x118   : > { %v442_v50 = vmul.f32 0.0078125, %v395_v46  ;;  %v504_v14 = vmul.f32 %v2858_v41, %v2858_v41  ;;  %1896 = vmatpush1.bf16.msra.mxu0 %v1895_v51  ;;  %v2898_v46 = vsub.f32 %v2736_v13, %v437_v43 }
 0x119   : > { %1898 = vmatprep.subr.bf16.mxu0 %v1897_v62 }
 0x11a   : > { %v2871_v52 = vsub.f32 %v2749_v16, %v442_v50  ;;  %551 = vadd.xlane.f32.xlu1 %v504_v14  ;;  %535 = vadd.xlane.f32.xlu0 %v496_v44  ;;  %v1899_v16 = vpack.c.bf16 %v821_v1, %v819_v63  ;;  %v393_v5 = vpop.xlane.xlu0 %392  ;;  %v2905_v50 = vsub.f32 %v2744_v15, %v439_v47 }
 0x11b   : > { %v399_v58 = vpop.xlane.xlu1 %398  ;;  %v441_v14 = vmul.f32 0.0078125, %v393_v5 }
 0x11c   : > { %v444_v33 = vmul.f32 0.0078125, %v399_v58  ;;  %v506_v8 = vmul.f32 %v2871_v52, %v2871_v52  ;;  %1900 = vmatpush1.bf16.msra.mxu0 %v1899_v16  ;;  %v503_v56 = vmul.f32 %v2905_v50, %v2905_v50 }
 0x11d   : > { %v2913_v55 = vsub.f32 %v2752_v17, %v441_v14 }
 0x11e   : > { %v2879_v0 = vsub.f32 %v2757_v18, %v444_v33  ;;  %555 = vadd.xlane.f32.xlu1 %v506_v8  ;;  %537 = vadd.xlane.f32.xlu0 %v497_v53  ;;  %v2890_v18 = vsub.f32 %v2725_v10, %v436_v34  ;;  %v397_v13 = vpop.xlane.xlu0 %396 }
 0x11f   : > { %v401_v38 = vpop.xlane.xlu1 %400  ;;  %v443_v57 = vmul.f32 0.0078125, %v397_v13 }
 0x120   : > { %v508_v2 = vmul.f32 %v2879_v0, %v2879_v0  ;;  %v500_v10 = vmul.f32 %v2890_v18, %v2890_v18  ;;  %v445_v62 = vmul.f32 0.0078125, %v401_v38 }
 0x121   : > { %v2920_v63 = vsub.f32 %v2760_v19, %v443_v57 }
 0x122   : > { %559 = vadd.xlane.f32.xlu1 %v508_v2  ;;  %539 = vadd.xlane.f32.xlu0 %v498_v36  ;;  %v2925_v33 = vsub.f32 %v2765_v20, %v445_v62 }
 0x123   : > { %v403_v40 = vpop.xlane.xlu1 %402  ;;  %v507_v34 = vmul.f32 %v2920_v63, %v2920_v63 }
 0x124   : > { %v446_v44 = vmul.f32 0.0078125, %v403_v40  ;;  %v509_v20 = vmul.f32 %v2925_v33, %v2925_v33 }
 0x126   : > { %v2895_v45 = vsub.f32 %v2769_v21, %v446_v44  ;;  %541 = vadd.xlane.f32.xlu0 %v499_v11  ;;  %v501_v21 = vmul.f32 %v2898_v46, %v2898_v46 }
 0x127   : > { %v405_v4 = vpop.xlane.xlu1 %404 }
 0x128   : > { %v510_v49 = vmul.f32 %v2895_v45, %v2895_v45  ;;  %v447_v8 = vmul.f32 0.0078125, %v405_v4 }
 0x12a   : > { %563 = vadd.xlane.f32.xlu1 %v510_v49  ;;  %543 = vadd.xlane.f32.xlu0 %v500_v10  ;;  %v2935_v38 = vsub.f32 %v2773_v22, %v447_v8 }
 0x12b   : > { %v407_v37 = vpop.xlane.xlu1 %406 }
 0x12c   : > { %v448_v51 = vmul.f32 0.0078125, %v407_v37  ;;  %v511_v22 = vmul.f32 %v2935_v38, %v2935_v38 }
 0x12e   : > { %v2910_v53 = vsub.f32 %v2777_v23, %v448_v51  ;;  %545 = vadd.xlane.f32.xlu0 %v501_v21  ;;  %v505_v23 = vmul.f32 %v2913_v55, %v2913_v55 }
 0x12f   : > { %v409_v15 = vpop.xlane.xlu1 %408 }
 0x130   : > { %v512_v58 = vmul.f32 %v2910_v53, %v2910_v53  ;;  %v449_v6 = vmul.f32 0.0078125, %v409_v15 }
 0x132   : > { %567 = vadd.xlane.f32.xlu1 %v512_v58  ;;  %549 = vadd.xlane.f32.xlu0 %v503_v56  ;;  %v2940_v11 = vsub.f32 %v2781_v24, %v449_v6 }
 0x133   : > { %v411_v1 = vpop.xlane.xlu1 %410 }
 0x134   : > { %v450_v17 = vmul.f32 0.0078125, %v411_v1  ;;  %v513_v24 = vmul.f32 %v2940_v11, %v2940_v11 }
 0x136   : > { %v2928_v16 = vsub.f32 %v2785_v25, %v450_v17  ;;  %553 = vadd.xlane.f32.xlu0 %v505_v23 }
 0x137   : > { %v413_v36 = vpop.xlane.xlu1 %412 }
 0x138   : > { %v514_v19 = vmul.f32 %v2928_v16, %v2928_v16  ;;  %v451_v43 = vmul.f32 0.0078125, %v413_v36 }
 0x13a   : > { %571 = vadd.xlane.f32.xlu1 %v514_v19  ;;  %557 = vadd.xlane.f32.xlu0 %v507_v34  ;;  %v2950_v10 = vsub.f32 %v2789_v26, %v451_v43 }
 0x13b   : > { %v415_v2 = vpop.xlane.xlu1 %414 }
 0x13c   : > { %v452_v25 = vmul.f32 0.0078125, %v415_v2  ;;  %v515_v14 = vmul.f32 %v2950_v10, %v2950_v10 }
 0x13e   : > { %v2943_v40 = vsub.f32 %v2793_v27, %v452_v25  ;;  %561 = vadd.xlane.f32.xlu0 %v509_v20  ;;  %v2979_v25 = vld [vmem:[%s3557_s1] ss:$0 sm:$0xff] }
 0x13f   : > { %v417_v44 = vpop.xlane.xlu1 %416 }
 0x140   : > { %v516_v5 = vmul.f32 %v2943_v40, %v2943_v40  ;;  %v453_v47 = vmul.f32 0.0078125, %v417_v44 }
 0x142   : > { %575 = vadd.xlane.f32.xlu1 %v516_v5  ;;  %565 = vadd.xlane.f32.xlu0 %v511_v22  ;;  %v2955_v49 = vsub.f32 %v2797_v28, %v453_v47  ;;  %v2985_v5 = vld [vmem:[%s3558_s2] ss:$0 sm:$0xff] }
 0x143   : > { %v419_v4 = vpop.xlane.xlu1 %418 }
 0x144   : > { %v454_v27 = vmul.f32 0.0078125, %v419_v4  ;;  %v517_v28 = vmul.f32 %v2955_v49, %v2955_v49 }
 0x146   : > { %v2958_v21 = vsub.f32 %v2801_v29, %v454_v27  ;;  %569 = vadd.xlane.f32.xlu0 %v513_v24 }
 0x147   : > { %v421_v26 = vpop.xlane.xlu1 %420 }
 0x148   : > { %v455_v37 = vmul.f32 0.0078125, %v421_v26  ;;  %v518_v13 = vmul.f32 %v2958_v21, %v2958_v21 }
 0x14a   : > { %v2965_v51 = vsub.f32 %v2805_v30, %v455_v37  ;;  %579 = vadd.xlane.f32.xlu1 %v518_v13  ;;  %573 = vadd.xlane.f32.xlu0 %v515_v14  ;;  %v1412_v37 = vld [vmem:[#allocation7] sm:$0xff]  ;;  %v1413_v13 = vld [vmem:[#allocation7 + $0x8] sm:$0xff] }
 0x14b   : > { %v423_v56 = vpop.xlane.xlu1 %422 }
 0x14c   : > { %v456_v29 = vmul.f32 0.0078125, %v423_v56  ;;  %v519_v15 = vmul.f32 %v2965_v51, %v2965_v51  ;;  %v2446_v56 = vmov 0.0|0.0  }
 0x14d   : > { %1901 = vmatprep.subr.bf16.mxu0 %v2446_v56  ;;  %1949 = vmatprep.subr.bf16.mxu1 %v2446_v56 }
 0x14e   : > { %v2970_v57 = vsub.f32 %v2809_v31, %v456_v29  ;;  %577 = vadd.xlane.f32.xlu0 %v517_v28  ;;  %v1414_v28 = vld [vmem:[#allocation7 + $0x10] sm:$0xff]  ;;  %v1902_v29 = vpack.c.bf16 %v1413_v13, %v1412_v37  ;;  %v1420_v13 = vld [vmem:[#allocation7 + $0x40] sm:$0xff] }
 0x150   : > { %v520_v58 = vmul.f32 %v2970_v57, %v2970_v57  ;;  %1965 = vmatpush1.bf16.msra.mxu1 %v1902_v29 }
 0x151   : > { %1950 = vmatprep.subr.bf16.mxu1 %v2446_v56 }
 0x152   : > { %583 = vadd.xlane.f32.xlu1 %v520_v58  ;;  %581 = vadd.xlane.f32.xlu0 %v519_v15  ;;  %v1415_v15 = vld [vmem:[#allocation7 + $0x18] sm:$0xff] }
 0x18b   : > { %v522_v30 = vpop.xlane.xlu0 %521 }
 0x18c   : > { %v585_v62 = vmul.f32 0.0078125, %v522_v30 }
 0x18e   : > { %v617_v23 = vadd.f32 1e-05, %v585_v62 }
 0x18f   : > { %v524_v1 = vpop.xlane.xlu0 %523 }
 0x190   : > { %2056 = vrsqrt.f32 %v617_v23  ;;  %v586_v17 = vmul.f32 0.0078125, %v524_v1 }
 0x192   : > { %v618_v8 = vadd.f32 1e-05, %v586_v17 }
 0x193   : > { %v526_v34 = vpop.xlane.xlu0 %525 }
 0x194   : > { %2058 = vrsqrt.f32 %v618_v8  ;;  %v587_v31 = vmul.f32 0.0078125, %v526_v34  ;;  %v1416_v8 = vld [vmem:[#allocation7 + $0x20] sm:$0xff]  ;;  %v1417_v34 = vld [vmem:[#allocation7 + $0x28] sm:$0xff] }
 0x196   : > { %v619_v36 = vadd.f32 1e-05, %v587_v31 }
 0x197   : > { %v528_v19 = vpop.xlane.xlu0 %527 }
 0x198   : > { %2060 = vrsqrt.f32 %v619_v36  ;;  %v588_v6 = vmul.f32 0.0078125, %v528_v19 }
 0x19a   : > { %v2057_v20 = vpop.eup %2056  ;;  %v620_v2 = vadd.f32 1e-05, %v588_v6 }
 0x19b   : > { %v530_v43 = vpop.xlane.xlu0 %529  ;;  %v681_v22 = vmul.f32 %v2057_v20, %v2813_v54  ;;  %v1908_v20 = vpack.c.bf16 %v1417_v34, %v1416_v8 }
 0x19c   : > { %2062 = vrsqrt.f32 %v620_v2  ;;  %v589_v44 = vmul.f32 0.0078125, %v530_v43 }
 0x19d   : > { %v720_v47 = vmul.f32 %v2979_v25, %v681_v22  ;;  %v1418_v22 = vld [vmem:[#allocation7 + $0x30] sm:$0xff] }
 0x19e   : > { %v2059_v24 = vpop.eup %2058  ;;  %v621_v4 = vadd.f32 1e-05, %v589_v44  ;;  %v1419_v44 = vld [vmem:[#allocation7 + $0x38] sm:$0xff] }
 0x19f   : > { %v532_v27 = vpop.xlane.xlu0 %531  ;;  %v759_v14 = vadd.f32 %v2985_v5, %v720_v47  ;;  %v682_v26 = vmul.f32 %v2059_v24, %v2821_v61  ;;  %v1905_v61 = vpack.c.bf16 %v1415_v15, %v1414_v28  ;;  %v1421_v28 = vld [vmem:[#allocation7 + $0x48] sm:$0xff] }
 0x1a0   : > { %2064 = vrsqrt.f32 %v621_v4  ;;  %v590_v54 = vmul.f32 0.0078125, %v532_v27 }
 0x1a1   : > { %900 = vmatmul.mubr.f32.vlgmr.msra.gmra.mrb[0].mxu0 %v759_v14  ;;  %v721_v58 = vmul.f32 %v2979_v25, %v682_v26  ;;  %1966 = vmatpush1.bf16.msra.mxu1 %v1905_v61  ;;  %v1911_v14 = vpack.c.bf16 %v1419_v44, %v1418_v22 }
 0x1a2   : > { %v2061_v30 = vpop.eup %2060  ;;  %v622_v62 = vadd.f32 1e-05, %v590_v54  ;;  %905 = vmatprep.mubr.f32.mxu0 %v2445_v12  ;;  %1903 = vmatpush1.bf16.msra.mxu0 %v1902_v29 }
 0x1a3   : > { %v534_v23 = vpop.xlane.xlu0 %533  ;;  %v760_v1 = vadd.f32 %v2985_v5, %v721_v58  ;;  %v683_v17 = vmul.f32 %v2061_v30, %v2818_v59  ;;  %1904 = vmatprep.subr.bf16.mxu0 %v2446_v56  ;;  %1951 = vmatprep.subr.bf16.mxu1 %v2446_v56  ;;  %v1914_v30 = vpack.c.bf16 %v1421_v28, %v1420_v13 }
 0x1a4   : > { %2066 = vrsqrt.f32 %v622_v62  ;;  %v591_v31 = vmul.f32 0.0078125, %v534_v23  ;;  %v1422_v23 = vld [vmem:[#allocation7 + $0x50] sm:$0xff] }
 0x1a5   : > { %906 = vmatmul.mubr.f32.gmra.mrb[2].mxu0 %v760_v1  ;;  %v722_v36 = vmul.f32 %v2979_v25, %v683_v17  ;;  %1967 = vmatpush1.bf16.msra.mxu1 %v1908_v20  ;;  %v1423_v1 = vld [vmem:[#allocation7 + $0x58] sm:$0xff] }
 0x1a6   : > { %v2063_v19 = vpop.eup %2062  ;;  %v623_v6 = vadd.f32 1e-05, %v591_v31  ;;  %911 = vmatprep.mubr.f32.mxu0 %v2445_v12  ;;  %1906 = vmatpush1.bf16.msra.mxu0 %v1905_v61  ;;  %v1917_v31 = vpack.c.bf16 %v1423_v1, %v1422_v23 }
 0x1a7   : > { %v536_v2 = vpop.xlane.xlu0 %535  ;;  %v761_v59 = vadd.f32 %v2985_v5, %v722_v36  ;;  %v684_v43 = vmul.f32 %v2063_v19, %v2826_v32  ;;  %1907 = vmatprep.subr.bf16.mxu0 %v2446_v56  ;;  %1952 = vmatprep.subr.bf16.mxu1 %v2446_v56 }
 0x1a8   : > { %v592_v47 = vmul.f32 0.0078125, %v536_v2  ;;  %2068 = vrsqrt.f32 %v623_v6  ;;  %v548_v6 = vpop.xlane.xlu1 %547 }
 0x1a9   : > { %912 = vmatmul.mubr.f32.gmra.mrb[4].mxu0 %v761_v59  ;;  %v723_v24 = vmul.f32 %v2979_v25, %v684_v43  ;;  %1968 = vmatpush1.bf16.msra.mxu1 %v1911_v14  ;;  %v1424_v59 = vld [vmem:[#allocation7 + $0x60] sm:$0xff]  ;;  %v1425_v43 = vld [vmem:[#allocation7 + $0x68] sm:$0xff] }
 0x1aa   : > { %v2065_v4 = vpop.eup %2064  ;;  %v624_v27 = vadd.f32 1e-05, %v592_v47  ;;  %917 = vmatprep.mubr.f32.mxu0 %v2445_v12  ;;  %1909 = vmatpush1.bf16.msra.mxu0 %v1908_v20 }
 0x1ab   : > { %v538_v26 = vpop.xlane.xlu0 %537  ;;  %v762_v32 = vadd.f32 %v2985_v5, %v723_v24  ;;  %v685_v37 = vmul.f32 %v2065_v4, %v2831_v3  ;;  %1910 = vmatprep.subr.bf16.mxu0 %v2446_v56  ;;  %1953 = vmatprep.subr.bf16.mxu1 %v2446_v56  ;;  %v598_v24 = vmul.f32 0.0078125, %v548_v6  ;;  %v1430_v6 = vld [vmem:[#allocation7 + $0x90] sm:$0xff] }
 0x1ac   : > { %v593_v54 = vmul.f32 0.0078125, %v538_v26  ;;  %2070 = vrsqrt.f32 %v624_v27  ;;  %v1920_v27 = vpack.c.bf16 %v1425_v43, %v1424_v59 }
 0x1ad   : > { %918 = vmatmul.mubr.f32.gmra.mrb[6].mxu0 %v762_v32  ;;  %v724_v29 = vmul.f32 %v2979_v25, %v685_v37  ;;  %1969 = vmatpush1.bf16.msra.mxu1 %v1914_v30  ;;  %v1426_v32 = vld [vmem:[#allocation7 + $0x70] sm:$0xff]  ;;  %v1427_v37 = vld [vmem:[#allocation7 + $0x78] sm:$0xff] }
 0x1ae   : > { %v2067_v15 = vpop.eup %2066  ;;  %v625_v58 = vadd.f32 1e-05, %v593_v54  ;;  %923 = vmatprep.mubr.f32.mxu0 %v2445_v12  ;;  %1912 = vmatpush1.bf16.msra.mxu0 %v1911_v14  ;;  %v630_v54 = vadd.f32 1e-05, %v598_v24 }
 0x1af   : > { %v540_v62 = vpop.xlane.xlu0 %539  ;;  %v763_v3 = vadd.f32 %v2985_v5, %v724_v29  ;;  %v686_v61 = vmul.f32 %v2067_v15, %v2836_v39  ;;  %1913 = vmatprep.subr.bf16.mxu0 %v2446_v56  ;;  %1954 = vmatprep.subr.bf16.mxu1 %v2446_v56 }
 0x1b0   : > { %v594_v17 = vmul.f32 0.0078125, %v540_v62  ;;  %2072 = vrsqrt.f32 %v625_v58  ;;  %v1923_v62 = vpack.c.bf16 %v1427_v37, %v1426_v32 }
 0x1b1   : > { %924 = vmatmul.mubr.f32.gmra.mrb[8].mxu0 %v763_v3  ;;  %v725_v8 = vmul.f32 %v2979_v25, %v686_v61  ;;  %1970 = vmatpush1.bf16.msra.mxu1 %v1917_v31  ;;  %v1428_v3 = vld [vmem:[#allocation7 + $0x80] sm:$0xff]  ;;  %v552_v61 = vpop.xlane.xlu1 %551 }
 0x1b2   : > { %v626_v34 = vadd.f32 1e-05, %v594_v17  ;;  %929 = vmatprep.mubr.f32.mxu0 %v2445_v12  ;;  %1915 = vmatpush1.bf16.msra.mxu0 %v1914_v30  ;;  %v2069_v36 = vpop.eup %2068 }
 0x1b3   : > { %v542_v19 = vpop.xlane.xlu0 %541  ;;  %v764_v39 = vadd.f32 %v2985_v5, %v725_v8  ;;  %1916 = vmatprep.subr.bf16.mxu0 %v2446_v56  ;;  %v687_v2 = vmul.f32 %v2069_v36, %v2843_v48  ;;  %1955 = vmatprep.subr.bf16.mxu1 %v2446_v56 }
 0x1b4   : > { %v595_v20 = vmul.f32 0.0078125, %v542_v19  ;;  %2074 = vrsqrt.f32 %v626_v34 }
 0x1b5   : > { %930 = vmatmul.mubr.f32.gmra.mrb[10].mxu0 %v764_v39  ;;  %v726_v44 = vmul.f32 %v2979_v25, %v687_v2  ;;  %1971 = vmatpush1.bf16.msra.mxu1 %v1920_v27 }
 0x1b6   : > { %v627_v22 = vadd.f32 1e-05, %v595_v20  ;;  %935 = vmatprep.mubr.f32.mxu0 %v2445_v12  ;;  %1918 = vmatpush1.bf16.msra.mxu0 %v1917_v31  ;;  %v2071_v47 = vpop.eup %2070  ;;  %v600_v31 = vmul.f32 0.0078125, %v552_v61  ;;  %v1431_v20 = vld [vmem:[#allocation7 + $0x98] sm:$0xff] }
 0x1b7   : > { %v544_v4 = vpop.xlane.xlu0 %543  ;;  %1919 = vmatprep.subr.bf16.mxu0 %v2446_v56  ;;  %v765_v14 = vadd.f32 %v2985_v5, %v726_v44  ;;  %v688_v26 = vmul.f32 %v2071_v47, %v2848_v60  ;;  %v1429_v60 = vld [vmem:[#allocation7 + $0x88] sm:$0xff]  ;;  %1956 = vmatprep.subr.bf16.mxu1 %v2446_v56 }
 0x1b8   : > { %2076 = vrsqrt.f32 %v627_v22  ;;  %v596_v48 = vmul.f32 0.0078125, %v544_v4  ;;  %v632_v47 = vadd.f32 1e-05, %v600_v31  ;;  %v1432_v4 = vld [vmem:[#allocation7 + $0xa0] sm:$0xff] }
 0x1b9   : > { %936 = vmatmul.mubr.f32.gmra.mrb[12].mxu0 %v765_v14  ;;  %v727_v15 = vmul.f32 %v2979_v25, %v688_v26  ;;  %1972 = vmatpush1.bf16.msra.mxu1 %v1923_v62 }
 0x1ba   : > { %v628_v13 = vadd.f32 1e-05, %v596_v48  ;;  %v2073_v28 = vpop.eup %2072  ;;  %941 = vmatprep.mubr.f32.mxu0 %v2445_v12  ;;  %1921 = vmatpush1.bf16.msra.mxu0 %v1920_v27  ;;  %v1433_v27 = vld [vmem:[#allocation7 + $0xa8] sm:$0xff]  ;;  %v556_v48 = vpop.xlane.xlu1 %555 }
 0x1bb   : > { %v546_v29 = vpop.xlane.xlu0 %545  ;;  %v689_v30 = vmul.f32 %v2073_v28, %v2861_v42  ;;  %1922 = vmatprep.subr.bf16.mxu0 %v2446_v56  ;;  %v766_v23 = vadd.f32 %v2985_v5, %v727_v15  ;;  %v1926_v42 = vpack.c.bf16 %v1429_v60, %v1428_v3  ;;  %1957 = vmatprep.subr.bf16.mxu1 %v2446_v56 }
 0x1bc   : > { %v597_v58 = vmul.f32 0.0078125, %v546_v29  ;;  %2078 = vrsqrt.f32 %v628_v13  ;;  %v1932_v37 = vpack.c.bf16 %v1433_v27, %v1432_v4  ;;  %v602_v13 = vmul.f32 0.0078125, %v556_v48 }
 0x1bd   : > { %v728_v17 = vmul.f32 %v2979_v25, %v689_v30  ;;  %2080 = vrsqrt.f32 %v630_v54  ;;  %942 = vmatmul.mubr.f32.gmra.mrb[14].mxu0 %v766_v23  ;;  %1973 = vmatpush1.bf16.msra.mxu1 %v1926_v42 }
 0x1be   : > { %v629_v1 = vadd.f32 1e-05, %v597_v58  ;;  %v2075_v8 = vpop.eup %2074  ;;  %947 = vmatprep.mubr.f32.mxu0 %v2445_v12  ;;  %1924 = vmatpush1.bf16.msra.mxu0 %v1923_v62  ;;  %v634_v3 = vadd.f32 1e-05, %v602_v13  ;;  %v560_v61 = vpop.xlane.xlu1 %559 }
 0x1bf   : > { %v550_v34 = vpop.xlane.xlu0 %549  ;;  %v767_v19 = vadd.f32 %v2985_v5, %v728_v17  ;;  %v690_v39 = vmul.f32 %v2075_v8, %v2868_v9  ;;  %1925 = vmatprep.subr.bf16.mxu0 %v2446_v56  ;;  %v1929_v9 = vpack.c.bf16 %v1431_v20, %v1430_v6  ;;  %1958 = vmatprep.subr.bf16.mxu1 %v2446_v56  ;;  %v604_v8 = vmul.f32 0.0078125, %v560_v61 }
 0x1c0   : > { %2082 = vrsqrt.f32 %v629_v1  ;;  %v599_v36 = vmul.f32 0.0078125, %v550_v34 }
 0x1c1   : > { %948 = vmatmul.mubr.f32.gmra.mrb[16].mxu0 %v767_v19  ;;  %v729_v22 = vmul.f32 %v2979_v25, %v690_v39  ;;  %1974 = vmatpush1.bf16.msra.mxu1 %v1929_v9  ;;  %v636_v19 = vadd.f32 1e-05, %v604_v8 }
 0x1c2   : > { %v2077_v2 = vpop.eup %2076  ;;  %v631_v59 = vadd.f32 1e-05, %v599_v36  ;;  %953 = vmatprep.mubr.f32.mxu0 %v2445_v12  ;;  %1927 = vmatpush1.bf16.msra.mxu0 %v1926_v42  ;;  %v564_v6 = vpop.xlane.xlu1 %563 }
 0x1c3   : > { %v554_v43 = vpop.xlane.xlu0 %553  ;;  %v691_v44 = vmul.f32 %v2077_v2, %v2882_v35  ;;  %v768_v14 = vadd.f32 %v2985_v5, %v729_v22  ;;  %1928 = vmatprep.subr.bf16.mxu0 %v2446_v56  ;;  %1959 = vmatprep.subr.bf16.mxu1 %v2446_v56  ;;  %v606_v22 = vmul.f32 0.0078125, %v564_v6 }
 0x1c4   : > { %v601_v24 = vmul.f32 0.0078125, %v554_v43  ;;  %2084 = vrsqrt.f32 %v631_v59 }
 0x1c5   : > { %v730_v26 = vmul.f32 %v2979_v25, %v691_v44  ;;  %954 = vmatmul.mubr.f32.gmra.mrb[18].mxu0 %v768_v14  ;;  %2086 = vrsqrt.f32 %v632_v47  ;;  %1975 = vmatpush1.bf16.msra.mxu1 %v1932_v37  ;;  %v638_v27 = vadd.f32 1e-05, %v606_v22 }
 0x1c6   : > { %v2079_v35 = vpop.eup %2078  ;;  %v633_v28 = vadd.f32 1e-05, %v601_v24  ;;  %959 = vmatprep.mubr.f32.mxu0 %v2445_v12  ;;  %1930 = vmatpush1.bf16.msra.mxu0 %v1929_v9 }
 0x1c7   : > { %v769_v32 = vadd.f32 %v2985_v5, %v730_v26  ;;  %v692_v54 = vmul.f32 %v2079_v35, %v2890_v18  ;;  %v2081_v29 = vpop.eup %2080  ;;  %v558_v15 = vpop.xlane.xlu0 %557  ;;  %1931 = vmatprep.subr.bf16.mxu0 %v2446_v56  ;;  %1960 = vmatprep.subr.bf16.mxu1 %v2446_v56 }
 0x1c8   : > { %2088 = vrsqrt.f32 %v633_v28  ;;  %v603_v60 = vmul.f32 0.0078125, %v558_v15  ;;  %v694_v1 = vmul.f32 %v2081_v29, %v2851_v7 }
 0x1c9   : > { %v731_v30 = vmul.f32 %v2979_v25, %v692_v54  ;;  %960 = vmatmul.mubr.f32.gmra.mrb[20].mxu0 %v769_v32  ;;  %2090 = vrsqrt.f32 %v634_v3 }
 0x1ca   : > { %v2083_v58 = vpop.eup %2082  ;;  %965 = vmatprep.mubr.f32.mxu0 %v2445_v12  ;;  %1933 = vmatpush1.bf16.msra.mxu0 %v1932_v37  ;;  %v635_v34 = vadd.f32 1e-05, %v603_v60  ;;  %v733_v31 = vmul.f32 %v2979_v25, %v694_v1 }
 0x1cb   : > { %v693_v62 = vmul.f32 %v2083_v58, %v2898_v46  ;;  %v770_v18 = vadd.f32 %v2985_v5, %v731_v30  ;;  %1934 = vmatprep.subr.bf16.mxu0 %v2446_v56  ;;  %v562_v42 = vpop.xlane.xlu0 %561 }
 0x1cc   : > { %2092 = vrsqrt.f32 %v635_v34  ;;  %v605_v39 = vmul.f32 0.0078125, %v562_v42  ;;  %v772_v20 = vadd.f32 %v2985_v5, %v733_v31 }
 0x1cd   : > { %v732_v23 = vmul.f32 %v2979_v25, %v693_v62  ;;  %966 = vmatmul.mubr.f32.gmra.mrb[22].mxu0 %v770_v18  ;;  %2094 = vrsqrt.f32 %v636_v19 }
 0x1ce   : > { %v2085_v17 = vpop.eup %2084  ;;  %971 = vmatprep.mubr.f32.mxu0 %v2445_v12  ;;  %v637_v44 = vadd.f32 1e-05, %v605_v39 }
 0x1cf   : > { %v771_v46 = vadd.f32 %v2985_v5, %v732_v23  ;;  %v695_v36 = vmul.f32 %v2085_v17, %v2905_v50  ;;  %v2087_v7 = vpop.eup %2086  ;;  %v566_v50 = vpop.xlane.xlu0 %565 }
 0x1d0   : > { %v696_v59 = vmul.f32 %v2087_v7, %v2858_v41  ;;  %2096 = vrsqrt.f32 %v637_v44  ;;  %v607_v48 = vmul.f32 0.0078125, %v566_v50  ;;  %v568_v41 = vpop.xlane.xlu1 %567 }
 0x1d1   : > { %972 = vmatmul.mubr.f32.gmra.mrb[24].mxu0 %v771_v46  ;;  %v734_v2 = vmul.f32 %v2979_v25, %v695_v36  ;;  %2098 = vrsqrt.f32 %v638_v27  ;;  %v608_v37 = vmul.f32 0.0078125, %v568_v41  ;;  %v1435_v27 = vld [vmem:[#allocation7 + $0xb8] sm:$0xff] }
 0x1d2   : > { %977 = vmatprep.mubr.f32.mxu0 %v2445_v12  ;;  %v2089_v43 = vpop.eup %2088  ;;  %v735_v24 = vmul.f32 %v2979_v25, %v696_v59  ;;  %v639_v13 = vadd.f32 1e-05, %v607_v48 }
 0x1d3   : > { %v773_v47 = vadd.f32 %v2985_v5, %v734_v2  ;;  %v697_v9 = vmul.f32 %v2089_v43, %v2913_v55  ;;  %v2091_v4 = vpop.eup %2090  ;;  %v570_v55 = vpop.xlane.xlu0 %569  ;;  %v640_v58 = vadd.f32 1e-05, %v608_v37  ;;  %v1436_v37 = vld [vmem:[#allocation7 + $0xc0] sm:$0xff] }
 0x1d4   : > { %v774_v14 = vadd.f32 %v2985_v5, %v735_v24  ;;  %v698_v35 = vmul.f32 %v2091_v4, %v2871_v52  ;;  %2100 = vrsqrt.f32 %v639_v13  ;;  %v609_v30 = vmul.f32 0.0078125, %v570_v55  ;;  %v572_v52 = vpop.xlane.xlu1 %571  ;;  %v1434_v4 = vld [vmem:[#allocation7 + $0xb0] sm:$0xff]  ;;  %v1437_v13 = vld [vmem:[#allocation7 + $0xc8] sm:$0xff] }
 0x1d5   : > { %978 = vmatmul.mubr.f32.gmra.mrb[26].mxu0 %v772_v20  ;;  %v736_v26 = vmul.f32 %v2979_v25, %v697_v9  ;;  %2102 = vrsqrt.f32 %v640_v58  ;;  %v610_v61 = vmul.f32 0.0078125, %v572_v52  ;;  %v1935_v48 = vpack.c.bf16 %v1435_v27, %v1434_v4  ;;  %v1438_v52 = vld [vmem:[#allocation7 + $0xd0] sm:$0xff] }
 0x1d6   : > { %983 = vmatprep.mubr.f32.mxu0 %v2445_v12  ;;  %v2093_v32 = vpop.eup %2092  ;;  %v737_v54 = vmul.f32 %v2979_v25, %v698_v35  ;;  %v641_v23 = vadd.f32 1e-05, %v609_v30  ;;  %v1938_v55 = vpack.c.bf16 %v1437_v13, %v1436_v37 }
 0x1d7   : > { %v775_v28 = vadd.f32 %v2985_v5, %v736_v26  ;;  %v699_v29 = vmul.f32 %v2093_v32, %v2920_v63  ;;  %v2095_v15 = vpop.eup %2094  ;;  %v574_v63 = vpop.xlane.xlu0 %573  ;;  %v642_v34 = vadd.f32 1e-05, %v610_v61  ;;  %1936 = vmatpush1.bf16.msra.mxu0 %v1935_v48  ;;  %1976 = vmatpush1.bf16.msra.mxu1 %v1935_v48 }
 0x1d8   : > { %v776_v62 = vadd.f32 %v2985_v5, %v737_v54  ;;  %v700_v60 = vmul.f32 %v2095_v15, %v2879_v0  ;;  %2104 = vrsqrt.f32 %v641_v23  ;;  %v611_v42 = vmul.f32 0.0078125, %v574_v63  ;;  %v576_v0 = vpop.xlane.xlu1 %575  ;;  %1937 = vmatprep.subr.bf16.mxu0 %v2446_v56  ;;  %1961 = vmatprep.subr.bf16.mxu1 %v2446_v56 }
 0x1d9   : > { %984 = vmatmul.mubr.f32.gmra.mrb[28].mxu0 %v773_v47  ;;  %v738_v3 = vmul.f32 %v2979_v25, %v699_v29  ;;  %2106 = vrsqrt.f32 %v642_v34  ;;  %v612_v39 = vmul.f32 0.0078125, %v576_v0 }
 0x1da   : > { %989 = vmatprep.mubr.f32.mxu0 %v2445_v12  ;;  %v2097_v18 = vpop.eup %2096  ;;  %v739_v17 = vmul.f32 %v2979_v25, %v700_v60  ;;  %v643_v6 = vadd.f32 1e-05, %v611_v42 }
 0x1db   : > { %v777_v1 = vadd.f32 %v2985_v5, %v738_v3  ;;  %v701_v46 = vmul.f32 %v2097_v18, %v2925_v33  ;;  %v2099_v8 = vpop.eup %2098  ;;  %v578_v33 = vpop.xlane.xlu0 %577  ;;  %v644_v22 = vadd.f32 1e-05, %v612_v39  ;;  %1939 = vmatpush1.bf16.msra.mxu0 %v1938_v55  ;;  %1977 = vmatpush1.bf16.msra.mxu1 %v1938_v55 }
 0x1dc   : > { %v778_v31 = vadd.f32 %v2985_v5, %v739_v17  ;;  %v702_v7 = vmul.f32 %v2099_v8, %v2895_v45  ;;  %2108 = vrsqrt.f32 %v643_v6  ;;  %v613_v44 = vmul.f32 0.0078125, %v578_v33  ;;  %v580_v45 = vpop.xlane.xlu1 %579  ;;  %1940 = vmatprep.subr.bf16.mxu0 %v2446_v56  ;;  %1962 = vmatprep.subr.bf16.mxu1 %v2446_v56  ;;  %v1441_v17 = vld [vmem:[#allocation7 + $0xe8] sm:$0xff] }
 0x1dd   : > { %990 = vmatmul.mubr.f32.gmra.mrb[30].mxu0 %v774_v14  ;;  %v740_v36 = vmul.f32 %v2979_v25, %v701_v46  ;;  %2110 = vrsqrt.f32 %v644_v22 }
 0x1de   : > { %995 = vmatprep.mubr.f32.mxu0 %v2445_v12  ;;  %v2101_v19 = vpop.eup %2100  ;;  %v741_v2 = vmul.f32 %v2979_v25, %v702_v7  ;;  %v645_v41 = vadd.f32 1e-05, %v613_v44 }
 0x1df   : > { %v779_v20 = vadd.f32 %v2985_v5, %v740_v36  ;;  %v703_v59 = vmul.f32 %v2101_v19, %v2935_v38  ;;  %v2103_v43 = vpop.eup %2102  ;;  %v614_v38 = vmul.f32 0.0078125, %v580_v45  ;;  %v582_v14 = vpop.xlane.xlu0 %581  ;;  %v1443_v36 = vld [vmem:[#allocation7 + $0xf8] sm:$0xff] }
 0x1e0   : > { %v780_v50 = vadd.f32 %v2985_v5, %v741_v2  ;;  %v704_v24 = vmul.f32 %v2103_v43, %v2910_v53  ;;  %2112 = vrsqrt.f32 %v645_v41  ;;  %v615_v54 = vmul.f32 0.0078125, %v582_v14  ;;  %v584_v29 = vpop.xlane.xlu1 %583 }
 0x1e1   : > { %996 = vmatmul.mubr.f32.gmra.mrb[32].mxu0 %v775_v28  ;;  %v742_v47 = vmul.f32 %v2979_v25, %v703_v59  ;;  %v646_v28 = vadd.f32 1e-05, %v614_v38  ;;  %v616_v60 = vmul.f32 0.0078125, %v584_v29 }
 0x1e2   : > { %1001 = vmatprep.mubr.f32.mxu0 %v2445_v12  ;;  %v2105_v9 = vpop.eup %2104  ;;  %v743_v35 = vmul.f32 %v2979_v25, %v704_v24  ;;  %v647_v18 = vadd.f32 1e-05, %v615_v54  ;;  %v825_v24 = vlaneseq }
 0x1e3   : > { %v781_v26 = vadd.f32 %v2985_v5, %v742_v47  ;;  %v705_v32 = vmul.f32 %v2105_v9, %v2940_v11  ;;  %v2107_v53 = vpop.eup %2106  ;;  %2114 = vrsqrt.f32 %v646_v28  ;;  %v648_v8 = vadd.f32 1e-05, %v616_v60 }
 0x1e4   : > { %v782_v15 = vadd.f32 %v2985_v5, %v743_v35  ;;  %v706_v58 = vmul.f32 %v2107_v53, %v2928_v16  ;;  %2116 = vrsqrt.f32 %v647_v18  ;;  %v826_v9 = vshrl.u32 %v825_v24, 7 }
 0x1e5   : > { %1002 = vmatmul.mubr.f32.gmra.mrb[34].mxu0 %v776_v62  ;;  %v744_v11 = vmul.f32 %v2979_v25, %v705_v32  ;;  %v1439_v62 = vld [vmem:[#allocation7 + $0xd8] sm:$0xff]  ;;  %2118 = vrsqrt.f32 %v648_v8 }
 0x1e6   : > { %1007 = vmatprep.mubr.f32.mxu0 %v2445_v12  ;;  %v2109_v30 = vpop.eup %2108  ;;  %v1941_v3 = vpack.c.bf16 %v1439_v62, %v1438_v52  ;;  %v745_v16 = vmul.f32 %v2979_v25, %v706_v58  ;;  %v827_v4 = vsub.s32 0, %v826_v9  ;;  %v831_v27 = vsub.s32 1, %v826_v9 }
 0x1e7   : > { %v783_v61 = vadd.f32 %v2985_v5, %v744_v11  ;;  %v707_v23 = vmul.f32 %v2109_v30, %v2950_v10  ;;  %v2111_v63 = vpop.eup %2110 }
 0x1e8   : > { %1942 = vmatpush1.bf16.msra.mxu0 %v1941_v3  ;;  %1978 = vmatpush1.bf16.msra.mxu1 %v1941_v3  ;;  %v784_v34 = vadd.f32 %v2985_v5, %v745_v16  ;;  %v708_v10 = vmul.f32 %v2111_v63, %v2943_v40 }
 0x1e9   : > { %1008 = vmatmul.mubr.f32.gmra.mrb[36].mxu0 %v777_v1  ;;  %1943 = vmatprep.subr.bf16.mxu0 %v2446_v56  ;;  %v1440_v1 = vld [vmem:[#allocation7 + $0xe0] sm:$0xff]  ;;  %v746_v42 = vmul.f32 %v2979_v25, %v707_v23 }
 0x1ea   : > { %1013 = vmatprep.mubr.f32.mxu0 %v2445_v12  ;;  %1963 = vmatprep.subr.bf16.mxu1 %v2446_v56  ;;  %v1944_v46 = vpack.c.bf16 %v1441_v17, %v1440_v1  ;;  %v2113_v0 = vpop.eup %2112  ;;  %v747_v39 = vmul.f32 %v2979_v25, %v708_v10 }
 0x1eb   : > { %v785_v19 = vadd.f32 %v2985_v5, %v746_v42  ;;  %v709_v40 = vmul.f32 %v2113_v0, %v2955_v49 }
 0x1ec   : > { %1945 = vmatpush1.bf16.msra.mxu0 %v1944_v46  ;;  %1979 = vmatpush1.bf16.msra.mxu1 %v1944_v46  ;;  %v786_v33 = vadd.f32 %v2985_v5, %v747_v39 }
 0x1ed   : > { %1014 = vmatmul.mubr.f32.gmra.mrb[38].mxu0 %v778_v31  ;;  %1946 = vmatprep.subr.bf16.mxu0 %v2446_v56  ;;  %v1442_v31 = vld [vmem:[#allocation7 + $0xf0] sm:$0xff]  ;;  %v2115_v6 = vpop.eup %2114 }
 0x1ee   : > { %1019 = vmatprep.mubr.f32.mxu0 %v2445_v12  ;;  %1964 = vmatprep.subr.bf16.mxu1 %v2446_v56  ;;  %v1947_v7 = vpack.c.bf16 %v1443_v36, %v1442_v31  ;;  %v748_v56 = vmul.f32 %v2979_v25, %v709_v40  ;;  %v2117_v2 = vpop.eup %2116 }
 0x1ef   : > { %v711_v43 = vmul.f32 %v2117_v2, %v2965_v51  ;;  %v2119_v22 = vpop.eup %2118 }
 0x1f0   : > { %1948 = vmatpush1.bf16.msra.mxu0 %v1947_v7  ;;  %1980 = vmatpush1.bf16.msra.mxu1 %v1947_v7  ;;  %v787_v59 = vadd.f32 %v2985_v5, %v748_v56 }
 0x1f1   : > { %1020 = vmatmul.mubr.f32.gmra.mrb[40].mxu0 %v779_v20  ;;  %v710_v20 = vmul.f32 %v2115_v6, %v2958_v21  ;;  %v750_v45 = vmul.f32 %v2979_v25, %v711_v43  ;;  %v712_v21 = vmul.f32 %v2119_v22, %v2970_v57  ;;  %v823_v57 = vld [vmem:[%s3560_s4] sm:$0x3] }
 0x1f2   : > { %1025 = vmatprep.mubr.f32.mxu0 %v2445_v12  ;;  %v3148_v48 = vrot.slane %v823_v57, %v827_v4  ;;  %v3150_v38 = vrot.slane %v823_v57, %v831_v27 }
 0x1f3   : > { %v749_v49 = vmul.f32 %v2979_v25, %v710_v20  ;;  %v751_v47 = vmul.f32 %v2979_v25, %v712_v21 }
 0x1f5   : > { %1026 = vmatmul.mubr.f32.gmra.mrb[42].mxu0 %v780_v50  ;;  %v788_v44 = vadd.f32 %v2985_v5, %v749_v49  ;;  %v789_v50 = vadd.f32 %v2985_v5, %v750_v45  ;;  %v790_v51 = vadd.f32 %v2985_v5, %v751_v47 }
 0x1f6   : > { %1031 = vmatprep.mubr.f32.mxu0 %v2445_v12 }
 0x1f9   : > { %1032 = vmatmul.mubr.f32.gmra.mrb[44].mxu0 %v781_v26 }
 0x1fa   : > { %1037 = vmatprep.mubr.f32.mxu0 %v2445_v12 }
 0x1fd   : > { %1038 = vmatmul.mubr.f32.gmra.mrb[46].mxu0 %v782_v15 }
 0x1fe   : > { %1043 = vmatprep.mubr.f32.mxu0 %v2445_v12 }
 0x201   : > { %1044 = vmatmul.mubr.f32.gmra.mrb[48].mxu0 %v783_v61 }
 0x202   : > { %1049 = vmatprep.mubr.f32.mxu0 %v2445_v12 }
 0x205   : > { %1050 = vmatmul.mubr.f32.gmra.mrb[50].mxu0 %v784_v34 }
 0x206   : > { %1055 = vmatprep.mubr.f32.mxu0 %v2445_v12 }
 0x209   : > { %1056 = vmatmul.mubr.f32.gmra.mrb[52].mxu0 %v785_v19 }
 0x20a   : > { %1061 = vmatprep.mubr.f32.mxu0 %v2445_v12 }
 0x20d   : > { %1062 = vmatmul.mubr.f32.gmra.mrb[54].mxu0 %v786_v33 }
 0x20e   : > { %1067 = vmatprep.mubr.f32.mxu0 %v2445_v12 }
 0x211   : > { %1068 = vmatmul.mubr.f32.gmra.mrb[56].mxu0 %v787_v59 }
 0x212   : > { %1073 = vmatprep.mubr.f32.mxu0 %v2445_v12 }
 0x215   : > { %1074 = vmatmul.mubr.f32.gmra.mrb[58].mxu0 %v788_v44 }
 0x216   : > { %1079 = vmatprep.mubr.f32.mxu0 %v2445_v12 }
 0x219   : > { %1080 = vmatmul.mubr.f32.gmra.mrb[60].mxu0 %v789_v50 }
 0x21a   : > { %1085 = vmatprep.mubr.f32.mxu0 %v2445_v12 }
 0x21d   : > { %1086 = vmatmul.mubr.f32.gmra.mrb[62].mxu0 %v790_v51 }
 0x274   : > { %v901_v41 = vpop.f32.mrb[0].mxu0 }
 0x275   : > { %v902_v25 = vadd.f32 %v901_v41, %v3148_v48  ;;  %v903_v14 = vpop.f32.mrb[1].mxu0 }
 0x276   : > { %v904_v12 = vadd.f32 %v903_v14, %v3150_v38 }
 0x277   : > { %v1156_v5 = vmul.f32 0.70710677, %v902_v25  ;;  %v1092_v34 = vmul.f32 0.5, %v902_v25 }
 0x278   : > { %v1157_v26 = vmul.f32 0.70710677, %v904_v12  ;;  %v907_v35 = vpop.f32.mrb[2].mxu0  ;;  %v1093_v1 = vmul.f32 0.5, %v904_v12 }
 0x279   : > { %2120 = verf.f32 %v1156_v5  ;;  %v908_v32 = vadd.f32 %v907_v35, %v3148_v48  ;;  %v909_v53 = vpop.f32.mrb[3].mxu0 }
 0x27a   : > { %2122 = verf.f32 %v1157_v26  ;;  %v910_v37 = vadd.f32 %v909_v53, %v3150_v38 }
 0x27b   : > { %v1158_v13 = vmul.f32 0.70710677, %v908_v32  ;;  %v1094_v2 = vmul.f32 0.5, %v908_v32 }
 0x27c   : > { %v1159_v55 = vmul.f32 0.70710677, %v910_v37  ;;  %v913_v28 = vpop.f32.mrb[4].mxu0  ;;  %v1095_v6 = vmul.f32 0.5, %v910_v37 }
 0x27d   : > { %2124 = verf.f32 %v1158_v13  ;;  %v914_v54 = vadd.f32 %v913_v28, %v3148_v48  ;;  %v915_v29 = vpop.f32.mrb[5].mxu0 }
 0x27e   : > { %2126 = verf.f32 %v1159_v55  ;;  %v916_v15 = vadd.f32 %v915_v29, %v3150_v38 }
 0x27f   : > { %v1160_v11 = vmul.f32 0.70710677, %v914_v54  ;;  %v1096_v9 = vmul.f32 0.5, %v914_v54 }
 0x280   : > { %v1161_v58 = vmul.f32 0.70710677, %v916_v15  ;;  %v919_v30 = vpop.f32.mrb[6].mxu0  ;;  %v1097_v47 = vmul.f32 0.5, %v916_v15 }
 0x281   : > { %2128 = verf.f32 %v1160_v11  ;;  %v3159_v52 = vadd.f32 %v919_v30, %v3148_v48  ;;  %v921_v62 = vpop.f32.mrb[7].mxu0 }
 0x282   : > { %2130 = verf.f32 %v1161_v58  ;;  %v922_v3 = vadd.f32 %v921_v62, %v3150_v38 }
 0x283   : > { %v2121_v60 = vpop.eup %2120  ;;  %v1162_v18 = vmul.f32 0.70710677, %v3159_v52  ;;  %v1098_v37 = vmul.f32 0.5, %v3159_v52 }
 0x284   : > { %v2123_v61 = vpop.eup %2122  ;;  %v1284_v16 = vadd.f32 1.0, %v2121_v60  ;;  %v1163_v23 = vmul.f32 0.70710677, %v922_v3  ;;  %v925_v63 = vpop.f32.mrb[8].mxu0  ;;  %v1099_v35 = vmul.f32 0.5, %v922_v3 }
 0x285   : > { %v1285_v17 = vadd.f32 1.0, %v2123_v61  ;;  %2132 = verf.f32 %v1162_v18  ;;  %v3164_v46 = vadd.f32 %v925_v63, %v3148_v48  ;;  %v927_v8 = vpop.f32.mrb[9].mxu0 }
 0x286   : > { %2134 = verf.f32 %v1163_v23  ;;  %v928_v42 = vadd.f32 %v927_v8, %v3150_v38  ;;  %v1348_v7 = vmul.f32 %v1284_v16, %v1092_v34 }
 0x287   : > { %v2125_v10 = vpop.eup %2124  ;;  %v1164_v0 = vmul.f32 0.70710677, %v3164_v46  ;;  %v1349_v31 = vmul.f32 %v1285_v17, %v1093_v1  ;;  %v1100_v60 = vmul.f32 0.5, %v3164_v46 }
 0x288   : > { %v2127_v36 = vpop.eup %2126  ;;  %v1286_v19 = vadd.f32 1.0, %v2125_v10  ;;  %v1165_v39 = vmul.f32 0.70710677, %v928_v42  ;;  %v931_v40 = vpop.f32.mrb[10].mxu0  ;;  %v1101_v3 = vmul.f32 0.5, %v928_v42 }
 0x289   : > { %v1287_v33 = vadd.f32 1.0, %v2127_v36  ;;  %2136 = verf.f32 %v1164_v0  ;;  %v3169_v56 = vadd.f32 %v931_v40, %v3148_v48  ;;  %v933_v20 = vpop.f32.mrb[11].mxu0  ;;  %1515 = vmatprep.mubr.f32.mxu0 %v1349_v31 }
 0x28a   : > { %2138 = verf.f32 %v1165_v39  ;;  %v934_v59 = vadd.f32 %v933_v20, %v3150_v38  ;;  %1516 = vmatmul.mubr.f32.vlgmr.msra.gmra.mrb[64].mxu0 %v1348_v7  ;;  %v1350_v50 = vmul.f32 %v1286_v19, %v1094_v2 }
 0x28b   : > { %v2129_v49 = vpop.eup %2128  ;;  %v1166_v43 = vmul.f32 0.70710677, %v3169_v56  ;;  %v1351_v22 = vmul.f32 %v1287_v33, %v1095_v6  ;;  %v1102_v31 = vmul.f32 0.5, %v3169_v56 }
 0x28c   : > { %v2131_v44 = vpop.eup %2130  ;;  %v1288_v45 = vadd.f32 1.0, %v2129_v49  ;;  %v1167_v21 = vmul.f32 0.70710677, %v934_v59  ;;  %v937_v24 = vpop.f32.mrb[12].mxu0  ;;  %v1103_v42 = vmul.f32 0.5, %v934_v59 }
 0x28d   : > { %v1289_v51 = vadd.f32 1.0, %v2131_v44  ;;  %2140 = verf.f32 %v1166_v43  ;;  %1520 = vmatprep.mubr.f32.mxu0 %v1351_v22  ;;  %v3174_v4 = vadd.f32 %v937_v24, %v3148_v48  ;;  %v939_v57 = vpop.f32.mrb[13].mxu0 }
 0x28e   : > { %2142 = verf.f32 %v1167_v21  ;;  %1521 = vmatmul.mubr.f32.gmra.mrb[66].mxu0 %v1350_v50  ;;  %v940_v41 = vadd.f32 %v939_v57, %v3150_v38  ;;  %v1352_v26 = vmul.f32 %v1288_v45, %v1096_v9 }
 0x28f   : > { %v2133_v27 = vpop.eup %2132  ;;  %v1353_v25 = vmul.f32 %v1289_v51, %v1097_v47  ;;  %v1168_v5 = vmul.f32 0.70710677, %v3174_v4  ;;  %v1104_v45 = vmul.f32 0.5, %v3174_v4 }
 0x290   : > { %v2135_v14 = vpop.eup %2134  ;;  %v1290_v12 = vadd.f32 1.0, %v2133_v27  ;;  %v1169_v53 = vmul.f32 0.70710677, %v940_v41  ;;  %v943_v13 = vpop.f32.mrb[14].mxu0  ;;  %v1105_v56 = vmul.f32 0.5, %v940_v41 }
 0x291   : > { %v1291_v32 = vadd.f32 1.0, %v2135_v14  ;;  %1525 = vmatprep.mubr.f32.mxu0 %v1353_v25  ;;  %2144 = verf.f32 %v1168_v5  ;;  %v3180_v28 = vadd.f32 %v943_v13, %v3148_v48  ;;  %v945_v54 = vpop.f32.mrb[15].mxu0 }
 0x292   : > { %1526 = vmatmul.mubr.f32.gmra.mrb[68].mxu0 %v1352_v26  ;;  %2146 = verf.f32 %v1169_v53  ;;  %v946_v58 = vadd.f32 %v945_v54, %v3150_v38  ;;  %v1354_v30 = vmul.f32 %v1290_v12, %v1098_v37 }
 0x293   : > { %v2137_v55 = vpop.eup %2136  ;;  %v1355_v29 = vmul.f32 %v1291_v32, %v1099_v35  ;;  %v1170_v62 = vmul.f32 0.70710677, %v3180_v28  ;;  %v1106_v35 = vmul.f32 0.5, %v3180_v28 }
 0x294   : > { %v2139_v15 = vpop.eup %2138  ;;  %v1292_v11 = vadd.f32 1.0, %v2137_v55  ;;  %v1171_v18 = vmul.f32 0.70710677, %v946_v58  ;;  %v949_v61 = vpop.f32.mrb[16].mxu0  ;;  %v1107_v4 = vmul.f32 0.5, %v946_v58 }
 0x295   : > { %1530 = vmatprep.mubr.f32.mxu0 %v1355_v29  ;;  %v1293_v52 = vadd.f32 1.0, %v2139_v15  ;;  %2148 = verf.f32 %v1170_v62  ;;  %v3186_v23 = vadd.f32 %v949_v61, %v3148_v48  ;;  %v951_v63 = vpop.f32.mrb[17].mxu0 }
 0x296   : > { %1531 = vmatmul.mubr.f32.gmra.mrb[70].mxu0 %v1354_v30  ;;  %2150 = verf.f32 %v1171_v18  ;;  %v952_v34 = vadd.f32 %v951_v63, %v3150_v38  ;;  %v1356_v10 = vmul.f32 %v1292_v11, %v1100_v60 }
 0x297   : > { %v2141_v16 = vpop.eup %2140  ;;  %v1357_v1 = vmul.f32 %v1293_v52, %v1101_v3  ;;  %v1172_v46 = vmul.f32 0.70710677, %v3186_v23  ;;  %v1108_v3 = vmul.f32 0.5, %v3186_v23 }
 0x298   : > { %v2143_v17 = vpop.eup %2142  ;;  %v1294_v8 = vadd.f32 1.0, %v2141_v16  ;;  %v1173_v36 = vmul.f32 0.70710677, %v952_v34  ;;  %v955_v7 = vpop.f32.mrb[18].mxu0  ;;  %v1109_v58 = vmul.f32 0.5, %v952_v34 }
 0x299   : > { %v1295_v0 = vadd.f32 1.0, %v2143_v17  ;;  %1535 = vmatprep.mubr.f32.mxu1 %v1357_v1  ;;  %2152 = verf.f32 %v1172_v46  ;;  %v3192_v19 = vadd.f32 %v955_v7, %v3148_v48  ;;  %v957_v39 = vpop.f32.mrb[19].mxu0 }
 0x29a   : > { %1536 = vmatmul.mubr.f32.vlgmr.msra.gmra.mrb[0].mxu1 %v1356_v10  ;;  %2154 = verf.f32 %v1173_v36  ;;  %v958_v33 = vadd.f32 %v957_v39, %v3150_v38  ;;  %v1358_v20 = vmul.f32 %v1294_v8, %v1102_v31 }
 0x29b   : > { %v1359_v40 = vmul.f32 %v1295_v0, %v1103_v42  ;;  %v2145_v6 = vpop.eup %2144  ;;  %v1174_v49 = vmul.f32 0.70710677, %v3192_v19  ;;  %v1110_v0 = vmul.f32 0.5, %v3192_v19 }
 0x29c   : > { %v2147_v2 = vpop.eup %2146  ;;  %v1296_v59 = vadd.f32 1.0, %v2145_v6  ;;  %v1175_v22 = vmul.f32 0.70710677, %v958_v33  ;;  %v961_v44 = vpop.f32.mrb[20].mxu0  ;;  %v1111_v34 = vmul.f32 0.5, %v958_v33 }
 0x29d   : > { %1540 = vmatprep.mubr.f32.mxu1 %v1359_v40  ;;  %v1297_v43 = vadd.f32 1.0, %v2147_v2  ;;  %2156 = verf.f32 %v1174_v49  ;;  %v3198_v21 = vadd.f32 %v961_v44, %v3148_v48  ;;  %v963_v50 = vpop.f32.mrb[21].mxu0 }
 0x29e   : > { %1541 = vmatmul.mubr.f32.gmra.mrb[2].mxu1 %v1358_v20  ;;  %2158 = verf.f32 %v1175_v22  ;;  %v3201_v47 = vadd.f32 %v963_v50, %v3150_v38  ;;  %v1360_v57 = vmul.f32 %v1296_v59, %v1104_v45 }
 0x29f   : > { %v1361_v51 = vmul.f32 %v1297_v43, %v1105_v56  ;;  %v2149_v24 = vpop.eup %2148  ;;  %v1176_v9 = vmul.f32 0.70710677, %v3198_v21  ;;  %v1112_v56 = vmul.f32 0.5, %v3198_v21 }
 0x2a0   : > { %v2151_v27 = vpop.eup %2150  ;;  %v1298_v41 = vadd.f32 1.0, %v2149_v24  ;;  %v1177_v25 = vmul.f32 0.70710677, %v3201_v47  ;;  %v967_v14 = vpop.f32.mrb[22].mxu0  ;;  %v1113_v2 = vmul.f32 0.5, %v3201_v47 }
 0x2a1   : > { %1545 = vmatprep.mubr.f32.mxu1 %v1361_v51  ;;  %v1299_v12 = vadd.f32 1.0, %v2151_v27  ;;  %2160 = verf.f32 %v1176_v9  ;;  %v3206_v5 = vadd.f32 %v967_v14, %v3148_v48  ;;  %v969_v26 = vpop.f32.mrb[23].mxu0 }
 0x2a2   : > { %1546 = vmatmul.mubr.f32.gmra.mrb[4].mxu1 %v1360_v57  ;;  %2162 = verf.f32 %v1177_v25  ;;  %v3210_v32 = vadd.f32 %v969_v26, %v3150_v38  ;;  %v1362_v11 = vmul.f32 %v1298_v41, %v1106_v35 }
 0x2a3   : > { %v2153_v53 = vpop.eup %2152  ;;  %v1178_v37 = vmul.f32 0.70710677, %v3206_v5  ;;  %v1363_v13 = vmul.f32 %v1299_v12, %v1107_v4  ;;  %v1114_v25 = vmul.f32 0.5, %v3206_v5 }
 0x2a4   : > { %v2155_v55 = vpop.eup %2154  ;;  %v1300_v54 = vadd.f32 1.0, %v2153_v53  ;;  %v1179_v29 = vmul.f32 0.70710677, %v3210_v32  ;;  %v973_v15 = vpop.f32.mrb[24].mxu0  ;;  %v1115_v57 = vmul.f32 0.5, %v3210_v32 }
 0x2a5   : > { %v1301_v30 = vadd.f32 1.0, %v2155_v55  ;;  %2164 = verf.f32 %v1178_v37  ;;  %v3215_v62 = vadd.f32 %v973_v15, %v3148_v48  ;;  %v975_v28 = vpop.f32.mrb[25].mxu0  ;;  %1550 = vmatprep.mubr.f32.mxu1 %v1363_v13 }
 0x2a6   : > { %2166 = verf.f32 %v1179_v29  ;;  %v3219_v52 = vadd.f32 %v975_v28, %v3150_v38  ;;  %1551 = vmatmul.mubr.f32.gmra.mrb[6].mxu1 %v1362_v11  ;;  %v1364_v8 = vmul.f32 %v1300_v54, %v1108_v3 }
 0x2a7   : > { %v2157_v60 = vpop.eup %2156  ;;  %v1180_v18 = vmul.f32 0.70710677, %v3215_v62  ;;  %v1365_v61 = vmul.f32 %v1301_v30, %v1109_v58  ;;  %v1116_v15 = vmul.f32 0.5, %v3215_v62 }
 0x2a8   : > { %v2159_v16 = vpop.eup %2158  ;;  %v1302_v63 = vadd.f32 1.0, %v2157_v60  ;;  %v1181_v1 = vmul.f32 0.70710677, %v3219_v52  ;;  %v979_v17 = vpop.f32.mrb[26].mxu0  ;;  %v1117_v55 = vmul.f32 0.5, %v3219_v52 }
 0x2a9   : > { %v1303_v10 = vadd.f32 1.0, %v2159_v16  ;;  %2168 = verf.f32 %v1180_v18  ;;  %v3224_v23 = vadd.f32 %v979_v17, %v3148_v48  ;;  %v981_v42 = vpop.f32.mrb[27].mxu0  ;;  %1555 = vmatprep.mubr.f32.mxu1 %v1365_v61 }
 0x2aa   : > { %2170 = verf.f32 %v1181_v1  ;;  %v3228_v46 = vadd.f32 %v981_v42, %v3150_v38  ;;  %1556 = vmatmul.mubr.f32.gmra.mrb[8].mxu1 %v1364_v8  ;;  %v1366_v20 = vmul.f32 %v1302_v63, %v1110_v0 }
 0x2ab   : > { %v2161_v31 = vpop.eup %2160  ;;  %v1182_v36 = vmul.f32 0.70710677, %v3224_v23  ;;  %v1367_v7 = vmul.f32 %v1303_v10, %v1111_v34  ;;  %v1118_v17 = vmul.f32 0.5, %v3224_v23 }
 0x2ac   : > { %v2163_v39 = vpop.eup %2162  ;;  %v1304_v40 = vadd.f32 1.0, %v2161_v31  ;;  %v1183_v6 = vmul.f32 0.70710677, %v3228_v46  ;;  %v985_v33 = vpop.f32.mrb[28].mxu0  ;;  %v1119_v16 = vmul.f32 0.5, %v3228_v46 }
 0x2ad   : > { %v1305_v59 = vadd.f32 1.0, %v2163_v39  ;;  %2172 = verf.f32 %v1182_v36  ;;  %v3234_v19 = vadd.f32 %v985_v33, %v3148_v48  ;;  %v987_v49 = vpop.f32.mrb[29].mxu0  ;;  %1560 = vmatprep.mubr.f32.mxu1 %v1367_v7 }
 0x2ae   : > { %2174 = verf.f32 %v1183_v6  ;;  %v3238_v43 = vadd.f32 %v987_v49, %v3150_v38  ;;  %1561 = vmatmul.mubr.f32.gmra.mrb[10].mxu1 %v1366_v20  ;;  %v1368_v9 = vmul.f32 %v1304_v40, %v1112_v56 }
 0x2af   : > { %v2165_v22 = vpop.eup %2164  ;;  %v1184_v44 = vmul.f32 0.70710677, %v3234_v19  ;;  %v1369_v45 = vmul.f32 %v1305_v59, %v1113_v2  ;;  %v1120_v33 = vmul.f32 0.5, %v3234_v19 }
 0x2b0   : > { %v2167_v50 = vpop.eup %2166  ;;  %v1306_v47 = vadd.f32 1.0, %v2165_v22  ;;  %v1185_v51 = vmul.f32 0.70710677, %v3238_v43  ;;  %v991_v24 = vpop.f32.mrb[30].mxu0  ;;  %v1121_v39 = vmul.f32 0.5, %v3238_v43 }
 0x2b1   : > { %v1307_v27 = vadd.f32 1.0, %v2167_v50  ;;  %2176 = verf.f32 %v1184_v44  ;;  %v3244_v21 = vadd.f32 %v991_v24, %v3148_v48  ;;  %v993_v41 = vpop.f32.mrb[31].mxu0  ;;  %1565 = vmatprep.mubr.f32.mxu1 %v1369_v45 }
 0x2b2   : > { %2178 = verf.f32 %v1185_v51  ;;  %v3248_v14 = vadd.f32 %v993_v41, %v3150_v38  ;;  %1566 = vmatmul.mubr.f32.gmra.mrb[12].mxu1 %v1368_v9  ;;  %v1370_v13 = vmul.f32 %v1306_v47, %v1114_v25 }
 0x2b3   : > { %v2169_v4 = vpop.eup %2168  ;;  %v1186_v12 = vmul.f32 0.70710677, %v3244_v21  ;;  %v1371_v26 = vmul.f32 %v1307_v27, %v1115_v57  ;;  %v1122_v24 = vmul.f32 0.5, %v3244_v21 }
 0x2b4   : > { %v2171_v35 = vpop.eup %2170  ;;  %v1308_v32 = vadd.f32 1.0, %v2169_v4  ;;  %v1187_v53 = vmul.f32 0.70710677, %v3248_v14  ;;  %v997_v37 = vpop.f32.mrb[32].mxu0  ;;  %v1123_v50 = vmul.f32 0.5, %v3248_v14 }
 0x2b5   : > { %v1309_v54 = vadd.f32 1.0, %v2171_v35  ;;  %2180 = verf.f32 %v1186_v12  ;;  %v3254_v5 = vadd.f32 %v997_v37, %v3148_v48  ;;  %v999_v29 = vpop.f32.mrb[33].mxu0  ;;  %1570 = vmatprep.mubr.f32.mxu1 %v1371_v26 }
 0x2b6   : > { %2182 = verf.f32 %v1187_v53  ;;  %v3258_v11 = vadd.f32 %v999_v29, %v3150_v38  ;;  %1571 = vmatmul.mubr.f32.gmra.mrb[14].mxu1 %v1370_v13  ;;  %v1372_v61 = vmul.f32 %v1308_v32, %v1116_v15 }
 0x2b7   : > { %v2173_v58 = vpop.eup %2172  ;;  %v1188_v30 = vmul.f32 0.70710677, %v3254_v5  ;;  %v1373_v28 = vmul.f32 %v1309_v54, %v1117_v55  ;;  %v1124_v37 = vmul.f32 0.5, %v3254_v5 }
 0x2b8   : > { %v2175_v3 = vpop.eup %2174  ;;  %v1310_v52 = vadd.f32 1.0, %v2173_v58  ;;  %v1189_v60 = vmul.f32 0.70710677, %v3258_v11  ;;  %v1003_v18 = vpop.f32.mrb[34].mxu0  ;;  %v1125_v35 = vmul.f32 0.5, %v3258_v11 }
 0x2b9   : > { %v1311_v63 = vadd.f32 1.0, %v2175_v3  ;;  %2184 = verf.f32 %v1188_v30  ;;  %v3264_v62 = vadd.f32 %v1003_v18, %v3148_v48  ;;  %v1005_v1 = vpop.f32.mrb[35].mxu0  ;;  %1575 = vmatprep.mubr.f32.mxu1 %v1373_v28 }
 0x2ba   : > { %2186 = verf.f32 %v1189_v60  ;;  %v3268_v8 = vadd.f32 %v1005_v1, %v3150_v38  ;;  %1576 = vmatmul.mubr.f32.gmra.mrb[16].mxu1 %v1372_v61  ;;  %v1374_v7 = vmul.f32 %v1310_v52, %v1118_v17 }
 0x2bb   : > { %v2177_v34 = vpop.eup %2176  ;;  %v1190_v10 = vmul.f32 0.70710677, %v3264_v62  ;;  %v1375_v42 = vmul.f32 %v1311_v63, %v1119_v16  ;;  %v1126_v18 = vmul.f32 0.5, %v3264_v62 }
 0x2bc   : > { %v2179_v0 = vpop.eup %2178  ;;  %v1312_v46 = vadd.f32 1.0, %v2177_v34  ;;  %v1191_v31 = vmul.f32 0.70710677, %v3268_v8  ;;  %v1009_v36 = vpop.f32.mrb[36].mxu0  ;;  %v1127_v3 = vmul.f32 0.5, %v3268_v8 }
 0x2bd   : > { %v1313_v40 = vadd.f32 1.0, %v2179_v0  ;;  %2188 = verf.f32 %v1190_v10  ;;  %v3274_v23 = vadd.f32 %v1009_v36, %v3148_v48  ;;  %v1011_v6 = vpop.f32.mrb[37].mxu0  ;;  %1580 = vmatprep.mubr.f32.mxu1 %v1375_v42 }
 0x2be   : > { %2190 = verf.f32 %v1191_v31  ;;  %v3278_v20 = vadd.f32 %v1011_v6, %v3150_v38  ;;  %1581 = vmatmul.mubr.f32.gmra.mrb[18].mxu1 %v1374_v7  ;;  %v1376_v45 = vmul.f32 %v1312_v46, %v1120_v33 }
 0x2bf   : > { %v2181_v2 = vpop.eup %2180  ;;  %v1192_v59 = vmul.f32 0.70710677, %v3274_v23  ;;  %v1377_v49 = vmul.f32 %v1313_v40, %v1121_v39  ;;  %v1128_v36 = vmul.f32 0.5, %v3274_v23 }
 0x2c0   : > { %v2183_v56 = vpop.eup %2182  ;;  %v1314_v43 = vadd.f32 1.0, %v2181_v2  ;;  %v1193_v22 = vmul.f32 0.70710677, %v3278_v20  ;;  %v1015_v44 = vpop.f32.mrb[38].mxu0  ;;  %v1129_v0 = vmul.f32 0.5, %v3278_v20 }
 0x2c1   : > { %v1315_v47 = vadd.f32 1.0, %v2183_v56  ;;  %2192 = verf.f32 %v1192_v59  ;;  %v3284_v19 = vadd.f32 %v1015_v44, %v3148_v48  ;;  %v1017_v51 = vpop.f32.mrb[39].mxu0  ;;  %1585 = vmatprep.mubr.f32.mxu1 %v1377_v49 }
 0x2c2   : > { %2194 = verf.f32 %v1193_v22  ;;  %v3288_v9 = vadd.f32 %v1017_v51, %v3150_v38  ;;  %1586 = vmatmul.mubr.f32.gmra.mrb[20].mxu1 %v1376_v45  ;;  %v1378_v26 = vmul.f32 %v1314_v43, %v1122_v24 }
 0x2c3   : > { %v2185_v57 = vpop.eup %2184  ;;  %v1194_v27 = vmul.f32 0.70710677, %v3284_v19  ;;  %v1379_v41 = vmul.f32 %v1315_v47, %v1123_v50  ;;  %v1130_v44 = vmul.f32 0.5, %v3284_v19 }
 0x2c4   : > { %v2187_v25 = vpop.eup %2186  ;;  %v1316_v14 = vadd.f32 1.0, %v2185_v57  ;;  %v1195_v4 = vmul.f32 0.70710677, %v3288_v9  ;;  %v1021_v12 = vpop.f32.mrb[40].mxu0  ;;  %v1131_v56 = vmul.f32 0.5, %v3288_v9 }
 0x2c5   : > { %v1317_v32 = vadd.f32 1.0, %v2187_v25  ;;  %2196 = verf.f32 %v1194_v27  ;;  %v3294_v21 = vadd.f32 %v1021_v12, %v3148_v48  ;;  %v1023_v53 = vpop.f32.mrb[41].mxu0  ;;  %1590 = vmatprep.mubr.f32.mxu1 %v1379_v41 }
 0x2c6   : > { %2198 = verf.f32 %v1195_v4  ;;  %v3298_v13 = vadd.f32 %v1023_v53, %v3150_v38  ;;  %1591 = vmatmul.mubr.f32.gmra.mrb[22].mxu1 %v1378_v26  ;;  %v1380_v28 = vmul.f32 %v1316_v14, %v1124_v37 }
 0x2c7   : > { %v2189_v55 = vpop.eup %2188  ;;  %v1196_v54 = vmul.f32 0.70710677, %v3294_v21  ;;  %v1381_v29 = vmul.f32 %v1317_v32, %v1125_v35  ;;  %v1132_v12 = vmul.f32 0.5, %v3294_v21 }
 0x2c8   : > { %v2191_v15 = vpop.eup %2190  ;;  %v1318_v11 = vadd.f32 1.0, %v2189_v55  ;;  %v1197_v58 = vmul.f32 0.70710677, %v3298_v13  ;;  %v1027_v30 = vpop.f32.mrb[42].mxu0  ;;  %v1133_v25 = vmul.f32 0.5, %v3298_v13 }
 0x2c9   : > { %v1319_v52 = vadd.f32 1.0, %v2191_v15  ;;  %2200 = verf.f32 %v1196_v54  ;;  %v3304_v5 = vadd.f32 %v1027_v30, %v3148_v48  ;;  %v1029_v60 = vpop.f32.mrb[43].mxu0  ;;  %1595 = vmatprep.mubr.f32.mxu1 %v1381_v29 }
 0x2ca   : > { %2202 = verf.f32 %v1197_v58  ;;  %v3308_v61 = vadd.f32 %v1029_v60, %v3150_v38  ;;  %1596 = vmatmul.mubr.f32.gmra.mrb[24].mxu1 %v1380_v28  ;;  %v1382_v42 = vmul.f32 %v1318_v11, %v1126_v18 }
 0x2cb   : > { %v2193_v16 = vpop.eup %2192  ;;  %v1198_v63 = vmul.f32 0.70710677, %v3304_v5  ;;  %v1383_v1 = vmul.f32 %v1319_v52, %v1127_v3  ;;  %v1134_v30 = vmul.f32 0.5, %v3304_v5 }
 0x2cc   : > { %v2195_v17 = vpop.eup %2194  ;;  %v1320_v8 = vadd.f32 1.0, %v2193_v16  ;;  %v1199_v34 = vmul.f32 0.70710677, %v3308_v61  ;;  %v1033_v10 = vpop.f32.mrb[44].mxu0  ;;  %v1135_v15 = vmul.f32 0.5, %v3308_v61 }
 0x2cd   : > { %v1321_v46 = vadd.f32 1.0, %v2195_v17  ;;  %2204 = verf.f32 %v1198_v63  ;;  %v3314_v62 = vadd.f32 %v1033_v10, %v3148_v48  ;;  %v1035_v31 = vpop.f32.mrb[45].mxu0  ;;  %1600 = vmatprep.mubr.f32.mxu1 %v1383_v1 }
 0x2ce   : > { %2206 = verf.f32 %v1199_v34  ;;  %v3318_v7 = vadd.f32 %v1035_v31, %v3150_v38  ;;  %1601 = vmatmul.mubr.f32.gmra.mrb[26].mxu1 %v1382_v42  ;;  %v1384_v49 = vmul.f32 %v1320_v8, %v1128_v36 }
 0x2cf   : > { %v2197_v39 = vpop.eup %2196  ;;  %v1200_v40 = vmul.f32 0.70710677, %v3314_v62  ;;  %v1385_v6 = vmul.f32 %v1321_v46, %v1129_v0  ;;  %v1136_v10 = vmul.f32 0.5, %v3314_v62 }
 0x2d0   : > { %v2199_v33 = vpop.eup %2198  ;;  %v1322_v20 = vadd.f32 1.0, %v2197_v39  ;;  %v1201_v2 = vmul.f32 0.70710677, %v3318_v7  ;;  %v1039_v59 = vpop.f32.mrb[46].mxu0  ;;  %v1137_v17 = vmul.f32 0.5, %v3318_v7 }
 0x2d1   : > { %v1323_v43 = vadd.f32 1.0, %v2199_v33  ;;  %2208 = verf.f32 %v1200_v40  ;;  %v3324_v23 = vadd.f32 %v1039_v59, %v3148_v48  ;;  %v1041_v22 = vpop.f32.mrb[47].mxu0  ;;  %1605 = vmatprep.mubr.f32.mxu1 %v1385_v6 }
 0x2d2   : > { %2210 = verf.f32 %v1201_v2  ;;  %v3328_v45 = vadd.f32 %v1041_v22, %v3150_v38  ;;  %1606 = vmatmul.mubr.f32.gmra.mrb[28].mxu1 %v1384_v49  ;;  %v1386_v41 = vmul.f32 %v1322_v20, %v1130_v44 }
 0x2d3   : > { %v2201_v50 = vpop.eup %2200  ;;  %v1202_v47 = vmul.f32 0.70710677, %v3324_v23  ;;  %v1387_v51 = vmul.f32 %v1323_v43, %v1131_v56  ;;  %v1138_v59 = vmul.f32 0.5, %v3324_v23 }
 0x2d4   : > { %v2203_v24 = vpop.eup %2202  ;;  %v1324_v9 = vadd.f32 1.0, %v2201_v50  ;;  %v1203_v57 = vmul.f32 0.70710677, %v3328_v45  ;;  %v1045_v27 = vpop.f32.mrb[48].mxu0  ;;  %v1139_v33 = vmul.f32 0.5, %v3328_v45 }
 0x2d5   : > { %v1325_v14 = vadd.f32 1.0, %v2203_v24  ;;  %2212 = verf.f32 %v1202_v47  ;;  %v3334_v19 = vadd.f32 %v1045_v27, %v3148_v48  ;;  %v1047_v4 = vpop.f32.mrb[49].mxu0  ;;  %1610 = vmatprep.mubr.f32.mxu1 %v1387_v51 }
 0x2d6   : > { %2214 = verf.f32 %v1203_v57  ;;  %v3338_v26 = vadd.f32 %v1047_v4, %v3150_v38  ;;  %1611 = vmatmul.mubr.f32.gmra.mrb[30].mxu1 %v1386_v41  ;;  %v1388_v29 = vmul.f32 %v1324_v9, %v1132_v12 }
 0x2d7   : > { %v2205_v35 = vpop.eup %2204  ;;  %v1204_v32 = vmul.f32 0.70710677, %v3334_v19  ;;  %v1389_v53 = vmul.f32 %v1325_v14, %v1133_v25  ;;  %v1140_v27 = vmul.f32 0.5, %v3334_v19 }
 0x2d8   : > { %v2207_v37 = vpop.eup %2206  ;;  %v1326_v13 = vadd.f32 1.0, %v2205_v35  ;;  %v1205_v55 = vmul.f32 0.70710677, %v3338_v26  ;;  %v1051_v54 = vpop.f32.mrb[50].mxu0  ;;  %v1141_v24 = vmul.f32 0.5, %v3338_v26 }
 0x2d9   : > { %v1327_v11 = vadd.f32 1.0, %v2207_v37  ;;  %2216 = verf.f32 %v1204_v32  ;;  %v3344_v21 = vadd.f32 %v1051_v54, %v3148_v48  ;;  %v1053_v58 = vpop.f32.mrb[51].mxu0  ;;  %1615 = vmatprep.mubr.f32.mxu1 %v1389_v53 }
 0x2da   : > { %2218 = verf.f32 %v1205_v55  ;;  %v3348_v28 = vadd.f32 %v1053_v58, %v3150_v38  ;;  %1616 = vmatmul.mubr.f32.gmra.mrb[32].mxu1 %v1388_v29  ;;  %v1390_v1 = vmul.f32 %v1326_v13, %v1134_v30 }
 0x2db   : > { %v2209_v3 = vpop.eup %2208  ;;  %v1206_v52 = vmul.f32 0.70710677, %v3344_v21  ;;  %v1391_v60 = vmul.f32 %v1327_v11, %v1135_v15  ;;  %v1142_v54 = vmul.f32 0.5, %v3344_v21 }
 0x2dc   : > { %v2211_v18 = vpop.eup %2210  ;;  %v1328_v61 = vadd.f32 1.0, %v2209_v3  ;;  %v1207_v16 = vmul.f32 0.70710677, %v3348_v28  ;;  %v1057_v63 = vpop.f32.mrb[52].mxu0  ;;  %v1143_v37 = vmul.f32 0.5, %v3348_v28 }
 0x2dd   : > { %v1329_v8 = vadd.f32 1.0, %v2211_v18  ;;  %2220 = verf.f32 %v1206_v52  ;;  %v3354_v5 = vadd.f32 %v1057_v63, %v3148_v48  ;;  %v1059_v34 = vpop.f32.mrb[53].mxu0  ;;  %1620 = vmatprep.mubr.f32.mxu1 %v1391_v60 }
 0x2de   : > { %2222 = verf.f32 %v1207_v16  ;;  %v3358_v42 = vadd.f32 %v1059_v34, %v3150_v38  ;;  %1621 = vmatmul.mubr.f32.gmra.mrb[34].mxu1 %v1390_v1  ;;  %v1392_v6 = vmul.f32 %v1328_v61, %v1136_v10 }
 0x2df   : > { %v2213_v0 = vpop.eup %2212  ;;  %v1208_v46 = vmul.f32 0.70710677, %v3354_v5  ;;  %v1393_v31 = vmul.f32 %v1329_v8, %v1137_v17  ;;  %v1144_v63 = vmul.f32 0.5, %v3354_v5 }
 0x2e0   : > { %v2215_v36 = vpop.eup %2214  ;;  %v1330_v7 = vadd.f32 1.0, %v2213_v0  ;;  %v1209_v39 = vmul.f32 0.70710677, %v3358_v42  ;;  %v1063_v40 = vpop.f32.mrb[54].mxu0  ;;  %v1145_v18 = vmul.f32 0.5, %v3358_v42 }
 0x2e1   : > { %v1331_v20 = vadd.f32 1.0, %v2215_v36  ;;  %2224 = verf.f32 %v1208_v46  ;;  %v3364_v62 = vadd.f32 %v1063_v40, %v3148_v48  ;;  %v1065_v2 = vpop.f32.mrb[55].mxu0  ;;  %1625 = vmatprep.mubr.f32.mxu1 %v1393_v31 }
 0x2e2   : > { %2226 = verf.f32 %v1209_v39  ;;  %v3368_v49 = vadd.f32 %v1065_v2, %v3150_v38  ;;  %1626 = vmatmul.mubr.f32.gmra.mrb[36].mxu1 %v1392_v6  ;;  %v1394_v51 = vmul.f32 %v1330_v7, %v1138_v59 }
 0x2e3   : > { %v2217_v56 = vpop.eup %2216  ;;  %v1210_v43 = vmul.f32 0.70710677, %v3364_v62  ;;  %v1395_v22 = vmul.f32 %v1331_v20, %v1139_v33  ;;  %v1146_v5 = vmul.f32 0.5, %v3364_v62 }
 0x2e4   : > { %v2219_v44 = vpop.eup %2218  ;;  %v1332_v45 = vadd.f32 1.0, %v2217_v56  ;;  %v1211_v50 = vmul.f32 0.70710677, %v3368_v49  ;;  %v1069_v47 = vpop.f32.mrb[56].mxu0  ;;  %v1147_v36 = vmul.f32 0.5, %v3368_v49 }
 0x2e5   : > { %v1333_v9 = vadd.f32 1.0, %v2219_v44  ;;  %2228 = verf.f32 %v1210_v43  ;;  %v3374_v23 = vadd.f32 %v1069_v47, %v3148_v48  ;;  %v1071_v57 = vpop.f32.mrb[57].mxu0  ;;  %1630 = vmatprep.mubr.f32.mxu1 %v1395_v22 }
 0x2e6   : > { %2230 = verf.f32 %v1211_v50  ;;  %v3378_v41 = vadd.f32 %v1071_v57, %v3150_v38  ;;  %1631 = vmatmul.mubr.f32.gmra.mrb[38].mxu1 %v1394_v51  ;;  %v1396_v53 = vmul.f32 %v1332_v45, %v1140_v27 }
 0x2e7   : > { %v2221_v25 = vpop.eup %2220  ;;  %v1212_v14 = vmul.f32 0.70710677, %v3374_v23  ;;  %v1397_v4 = vmul.f32 %v1333_v9, %v1141_v24 }
 0x2e8   : > { %v2223_v12 = vpop.eup %2222  ;;  %v1334_v26 = vadd.f32 1.0, %v2221_v25  ;;  %v1213_v35 = vmul.f32 0.70710677, %v3378_v41  ;;  %v1075_v32 = vpop.f32.mrb[58].mxu0  ;;  %v1149_v49 = vmul.f32 0.5, %v3378_v41 }
 0x2e9   : > { %v1335_v13 = vadd.f32 1.0, %v2223_v12  ;;  %2232 = verf.f32 %v1212_v14  ;;  %v3384_v19 = vadd.f32 %v1075_v32, %v3148_v48  ;;  %v1077_v55 = vpop.f32.mrb[59].mxu0  ;;  %1635 = vmatprep.mubr.f32.mxu1 %v1397_v4 }
 0x2ea   : > { %2234 = verf.f32 %v1213_v35  ;;  %v1078_v29 = vadd.f32 %v1077_v55, %v3150_v38  ;;  %1636 = vmatmul.mubr.f32.gmra.mrb[40].mxu1 %v1396_v53  ;;  %v1398_v60 = vmul.f32 %v1334_v26, %v1142_v54 }
 0x2eb   : > { %v2225_v15 = vpop.eup %2224  ;;  %v1214_v11 = vmul.f32 0.70710677, %v3384_v19  ;;  %v1399_v58 = vmul.f32 %v1335_v13, %v1143_v37  ;;  %v1150_v9 = vmul.f32 0.5, %v3384_v19 }
 0x2ec   : > { %v2227_v30 = vpop.eup %2226  ;;  %v1336_v3 = vadd.f32 1.0, %v2225_v15  ;;  %v1215_v28 = vmul.f32 0.70710677, %v1078_v29  ;;  %v1081_v52 = vpop.f32.mrb[60].mxu0  ;;  %v1151_v51 = vmul.f32 0.5, %v1078_v29 }
 0x2ed   : > { %v1337_v61 = vadd.f32 1.0, %v2227_v30  ;;  %2236 = verf.f32 %v1214_v11  ;;  %v1082_v16 = vadd.f32 %v1081_v52, %v3148_v48  ;;  %v1083_v21 = vpop.f32.mrb[61].mxu0  ;;  %1640 = vmatprep.mubr.f32.mxu1 %v1399_v58  ;;  %v3403_v15 = vld [vmem:[%s3562_s6] ss:$0 sm:$0xff] }
 0x2ee   : > { %2238 = verf.f32 %v1215_v28  ;;  %v1084_v1 = vadd.f32 %v1083_v21, %v3150_v38  ;;  %1641 = vmatmul.mubr.f32.gmra.mrb[42].mxu1 %v1398_v60  ;;  %v1400_v42 = vmul.f32 %v1336_v3, %v1144_v63  ;;  %v2248_v3 = vld [vmem:[%s2674_s15] sm:$0xff] }
 0x2ef   : > { %v2229_v17 = vpop.eup %2228  ;;  %v1216_v8 = vmul.f32 0.70710677, %v1082_v16  ;;  %v1401_v34 = vmul.f32 %v1337_v61, %v1145_v18  ;;  %v1152_v12 = vmul.f32 0.5, %v1082_v16  ;;  %v2249_v61 = vld [vmem:[%s2674_s15 + $0x8] sm:$0xff] }
 0x2f0   : > { %v2231_v10 = vpop.eup %2230  ;;  %v1338_v0 = vadd.f32 1.0, %v2229_v17  ;;  %v1217_v46 = vmul.f32 0.70710677, %v1084_v1  ;;  %v1087_v31 = vpop.f32.mrb[62].mxu0  ;;  %v1153_v4 = vmul.f32 0.5, %v1084_v1  ;;  %v2250_v17 = vld [vmem:[%s2674_s15 + $0x10] sm:$0xff] }
 0x2f1   : > { %v1339_v7 = vadd.f32 1.0, %v2231_v10  ;;  %2240 = verf.f32 %v1216_v8  ;;  %v1088_v39 = vadd.f32 %v1087_v31, %v3148_v48  ;;  %v1089_v40 = vpop.f32.mrb[63].mxu0  ;;  %1645 = vmatprep.mubr.f32.mxu1 %v1401_v34  ;;  %v1148_v48 = vmul.f32 0.5, %v3374_v23 }
 0x2f2   : > { %2242 = verf.f32 %v1217_v46  ;;  %v1090_v6 = vadd.f32 %v1089_v40, %v3150_v38  ;;  %1646 = vmatmul.mubr.f32.gmra.mrb[44].mxu1 %v1400_v42  ;;  %v1402_v22 = vmul.f32 %v1338_v0, %v1146_v5  ;;  %v2251_v46 = vld [vmem:[%s2674_s15 + $0x18] sm:$0xff] }
 0x2f3   : > { %v2233_v33 = vpop.eup %2232  ;;  %v1218_v20 = vmul.f32 0.70710677, %v1088_v39  ;;  %v1403_v2 = vmul.f32 %v1339_v7, %v1147_v36  ;;  %v1154_v55 = vmul.f32 0.5, %v1088_v39  ;;  %v2252_v39 = vld [vmem:[%s2674_s15 + $0x20] sm:$0xff] }
 0x2f4   : > { %v2235_v59 = vpop.eup %2234  ;;  %v1340_v56 = vadd.f32 1.0, %v2233_v33  ;;  %v1219_v43 = vmul.f32 0.70710677, %v1090_v6  ;;  %v1155_v13 = vmul.f32 0.5, %v1090_v6 }
 0x2f5   : > { %v1341_v44 = vadd.f32 1.0, %v2235_v59  ;;  %2244 = verf.f32 %v1218_v20  ;;  %1650 = vmatprep.mubr.f32.mxu1 %v1403_v2  ;;  %v2253_v20 = vld [vmem:[%s2674_s15 + $0x28] sm:$0xff] }
 0x2f6   : > { %2246 = verf.f32 %v1219_v43  ;;  %1651 = vmatmul.mubr.f32.gmra.mrb[46].mxu1 %v1402_v22  ;;  %v1404_v47 = vmul.f32 %v1340_v56, %v1148_v48  ;;  %v2254_v22 = vld [vmem:[%s2674_s15 + $0x30] sm:$0xff] }
 0x2f7   : > { %v2237_v62 = vpop.eup %2236  ;;  %v1405_v45 = vmul.f32 %v1341_v44, %v1149_v49 }
 0x2f8   : > { %v2239_v38 = vpop.eup %2238  ;;  %v1342_v50 = vadd.f32 1.0, %v2237_v62 }
 0x2f9   : > { %v1343_v24 = vadd.f32 1.0, %v2239_v38  ;;  %1655 = vmatprep.mubr.f32.mxu1 %v1405_v45  ;;  %v2255_v45 = vld [vmem:[%s2674_s15 + $0x38] sm:$0xff] }
 0x2fa   : > { %1656 = vmatmul.mubr.f32.gmra.mrb[48].mxu1 %v1404_v47  ;;  %v1406_v14 = vmul.f32 %v1342_v50, %v1150_v9 }
 0x2fb   : > { %v2241_v57 = vpop.eup %2240  ;;  %v1407_v27 = vmul.f32 %v1343_v24, %v1151_v51  ;;  %v2256_v24 = vld [vmem:[%s2674_s15 + $0x40] sm:$0xff] }
 0x2fc   : > { %v2243_v41 = vpop.eup %2242  ;;  %v1344_v25 = vadd.f32 1.0, %v2241_v57 }
 0x2fd   : > { %v1345_v23 = vadd.f32 1.0, %v2243_v41  ;;  %1660 = vmatprep.mubr.f32.mxu1 %v1407_v27 }
 0x2fe   : > { %1661 = vmatmul.mubr.f32.gmra.mrb[50].mxu1 %v1406_v14  ;;  %v1408_v37 = vmul.f32 %v1344_v25, %v1152_v12  ;;  %v2257_v25 = vld [vmem:[%s2674_s15 + $0x48] sm:$0xff] }
 0x2ff   : > { %v2245_v26 = vpop.eup %2244  ;;  %v1409_v35 = vmul.f32 %v1345_v23, %v1153_v4 }
 0x300   : > { %v2247_v32 = vpop.eup %2246  ;;  %v1346_v53 = vadd.f32 1.0, %v2245_v26  ;;  %v2258_v26 = vld [vmem:[%s2674_s15 + $0x50] sm:$0xff] }
 0x301   : > { %v1347_v19 = vadd.f32 1.0, %v2247_v32  ;;  %1665 = vmatprep.mubr.f32.mxu1 %v1409_v35 }
 0x302   : > { %1666 = vmatmul.mubr.f32.gmra.mrb[52].mxu1 %v1408_v37  ;;  %v1410_v29 = vmul.f32 %v1346_v53, %v1154_v55 }
 0x303   : > { %v1411_v54 = vmul.f32 %v1347_v19, %v1155_v13  ;;  %v2259_v13 = vld [vmem:[%s2674_s15 + $0x58] sm:$0xff] }
 0x305   : > { %1670 = vmatprep.mubr.f32.mxu1 %v1411_v54 }
 0x306   : > { %1671 = vmatmul.mubr.f32.gmra.mrb[54].mxu1 %v1410_v29 }
 0x35d   : > { %v1517_v11 = vpop.f32.mrb[64].mxu0 }
 0x35e   : > { %v1518_v58 = vadd.f32 %v3403_v15, %v1517_v11  ;;  %v1519_v30 = vpop.f32.mrb[65].mxu0  ;;  %v2260_v11 = vld [vmem:[%s2674_s15 + $0x60] sm:$0xff] }
 0x360   : > { %v1676_v28 = vadd.f32 %v2248_v3, %v1518_v58 }
 0x361   : > { %v1522_v52 = vpop.f32.mrb[66].mxu0 }
 0x362   : > { %1708 = vst [vmem:[%s3409_s21] sm:$0xff] %v1676_v28  ;;  %v1523_v60 = vadd.f32 %v3403_v15, %v1522_v52  ;;  %v1524_v18 = vpop.f32.mrb[67].mxu0  ;;  %v2261_v52 = vld [vmem:[%s2674_s15 + $0x68] sm:$0xff] }
 0x364   : > { %v1677_v16 = vadd.f32 %v2249_v61, %v1523_v60 }
 0x365   : > { %v1527_v21 = vpop.f32.mrb[68].mxu0 }
 0x366   : > { %1709 = vst [vmem:[%s3409_s21 + $0x8] sm:$0xff] %v1677_v16  ;;  %v1528_v63 = vadd.f32 %v3403_v15, %v1527_v21  ;;  %v1529_v1 = vpop.f32.mrb[69].mxu0  ;;  %v2262_v21 = vld [vmem:[%s2674_s15 + $0x70] sm:$0xff] }
 0x368   : > { %v1678_v8 = vadd.f32 %v2250_v17, %v1528_v63 }
 0x369   : > { %v1532_v34 = vpop.f32.mrb[70].mxu0 }
 0x36a   : > { %1710 = vst [vmem:[%s3409_s21 + $0x10] sm:$0xff] %v1678_v8  ;;  %v1533_v10 = vadd.f32 %v3403_v15, %v1532_v34  ;;  %v1534_v0 = vpop.f32.mrb[71].mxu0  ;;  %v2263_v34 = vld [vmem:[%s2674_s15 + $0x78] sm:$0xff] }
 0x36c   : > { %v1679_v31 = vadd.f32 %v2251_v46, %v1533_v10 }
 0x36d   : > { %v1537_v42 = vpop.f32.mrb[0].mxu1 }
 0x36e   : > { %1711 = vst [vmem:[%s3409_s21 + $0x18] sm:$0xff] %v1679_v31  ;;  %v1538_v36 = vadd.f32 %v3403_v15, %v1537_v42  ;;  %v1539_v7 = vpop.f32.mrb[1].mxu1  ;;  %v2264_v42 = vld [vmem:[%s2674_s15 + $0x80] sm:$0xff] }
 0x370   : > { %v1680_v40 = vadd.f32 %v2252_v39, %v1538_v36 }
 0x371   : > { %v1542_v5 = vpop.f32.mrb[2].mxu1 }
 0x372   : > { %1712 = vst [vmem:[%s3409_s21 + $0x20] sm:$0xff] %v1680_v40  ;;  %v1543_v6 = vadd.f32 %v3403_v15, %v1542_v5  ;;  %v1544_v33 = vpop.f32.mrb[3].mxu1  ;;  %v2265_v5 = vld [vmem:[%s2674_s15 + $0x88] sm:$0xff] }
 0x374   : > { %v1681_v2 = vadd.f32 %v2253_v20, %v1543_v6 }
 0x375   : > { %v1547_v59 = vpop.f32.mrb[4].mxu1 }
 0x376   : > { %1713 = vst [vmem:[%s3409_s21 + $0x28] sm:$0xff] %v1681_v2  ;;  %v1548_v56 = vadd.f32 %v3403_v15, %v1547_v59  ;;  %v1549_v43 = vpop.f32.mrb[5].mxu1  ;;  %v2266_v59 = vld [vmem:[%s2674_s15 + $0x90] sm:$0xff] }
 0x378   : > { %v1682_v49 = vadd.f32 %v2254_v22, %v1548_v56 }
 0x379   : > { %v1552_v44 = vpop.f32.mrb[6].mxu1 }
 0x37a   : > { %1714 = vst [vmem:[%s3409_s21 + $0x30] sm:$0xff] %v1682_v49  ;;  %v1553_v48 = vadd.f32 %v3403_v15, %v1552_v44  ;;  %v1554_v62 = vpop.f32.mrb[7].mxu1  ;;  %v2267_v44 = vld [vmem:[%s2674_s15 + $0x98] sm:$0xff] }
 0x37c   : > { %v1683_v38 = vadd.f32 %v2255_v45, %v1553_v48 }
 0x37d   : > { %v1557_v50 = vpop.f32.mrb[8].mxu1 }
 0x37e   : > { %1715 = vst [vmem:[%s3409_s21 + $0x38] sm:$0xff] %v1683_v38  ;;  %v1558_v47 = vadd.f32 %v3403_v15, %v1557_v50  ;;  %v1559_v51 = vpop.f32.mrb[9].mxu1  ;;  %v2268_v50 = vld [vmem:[%s2674_s15 + $0xa0] sm:$0xff] }
 0x380   : > { %v1684_v9 = vadd.f32 %v2256_v24, %v1558_v47 }
 0x381   : > { %v1562_v57 = vpop.f32.mrb[10].mxu1 }
 0x382   : > { %1716 = vst [vmem:[%s3409_s21 + $0x40] sm:$0xff] %v1684_v9  ;;  %v1563_v27 = vadd.f32 %v3403_v15, %v1562_v57  ;;  %v1564_v41 = vpop.f32.mrb[11].mxu1  ;;  %v2269_v57 = vld [vmem:[%s2674_s15 + $0xa8] sm:$0xff] }
 0x384   : > { %v1685_v14 = vadd.f32 %v2257_v25, %v1563_v27 }
 0x385   : > { %v1567_v4 = vpop.f32.mrb[12].mxu1 }
 0x386   : > { %1717 = vst [vmem:[%s3409_s21 + $0x48] sm:$0xff] %v1685_v14  ;;  %v1568_v23 = vadd.f32 %v3403_v15, %v1567_v4  ;;  %v1569_v12 = vpop.f32.mrb[13].mxu1  ;;  %v2270_v4 = vld [vmem:[%s2674_s15 + $0xb0] sm:$0xff] }
 0x388   : > { %v1686_v35 = vadd.f32 %v2258_v26, %v1568_v23 }
 0x389   : > { %v1572_v32 = vpop.f32.mrb[14].mxu1 }
 0x38a   : > { %1718 = vst [vmem:[%s3409_s21 + $0x50] sm:$0xff] %v1686_v35  ;;  %v1573_v53 = vadd.f32 %v3403_v15, %v1572_v32  ;;  %v1574_v37 = vpop.f32.mrb[15].mxu1  ;;  %v2271_v32 = vld [vmem:[%s2674_s15 + $0xb8] sm:$0xff] }
 0x38c   : > { %v1687_v19 = vadd.f32 %v2259_v13, %v1573_v53 }
 0x38d   : > { %v1577_v55 = vpop.f32.mrb[16].mxu1 }
 0x38e   : > { %1719 = vst [vmem:[%s3409_s21 + $0x58] sm:$0xff] %v1687_v19  ;;  %v1578_v54 = vadd.f32 %v3403_v15, %v1577_v55  ;;  %v1579_v29 = vpop.f32.mrb[17].mxu1  ;;  %v2272_v55 = vld [vmem:[%s2674_s15 + $0xc0] sm:$0xff] }
 0x390   : > { %v1688_v58 = vadd.f32 %v2260_v11, %v1578_v54 }
 0x391   : > { %v1582_v30 = vpop.f32.mrb[18].mxu1 }
 0x392   : > { %1720 = vst [vmem:[%s3409_s21 + $0x60] sm:$0xff] %v1688_v58  ;;  %v1583_v3 = vadd.f32 %v3403_v15, %v1582_v30  ;;  %v1584_v28 = vpop.f32.mrb[19].mxu1  ;;  %v2273_v30 = vld [vmem:[%s2674_s15 + $0xc8] sm:$0xff] }
 0x394   : > { %v1689_v60 = vadd.f32 %v2261_v52, %v1583_v3 }
 0x395   : > { %v1587_v18 = vpop.f32.mrb[20].mxu1 }
 0x396   : > { %1721 = vst [vmem:[%s3409_s21 + $0x68] sm:$0xff] %v1689_v60  ;;  %v1588_v61 = vadd.f32 %v3403_v15, %v1587_v18  ;;  %v1589_v16 = vpop.f32.mrb[21].mxu1  ;;  %v2274_v18 = vld [vmem:[%s2674_s15 + $0xd0] sm:$0xff] }
 0x398   : > { %v1690_v63 = vadd.f32 %v2262_v21, %v1588_v61 }
 0x399   : > { %v1592_v1 = vpop.f32.mrb[22].mxu1 }
 0x39a   : > { %1722 = vst [vmem:[%s3409_s21 + $0x70] sm:$0xff] %v1690_v63  ;;  %v1593_v17 = vadd.f32 %v3403_v15, %v1592_v1  ;;  %v1594_v8 = vpop.f32.mrb[23].mxu1  ;;  %v2275_v1 = vld [vmem:[%s2674_s15 + $0xd8] sm:$0xff] }
 0x39c   : > { %v1691_v10 = vadd.f32 %v2263_v34, %v1593_v17 }
 0x39d   : > { %v1597_v0 = vpop.f32.mrb[24].mxu1 }
 0x39e   : > { %1723 = vst [vmem:[%s3409_s21 + $0x78] sm:$0xff] %v1691_v10  ;;  %v1598_v46 = vadd.f32 %v3403_v15, %v1597_v0  ;;  %v1599_v31 = vpop.f32.mrb[25].mxu1  ;;  %v2276_v0 = vld [vmem:[%s2674_s15 + $0xe0] sm:$0xff] }
 0x3a0   : > { %v1692_v36 = vadd.f32 %v2264_v42, %v1598_v46 }
 0x3a1   : > { %v1602_v7 = vpop.f32.mrb[26].mxu1 }
 0x3a2   : > { %1724 = vst [vmem:[%s3409_s21 + $0x80] sm:$0xff] %v1692_v36  ;;  %v1603_v39 = vadd.f32 %v3403_v15, %v1602_v7  ;;  %v1604_v40 = vpop.f32.mrb[27].mxu1  ;;  %v2277_v7 = vld [vmem:[%s2674_s15 + $0xe8] sm:$0xff] }
 0x3a4   : > { %v1693_v6 = vadd.f32 %v2265_v5, %v1603_v39 }
 0x3a5   : > { %v1607_v33 = vpop.f32.mrb[28].mxu1 }
 0x3a6   : > { %1725 = vst [vmem:[%s3409_s21 + $0x88] sm:$0xff] %v1693_v6  ;;  %v1608_v20 = vadd.f32 %v3403_v15, %v1607_v33  ;;  %v1609_v2 = vpop.f32.mrb[29].mxu1  ;;  %v2278_v33 = vld [vmem:[%s2674_s15 + $0xf0] sm:$0xff] }
 0x3a8   : > { %v1694_v56 = vadd.f32 %v2266_v59, %v1608_v20 }
 0x3a9   : > { %v1612_v43 = vpop.f32.mrb[30].mxu1 }
 0x3aa   : > { %1726 = vst [vmem:[%s3409_s21 + $0x90] sm:$0xff] %v1694_v56  ;;  %v1613_v22 = vadd.f32 %v3403_v15, %v1612_v43  ;;  %v1614_v49 = vpop.f32.mrb[31].mxu1  ;;  %v2279_v43 = vld [vmem:[%s2674_s15 + $0xf8] sm:$0xff] }
 0x3ac   : > { %v1695_v48 = vadd.f32 %v2267_v44, %v1613_v22 }
 0x3ad   : > { %v1617_v62 = vpop.f32.mrb[32].mxu1 }
 0x3ae   : > { %1727 = vst [vmem:[%s3409_s21 + $0x98] sm:$0xff] %v1695_v48  ;;  %v1618_v45 = vadd.f32 %v3403_v15, %v1617_v62  ;;  %v1619_v38 = vpop.f32.mrb[33].mxu1 }
 0x3b0   : > { %v1696_v47 = vadd.f32 %v2268_v50, %v1618_v45 }
 0x3b1   : > { %v1622_v51 = vpop.f32.mrb[34].mxu1 }
 0x3b2   : > { %1728 = vst [vmem:[%s3409_s21 + $0xa0] sm:$0xff] %v1696_v47  ;;  %v1623_v24 = vadd.f32 %v3403_v15, %v1622_v51  ;;  %v1624_v9 = vpop.f32.mrb[35].mxu1 }
 0x3b4   : > { %v1697_v27 = vadd.f32 %v2269_v57, %v1623_v24 }
 0x3b5   : > { %v1627_v41 = vpop.f32.mrb[36].mxu1 }
 0x3b6   : > { %1729 = vst [vmem:[%s3409_s21 + $0xa8] sm:$0xff] %v1697_v27  ;;  %v1628_v25 = vadd.f32 %v3403_v15, %v1627_v41  ;;  %v1629_v14 = vpop.f32.mrb[37].mxu1 }
 0x3b8   : > { %v1698_v23 = vadd.f32 %v2270_v4, %v1628_v25 }
 0x3b9   : > { %v1632_v12 = vpop.f32.mrb[38].mxu1 }
 0x3ba   : > { %1730 = vst [vmem:[%s3409_s21 + $0xb0] sm:$0xff] %v1698_v23  ;;  %v1633_v26 = vadd.f32 %v3403_v15, %v1632_v12  ;;  %v1634_v35 = vpop.f32.mrb[39].mxu1 }
 0x3bc   : > { %v1699_v53 = vadd.f32 %v2271_v32, %v1633_v26 }
 0x3bd   : > { %v1637_v37 = vpop.f32.mrb[40].mxu1 }
 0x3be   : > { %1731 = vst [vmem:[%s3409_s21 + $0xb8] sm:$0xff] %v1699_v53  ;;  %v1638_v13 = vadd.f32 %v3403_v15, %v1637_v37  ;;  %v1639_v19 = vpop.f32.mrb[41].mxu1 }
 0x3c0   : > { %v1700_v54 = vadd.f32 %v2272_v55, %v1638_v13 }
 0x3c1   : > { %v1642_v29 = vpop.f32.mrb[42].mxu1 }
 0x3c2   : > { %1732 = vst [vmem:[%s3409_s21 + $0xc0] sm:$0xff] %v1700_v54  ;;  %v1643_v11 = vadd.f32 %v3403_v15, %v1642_v29  ;;  %v1644_v58 = vpop.f32.mrb[43].mxu1 }
 0x3c4   : > { %v1701_v3 = vadd.f32 %v2273_v30, %v1643_v11 }
 0x3c5   : > { %v1647_v28 = vpop.f32.mrb[44].mxu1 }
 0x3c6   : > { %1733 = vst [vmem:[%s3409_s21 + $0xc8] sm:$0xff] %v1701_v3  ;;  %v1648_v52 = vadd.f32 %v3403_v15, %v1647_v28  ;;  %v1649_v60 = vpop.f32.mrb[45].mxu1 }
 0x3c8   : > { %v1702_v61 = vadd.f32 %v2274_v18, %v1648_v52 }
 0x3c9   : > { %v1652_v16 = vpop.f32.mrb[46].mxu1 }
 0x3ca   : > { %1734 = vst [vmem:[%s3409_s21 + $0xd0] sm:$0xff] %v1702_v61  ;;  %v1653_v21 = vadd.f32 %v3403_v15, %v1652_v16  ;;  %v1654_v63 = vpop.f32.mrb[47].mxu1 }
 0x3cc   : > { %v1703_v17 = vadd.f32 %v2275_v1, %v1653_v21 }
 0x3cd   : > { %v1657_v8 = vpop.f32.mrb[48].mxu1 }
 0x3ce   : > { %1735 = vst [vmem:[%s3409_s21 + $0xd8] sm:$0xff] %v1703_v17  ;;  %v1658_v34 = vadd.f32 %v3403_v15, %v1657_v8  ;;  %v1659_v10 = vpop.f32.mrb[49].mxu1 }
 0x3d0   : > { %v1704_v46 = vadd.f32 %v2276_v0, %v1658_v34 }
 0x3d1   : > { %v1662_v31 = vpop.f32.mrb[50].mxu1 }
 0x3d2   : > { %1736 = vst [vmem:[%s3409_s21 + $0xe0] sm:$0xff] %v1704_v46  ;;  %v1663_v42 = vadd.f32 %v3403_v15, %v1662_v31  ;;  %v1664_v36 = vpop.f32.mrb[51].mxu1 }
 0x3d4   : > { %v1705_v39 = vadd.f32 %v2277_v7, %v1663_v42 }
 0x3d5   : > { %v1667_v40 = vpop.f32.mrb[52].mxu1 }
 0x3d6   : > { %1737 = vst [vmem:[%s3409_s21 + $0xe8] sm:$0xff] %v1705_v39  ;;  %v1668_v5 = vadd.f32 %v3403_v15, %v1667_v40  ;;  %v1669_v6 = vpop.f32.mrb[53].mxu1 }
 0x3d8   : > { %v1706_v20 = vadd.f32 %v2278_v33, %v1668_v5 }
 0x3d9   : > { %v1672_v2 = vpop.f32.mrb[54].mxu1 }
 0x3da   : > { %1738 = vst [vmem:[%s3409_s21 + $0xf0] sm:$0xff] %v1706_v20  ;;  %v1673_v59 = vadd.f32 %v3403_v15, %v1672_v2  ;;  %v1674_v56 = vpop.f32.mrb[55].mxu1 }
 0x3dc   : > { %v1707_v22 = vadd.f32 %v2279_v43, %v1673_v59 }
 0x3de   : > { %1739 = vst [vmem:[%s3409_s21 + $0xf8] sm:$0xff] %v1707_v22 }
 0x3df   : > { %2379 = shalt.err (!%p2376_p2)
}
 0x3e0   : > { %s2380_s15 = scalar_lea.hbm %s3508_s9, 4096  ;;  %s2384_s21 = scalar_lea.hbm %s3563_s7, 8192 }
 0x3e1   : > { %p2381_p13 = scmp.ne.s32.totalorder %s3508_s9, %s2380_s15  ;;  %p2385_p4 = scmp.lt.u32.totalorder %s3508_s9, %s3563_s7 }
 0x3e2   : > { %p2386_p7 = scmp.lt.u32.totalorder %s2384_s21, %s2380_s15  ;;  %p2388_p11 = scmp.lt.u32.totalorder %s2380_s15, %s3508_s9 }
 0x3e3   : > { %p2382_p6 = pnand %p2381_p13, %p3579_p0 }
 0x3e4   : > { %p2387_p8 = por %p2386_p7, %p2385_p4 }
 0x3e5   : > { %p2383_p10 = pneg %p2382_p6 }
 0x3e6   : > { %p2389_p1 = por %p2388_p11, %p2387_p8 }
 0x3e8   : > { %p2390_p3 = pnand %p2389_p1, %p2383_p10 }
 0x3ea   : > { %2393 = shalt.err (!%p2390_p3)
}
 0x3eb   : > { %s2448_s30 = smov 128   ;;  %s2449_s23 = smov 8  }
 0x3ec   : > { %1991 = dma.vmem_to_hbm [thread:$0]  (%p3579_p0), %s3510_s29, 4096, %s3508_s9, %s1741_s28, %s2448_s30, %s2448_s30, %s2449_s23  }
 0x3ed PF: > { %s1769_s11 = sand.u32 1, %s2424_s24   ;;  %p3580_p5 = scmp.ne.s32.totalorder %s3569_s8, 0 }
 0x3ee   : > { %p3581_p9 = scmp.ge.s32.totalorder %s2436_s27, 2  ;;  %s1770_s10 = scalar_lea.sflag [#allocation4], %s1769_s11 }
 0x3f0   : > { %p2005_p12 = pnand %p3581_p9, %p3580_p5 }
 0x3f2   : > { %2419 = dma.done.wait (!%p2005_p12), %s1770_s10, 4096  }
 0x3f3   : > { %2421 = vsyncadd (!%p2005_p12), %s1770_s10, 4294963200  ;;  %p21_p2 = scmp.ge.s32.totalorder %s2603_s13, 4   ;;  %s3582_s24 = smov %s2428_s25 }
 0x3f4   : > { %s3583_s25 = smov %s2432_s26  ;;  %s3584_s26 = smov %s2612_s17 }
 0x3f5   : > { %s3585_s27 = smov %s2603_s13  ;;  %23 = sbr.rel (!%p21_p2) target bundleno = 6 (0x6), region = 101 }
 0x3fc   :  { %1775 = vsyncpa [#allocation3], 1 }
 0x3fd   :  { %1777 = vsyncpa [#allocation3 + $0x1], 1 }
 0x3fe   :  { %1778 = vsyncpa [#allocation6], 1 }
 0x3ff   :  { %1779 = vsyncpa [#allocation4], 1 }
 0x400   :  { %1781 = vsyncpa [#allocation4 + $0x1], 1 }

// kernel: tpu_custom_call.1
= control target key start
LH: loop header
LB: loop body
LE: loop exit
PB: predicated region body
PF: predicated region fallthrough
CT: control target
= control target key end

     0   :  { %12 = vsyncpa [#allocation3], 0  ;;  %s3556_s0 = inlined_call_operand.hbm [shape: f32[512,128], index: 0, kind: input, shape index: {}]   ;;  %s3557_s1 = inlined_call_operand.vmem [shape: f32[1,128], index: 1, kind: input, shape index: {}]   ;;  %s3558_s2 = inlined_call_operand.vmem [shape: f32[1,128], index: 2, kind: input, shape index: {}]   ;;  %s3559_s3 = inlined_call_operand.hbm [shape: f32[128,256], index: 3, kind: input, shape index: {}]   ;;  %s3560_s4 = inlined_call_operand.vmem [shape: f32[1,256], index: 4, kind: input, shape index: {}]   ;;  %s3561_s5 = inlined_call_operand.hbm [shape: f32[256,128], index: 5, kind: input, shape index: {}]   ;;  %s3562_s6 = inlined_call_operand.vmem [shape: f32[1,128], index: 6, kind: input, shape index: {}]   ;;  %s3563_s7 = inlined_call_operand.hbm [shape: f32[512,128], index: 7, kind: output, shape index: {}]  }
   0x1   :  { %14 = vsyncpa [#allocation3 + $0x1], 0 }
   0x2   :  { %15 = vsyncpa [#allocation6], 0 }
   0x3   :  { %16 = vsyncpa [#allocation4], 0 }
   0x4   :  { %18 = vsyncpa [#allocation4 + $0x1], 0  ;;  %s2490_s24 = smov 0   ;;  %s2492_s25 = smov 0  }
   0x5   :  { %s2494_s26 = smov 0   ;;  %s2496_s27 = smov 0  }
   0x6 LB: > { %s2511_s28 = sadd.s32 4294967295, %s2436_s27   ;;  %s1846_s29 = sadd.s32 4294967294, %s2436_s27   ;;  %s2436_s27 = sphi %s2496_s27, %s3585_s27   ;;  %s2432_s26 = sphi %s2494_s26, %s3584_s26   ;;  %s2428_s25 = sphi %s2492_s25, %s3583_s25   ;;  %s2424_s24 = sphi %s2490_s24, %s3582_s24  }
   0x7   : > { %p44_p0 = scmp.ne.s32.totalorder %s2428_s25, %s2424_s24  ;;  %p3564_p1 = scmp.eq.s32.totalorder %s2511_s28, 0 }
   0x8   : > { %p200_p3 = scmp.eq.s32.totalorder %s1846_s29, 1  ;;  %p1847_p5 = scmp.ge.s32.totalorder %s2436_s27, 1 }
   0x9   : > { %p2520_p4 = por %p3564_p1, %p44_p0  ;;  %p207_p7 = scmp.lt.s32.totalorder %s2436_s27, 3 }
   0xa   : > { %p2525_p6 = por %p200_p3, %p44_p0  ;;  %s2438_s10 = smov [#allocation5]  }
   0xb   : > { %s3568_s30 = scalar_select %p2520_p4, 1, 0 }
   0xc   : > { %s3569_s8 = scalar_select %p2525_p6, 1, 0 }
   0xd   : > { %p2530_p8 = pnand %p1847_p5, %p207_p7  ;;  %s225_s11 = sshll.u32 %s2438_s10, 4  ;;  %s2534_s11 = int_to_ptr.vmem [resolvable:$true] %s225_s11 }
   0xe   : > { %s2439_s13 = smov [#allocation7]   ;;  %s2280_s17 = scalar_lea.hbm %s3559_s3, 4096 }
   0xf   : > { %p1993_p9 = pneg %p2530_p8  ;;  %s241_s14 = sshll.u32 %s2439_s13, 4  ;;  %s2545_s14 = int_to_ptr.vmem [resolvable:$true] %s241_s14 }
  0x10   : > { %p2281_p12 = scmp.ne.s32.totalorder %s3559_s3, %s2280_s17  ;;  %p2287_p5 = scmp.lt.u32.totalorder %s2280_s17, %s3559_s3 }
  0x11   : > { %p2541_p11 = pnand %p1993_p9, %p3564_p1 }
  0x13   : > { %p2282_p13 = pneg %p2541_p11 }
  0x15   : > { %p2283_p0 = pnand %p2282_p13, %p2281_p12 }
  0x17   : > { %p2284_p3 = pneg %p2283_p0 }
  0x19   : > { %p2289_p7 = pnand %p2287_p5, %p2284_p3 }
  0x1b   : > { %2292 = shalt.err (!%p2289_p7)
}
  0x1c   : > { %s2293_s22 = scalar_lea.vmem %s2534_s11, 4096  ;;  %p2301_p2 = scmp.lt.s32.totalorder %s2534_s11, %s2534_s11 }
  0x1d   : > { %p2294_p9 = scmp.ne.s32.totalorder %s2534_s11, %s2293_s22  ;;  %p2302_p12 = scmp.lt.s32.totalorder %s2293_s22, %s2293_s22 }
  0x1f   : > { %p2296_p10 = pnand %p2294_p9, %p2282_p13  ;;  %p2303_p0 = por %p2302_p12, %p2301_p2 }
  0x21   : > { %p2297_p1 = pneg %p2296_p10 }
  0x23   : > { %p2304_p6 = pnand %p2303_p0, %p2297_p1 }
  0x25   : > { %2307 = shalt.err (!%p2304_p6)
}
  0x26   : > { %s2440_s23 = smov 256   ;;  %s2441_s29 = smov 16  }
  0x27   : > { %1996 = dma.hbm_to_vmem [thread:$0]  (!%p2541_p11), %s3559_s3, 4096, %s2534_s11, [#allocation6], %s2440_s23, %s2440_s23, %s2441_s29  }
  0x28   : > { %s2308_s17 = scalar_lea.hbm %s3561_s5, 4096 }
  0x29   : > { %p2309_p2 = scmp.ne.s32.totalorder %s3561_s5, %s2308_s17  ;;  %p2315_p10 = scmp.lt.u32.totalorder %s2308_s17, %s3561_s5 }
  0x2b   : > { %p2311_p1 = pnand %p2309_p2, %p2282_p13 }
  0x2d   : > { %p2312_p6 = pneg %p2311_p1 }
  0x2f   : > { %p2317_p3 = pnand %p2315_p10, %p2312_p6 }
  0x31   : > { %2320 = shalt.err (!%p2317_p3)
}
  0x32   : > { %s2321_s11 = scalar_lea.vmem %s2545_s14, 4096  ;;  %p2329_p12 = scmp.lt.s32.totalorder %s2545_s14, %s2545_s14 }
  0x33   : > { %p2322_p5 = scmp.ne.s32.totalorder %s2545_s14, %s2321_s11  ;;  %p2330_p0 = scmp.lt.s32.totalorder %s2321_s11, %s2321_s11 }
  0x35   : > { %p2324_p7 = pnand %p2322_p5, %p2282_p13  ;;  %p2331_p2 = por %p2330_p0, %p2329_p12 }
  0x37   : > { %p2325_p9 = pneg %p2324_p7 }
  0x39   : > { %p2332_p1 = pnand %p2331_p2, %p2325_p9 }
  0x3b   : > { %2335 = shalt.err (!%p2332_p1)
}
  0x3c   : > { %s3565_s22 = smov 128   ;;  %s2443_s23 = smov 8  }
  0x3d   : > { %1999 = dma.hbm_to_vmem [thread:$0]  (!%p2541_p11), %s3561_s5, 4096, %s2545_s14, [#allocation6], %s3565_s22, %s3565_s22, %s2443_s23  }
  0x3e   : > { %s2603_s13 = sadd.s32 1, %s2436_s27   ;;  %s31_s16 = sadd.s32 1, %s2432_s26 }
  0x3f   : > { %s28_s15 = ssub.s32 %s2436_s27, %s2603_s13  ;;  %p38_p6 = scmp.ne.s32.totalorder %s2432_s26, %s2428_s25 }
  0x40   : > { %p29_p13 = scmp.eq.s32.totalorder %s28_s15, 0  ;;  %p39_p10 = scmp.eq.s32.totalorder %s2436_s27, 0 }
  0x41   : > { %p3572_p5 = scmp.eq.s32.totalorder %s2511_s28, 1  ;;  %p2010_p9 = scmp.lt.s32.totalorder %s2436_s27, 2 }
  0x42   : > { %s2612_s17 = scalar_select %p29_p13, %s2432_s26, %s31_s16  }
  0x43   : > { %p40_p3 = por %p39_p10, %p38_p6  ;;  %p2616_p7 = por %p3572_p5, %p38_p6 }
  0x44   : > { %s258_s18 = sand.u32 1, %s2432_s26   ;;  %s1867_s14 = sshll.u32 %s2436_s27, 12 }
  0x45   : > { %s3573_s12 = scalar_select %p2616_p7, 1, 0 }
  0x46   : > { %s1851_s19 = sshll.u32 %s258_s18, 8  ;;  %s2626_s11 = scalar_lea.hbm %s3556_s0, %s1867_s14 }
  0x47   : > { %s262_s29 = scalar_lea.vmem [#allocation2], %s1851_s19  ;;  %p2630_p11 = pnand %p2010_p9, %p40_p3 }
  0x48   : > { %s269_s10 = sshll.u32 %s262_s29, 4  ;;  %s2634_s16 = scalar_lea.sflag [#allocation3], %s258_s18  ;;  %s2628_s10 = int_to_ptr.vmem [resolvable:$true] %s269_s10 }
  0x49   : > { %s2336_s22 = scalar_lea.hbm %s2626_s11, 4096  ;;  %p2338_p0 = pneg %p2630_p11 }
  0x4a   : > { %p2337_p12 = scmp.ne.s32.totalorder %s2626_s11, %s2336_s22  ;;  %s2341_s20 = scalar_lea.hbm %s3556_s0, 8192 }
  0x4b   : > { %p2342_p13 = scmp.lt.u32.totalorder %s2626_s11, %s3556_s0  ;;  %p2343_p6 = scmp.lt.u32.totalorder %s2341_s20, %s2336_s22 }
  0x4c   : > { %p2339_p2 = pnand %p2338_p0, %p2337_p12  ;;  %p2345_p3 = scmp.lt.u32.totalorder %s2336_s22, %s2626_s11 }
  0x4d   : > { %p2344_p10 = por %p2343_p6, %p2342_p13 }
  0x4e   : > { %p2340_p1 = pneg %p2339_p2 }
  0x4f   : > { %p2346_p5 = por %p2345_p3, %p2344_p10 }
  0x51   : > { %p2347_p9 = pnand %p2346_p5, %p2340_p1 }
  0x53   : > { %2350 = shalt.err (!%p2347_p9)
}
  0x54   : > { %s2351_s18 = scalar_lea.vmem %s2628_s10, 4096  ;;  %s2444_s19 = smov [#allocation2]  }
  0x55   : > { %p2352_p12 = scmp.ne.s32.totalorder %s2628_s10, %s2351_s18  ;;  %s2356_s14 = sshll.u32 %s2444_s19, 4  ;;  %s2357_s14 = int_to_ptr.vmem [resolvable:$false] %s2356_s14 }
  0x56   : > { %s2358_s21 = scalar_lea.vmem %s2357_s14, 8192  ;;  %p2359_p4 = scmp.lt.s32.totalorder %s2628_s10, %s2357_s14 }
  0x57   : > { %p2354_p2 = pnand %p2352_p12, %p2338_p0  ;;  %p2360_p13 = scmp.lt.s32.totalorder %s2358_s21, %s2351_s18 }
  0x59   : > { %p2355_p7 = pneg %p2354_p2  ;;  %p2361_p6 = por %p2360_p13, %p2359_p4 }
  0x5b   : > { %p2362_p10 = pnand %p2361_p6, %p2355_p7 }
  0x5d   : > { %2365 = shalt.err (!%p2362_p10)
}
  0x5e   : > { %s3575_s22 = smov 128   ;;  %281 = sbr.rel (%p2530_p8) target bundleno = 1005 (0x3ed), region = 48 }
  0x5f   : > { %2003 = dma.hbm_to_vmem [thread:$0]  (!%p2630_p11), %s2626_s11, 4096, %s2628_s10, %s2634_s16, %s3575_s22, %s3575_s22, %s2443_s23  }
  0x60   : > { %s2668_s20 = sand.u32 (!%p2530_p8), 1, %s2428_s25   ;;  %p3576_p4 = scmp.ne.s32.totalorder (!%p2530_p8), %s3568_s30, 0 }
  0x61   : > { %s1855_s29 = sshll.u32 (!%p2530_p8), %s2668_s20, 8  ;;  %s284_s18 = scalar_lea.sflag (!%p2530_p8), [#allocation3], %s2668_s20 }
  0x62   : > { %s2674_s15 = scalar_lea.vmem (!%p2530_p8), [#allocation2], %s1855_s29 }
  0x65   : > { %2411 = dma.done.wait (%p3576_p4), %s284_s18, 4096  }
  0x66   : > { %2413 = vsyncadd (%p3576_p4), %s284_s18, 4294963200  ;;  %p3577_p7 = scmp.eq.s32.totalorder %s2511_s28, 0 }
  0x68   : > { %2415 = dma.done.wait (%p3577_p7), [#allocation6], 8192   ;;  %p3578_p8 = pmov %p3577_p7 }
  0x69   : > { %v2685_v0 = vld [vmem:[%s2674_s15 + $0x10] sm:$0xff]  ;;  %v2688_v1 = vld [vmem:[%s2674_s15] sm:$0xff]  ;;  %v2693_v2 = vld [vmem:[%s2674_s15 + $0x18] sm:$0xff]  ;;  %s3409_s21 = scalar_lea.vmem [#allocation8], %s1855_s29  ;;  %s1868_s22 = sshll.u32 %s2511_s28, 12 }
  0x6a   : > { %2417 = vsyncadd (%p3578_p8), [#allocation6], 4294959104  ;;  %364 = vadd.xlane.f32.xlu1 %v2685_v0  ;;  %360 = vadd.xlane.f32.xlu0 %v2688_v1  ;;  %v2696_v3 = vld [vmem:[%s2674_s15 + $0x8] sm:$0xff]  ;;  %v2704_v5 = vld [vmem:[%s2674_s15 + $0x20] sm:$0xff]  ;;  %s1754_s29 = sshll.u32 %s3409_s21, 4  ;;  %s3508_s9 = scalar_lea.hbm %s3563_s7, %s1868_s22  ;;  %s3510_s29 = int_to_ptr.vmem [resolvable:$true] %s1754_s29 }
  0x6b   : > { %v2701_v4 = vld [vmem:[%s2674_s15 + $0x28] sm:$0xff]  ;;  %v2709_v6 = vld [vmem:[%s2674_s15 + $0x38] sm:$0xff]  ;;  %v2712_v7 = vld [vmem:[%s2674_s15 + $0x30] sm:$0xff]  ;;  %s1741_s28 = scalar_lea.sflag [#allocation4], %s2668_s20  ;;  %s2366_s23 = scalar_lea.vmem %s3510_s29, 4096 }
  0x6c   : > { %v2717_v8 = vld [vmem:[%s2674_s15 + $0x48] sm:$0xff]  ;;  %v2720_v9 = vld [vmem:[%s2674_s15 + $0x40] sm:$0xff]  ;;  %v2725_v10 = vld [vmem:[%s2674_s15 + $0x58] sm:$0xff]  ;;  %p2367_p11 = scmp.ne.s32.totalorder %s3510_s29, %s2366_s23  ;;  %p3579_p0 = scmp.ne.s32.totalorder %s3573_s12, 0 }
  0x6d   : > { %v2728_v11 = vld [vmem:[%s2674_s15 + $0x50] sm:$0xff]  ;;  %v2733_v12 = vld [vmem:[%s2674_s15 + $0x68] sm:$0xff]  ;;  %v2736_v13 = vld [vmem:[%s2674_s15 + $0x60] sm:$0xff]  ;;  %s2447_s11 = smov [#allocation8]  }
  0x6e   : > { %366 = vadd.xlane.f32.xlu1 %v2693_v2  ;;  %362 = vadd.xlane.f32.xlu0 %v2696_v3  ;;  %v2741_v14 = vld [vmem:[%s2674_s15 + $0x78] sm:$0xff]  ;;  %v2744_v15 = vld [vmem:[%s2674_s15 + $0x70] sm:$0xff]  ;;  %v2749_v16 = vld [vmem:[%s2674_s15 + $0x88] sm:$0xff]  ;;  %p2368_p1 = pnand %p2367_p11, %p3579_p0  ;;  %s2370_s10 = sshll.u32 %s2447_s11, 4  ;;  %s2371_s10 = int_to_ptr.vmem [resolvable:$false] %s2370_s10 }
  0x6f   : > { %v2752_v17 = vld [vmem:[%s2674_s15 + $0x80] sm:$0xff]  ;;  %v2757_v18 = vld [vmem:[%s2674_s15 + $0x98] sm:$0xff]  ;;  %v2760_v19 = vld [vmem:[%s2674_s15 + $0x90] sm:$0xff]  ;;  %s2372_s16 = scalar_lea.vmem %s2371_s10, 8192  ;;  %p2373_p5 = scmp.lt.s32.totalorder %s3510_s29, %s2371_s10 }
  0x70   : > { %v2765_v20 = vld [vmem:[%s2674_s15 + $0xa0] sm:$0xff]  ;;  %v2769_v21 = vld [vmem:[%s2674_s15 + $0xa8] sm:$0xff]  ;;  %v2773_v22 = vld [vmem:[%s2674_s15 + $0xb0] sm:$0xff]  ;;  %p2369_p3 = pneg %p2368_p1  ;;  %p2374_p9 = scmp.lt.s32.totalorder %s2372_s16, %s2366_s23 }
  0x71   : > { %v2777_v23 = vld [vmem:[%s2674_s15 + $0xb8] sm:$0xff]  ;;  %v2781_v24 = vld [vmem:[%s2674_s15 + $0xc0] sm:$0xff]  ;;  %v2785_v25 = vld [vmem:[%s2674_s15 + $0xc8] sm:$0xff] }
  0x72   : > { %370 = vadd.xlane.f32.xlu1 %v2701_v4  ;;  %368 = vadd.xlane.f32.xlu0 %v2704_v5  ;;  %v2789_v26 = vld [vmem:[%s2674_s15 + $0xd0] sm:$0xff]  ;;  %v2793_v27 = vld [vmem:[%s2674_s15 + $0xd8] sm:$0xff]  ;;  %v2797_v28 = vld [vmem:[%s2674_s15 + $0xe0] sm:$0xff]  ;;  %p2375_p12 = por %p2374_p9, %p2373_p5 }
  0x73   : > { %v2801_v29 = vld [vmem:[%s2674_s15 + $0xe8] sm:$0xff]  ;;  %v2805_v30 = vld [vmem:[%s2674_s15 + $0xf0] sm:$0xff]  ;;  %v2809_v31 = vld [vmem:[%s2674_s15 + $0xf8] sm:$0xff] }
  0x74   : > { %v792_v32 = vld [vmem:[#allocation5 + $0x8] sm:$0xff]  ;;  %v794_v33 = vld [vmem:[#allocation5 + $0x18] sm:$0xff]  ;;  %v791_v34 = vld [vmem:[#allocation5] sm:$0xff]  ;;  %p2376_p2 = pnand %p2375_p12, %p2369_p3 }
  0x75   : > { %v1869_v35 = vpack.c.bf16 %v794_v33, %v792_v32  ;;  %v793_v36 = vld [vmem:[#allocation5 + $0x10] sm:$0xff]  ;;  %v796_v37 = vld [vmem:[#allocation5 + $0x28] sm:$0xff]  ;;  %v798_v38 = vld [vmem:[#allocation5 + $0x38] sm:$0xff] }
  0x76   : > { %374 = vadd.xlane.f32.xlu1 %v2709_v6  ;;  %372 = vadd.xlane.f32.xlu0 %v2712_v7  ;;  %v1871_v39 = vpack.c.bf16 %v793_v36, %v791_v34  ;;  %v1873_v40 = vpack.c.bf16 %v798_v38, %v796_v37  ;;  %v795_v41 = vld [vmem:[#allocation5 + $0x20] sm:$0xff]  ;;  %v797_v42 = vld [vmem:[#allocation5 + $0x30] sm:$0xff]  ;;  %v800_v43 = vld [vmem:[#allocation5 + $0x48] sm:$0xff] }
  0x77   : > { %1870 = vmatprep.subr.bf16.mxu0 %v1869_v35  ;;  %v802_v44 = vld [vmem:[#allocation5 + $0x58] sm:$0xff]  ;;  %v1875_v45 = vpack.c.bf16 %v797_v42, %v795_v41  ;;  %v799_v47 = vld [vmem:[#allocation5 + $0x40] sm:$0xff]  ;;  %v801_v48 = vld [vmem:[#allocation5 + $0x50] sm:$0xff] }
  0x78   : > { %1872 = vmatpush1.bf16.msra.mxu0 %v1871_v39  ;;  %v1877_v46 = vpack.c.bf16 %v802_v44, %v800_v43  ;;  %v1879_v49 = vpack.c.bf16 %v801_v48, %v799_v47  ;;  %v804_v41 = vld [vmem:[#allocation5 + $0x68] sm:$0xff]  ;;  %v806_v42 = vld [vmem:[#allocation5 + $0x78] sm:$0xff] }
  0x79   : > { %1874 = vmatprep.subr.bf16.mxu0 %v1873_v40  ;;  %v1881_v44 = vpack.c.bf16 %v806_v42, %v804_v41 }
  0x7a   : > { %378 = vadd.xlane.f32.xlu1 %v2717_v8  ;;  %376 = vadd.xlane.f32.xlu0 %v2720_v9 }
  0x7c   : > { %1876 = vmatpush1.bf16.msra.mxu0 %v1875_v45  ;;  %v805_v45 = vld [vmem:[#allocation5 + $0x70] sm:$0xff] }
  0x7d   : > { %1878 = vmatprep.subr.bf16.mxu0 %v1877_v46 }
  0x7e   : > { %382 = vadd.xlane.f32.xlu1 %v2725_v10  ;;  %380 = vadd.xlane.f32.xlu0 %v2728_v11 }
  0x80   : > { %1880 = vmatpush1.bf16.msra.mxu0 %v1879_v49  ;;  %v808_v49 = vld [vmem:[#allocation5 + $0x88] sm:$0xff] }
  0x81   : > { %1882 = vmatprep.subr.bf16.mxu0 %v1881_v44 }
  0x82   : > { %386 = vadd.xlane.f32.xlu1 %v2733_v12  ;;  %384 = vadd.xlane.f32.xlu0 %v2736_v13 }
  0x86   : > { %390 = vadd.xlane.f32.xlu1 %v2741_v14  ;;  %388 = vadd.xlane.f32.xlu0 %v2744_v15 }
  0x8a   : > { %394 = vadd.xlane.f32.xlu1 %v2749_v16  ;;  %392 = vadd.xlane.f32.xlu0 %v2752_v17 }
  0x8e   : > { %398 = vadd.xlane.f32.xlu1 %v2757_v18  ;;  %396 = vadd.xlane.f32.xlu0 %v2760_v19 }
  0x92   : > { %400 = vadd.xlane.f32.xlu1 %v2765_v20 }
  0x96   : > { %402 = vadd.xlane.f32.xlu1 %v2769_v21 }
  0x9a   : > { %404 = vadd.xlane.f32.xlu1 %v2773_v22 }
  0x9e   : > { %406 = vadd.xlane.f32.xlu1 %v2777_v23 }
  0xa2   : > { %408 = vadd.xlane.f32.xlu1 %v2781_v24 }
  0xa6   : > { %410 = vadd.xlane.f32.xlu1 %v2785_v25 }
  0xaa   : > { %412 = vadd.xlane.f32.xlu1 %v2789_v26 }
  0xae   : > { %414 = vadd.xlane.f32.xlu1 %v2793_v27 }
  0xb2   : > { %416 = vadd.xlane.f32.xlu1 %v2797_v28 }
  0xb6   : > { %418 = vadd.xlane.f32.xlu1 %v2801_v29 }
  0xba   : > { %420 = vadd.xlane.f32.xlu1 %v2805_v30 }
  0xbe   : > { %422 = vadd.xlane.f32.xlu1 %v2809_v31 }
  0xf7   : > { %v365_v50 = vpop.xlane.xlu1 %364  ;;  %v361_v51 = vpop.xlane.xlu0 %360 }
  0xf8   : > { %v425_v52 = vmul.f32 0.0078125, %v361_v51  ;;  %v427_v53 = vmul.f32 0.0078125, %v365_v50  ;;  %v810_v50 = vld [vmem:[#allocation5 + $0x98] sm:$0xff] }
  0xfa   : > { %v2813_v54 = vsub.f32 %v2688_v1, %v425_v52  ;;  %v2818_v59 = vsub.f32 %v2685_v0, %v427_v53  ;;  %v1885_v53 = vpack.c.bf16 %v810_v50, %v808_v49  ;;  %v817_v49 = vld [vmem:[#allocation5 + $0xd0] sm:$0xff] }
  0xfb   : > { %v367_v55 = vpop.xlane.xlu1 %366  ;;  %v363_v56 = vpop.xlane.xlu0 %362 }
  0xfc   : > { %v426_v57 = vmul.f32 0.0078125, %v363_v56  ;;  %v489_v58 = vmul.f32 %v2813_v54, %v2813_v54  ;;  %v428_v60 = vmul.f32 0.0078125, %v367_v55  ;;  %v491_v33 = vmul.f32 %v2818_v59, %v2818_v59  ;;  %v807_v55 = vld [vmem:[#allocation5 + $0x80] sm:$0xff]  ;;  %v809_v56 = vld [vmem:[#allocation5 + $0x90] sm:$0xff] }
  0xfe   : > { %v2821_v61 = vsub.f32 %v2696_v3, %v426_v57  ;;  %521 = vadd.xlane.f32.xlu0 %v489_v58  ;;  %v2826_v32 = vsub.f32 %v2693_v2, %v428_v60  ;;  %v1887_v58 = vpack.c.bf16 %v809_v56, %v807_v55  ;;  %v820_v56 = vld [vmem:[#allocation5 + $0xe8] sm:$0xff] }
  0xff   : > { %v371_v62 = vpop.xlane.xlu1 %370  ;;  %v369_v63 = vpop.xlane.xlu0 %368 }
 0x100   : > { %v490_v1 = vmul.f32 %v2821_v61, %v2821_v61  ;;  %v429_v34 = vmul.f32 0.0078125, %v369_v63  ;;  %v430_v35 = vmul.f32 0.0078125, %v371_v62  ;;  %v492_v36 = vmul.f32 %v2826_v32, %v2826_v32 }
 0x102   : > { %523 = vadd.xlane.f32.xlu0 %v490_v1  ;;  %v2831_v3 = vsub.f32 %v2704_v5, %v429_v34  ;;  %v2836_v39 = vsub.f32 %v2701_v4, %v430_v35  ;;  %v803_v5 = vld [vmem:[#allocation5 + $0x60] sm:$0xff]  ;;  %v812_v1 = vld [vmem:[#allocation5 + $0xa8] sm:$0xff] }
 0x103   : > { %v375_v0 = vpop.xlane.xlu1 %374  ;;  %v373_v38 = vpop.xlane.xlu0 %372  ;;  %v1883_v46 = vpack.c.bf16 %v805_v45, %v803_v5  ;;  %v811_v35 = vld [vmem:[#allocation5 + $0xa0] sm:$0xff]  ;;  %v816_v5 = vld [vmem:[#allocation5 + $0xc8] sm:$0xff]  ;;  %v818_v45 = vld [vmem:[#allocation5 + $0xd8] sm:$0xff] }
 0x104   : > { %v493_v2 = vmul.f32 %v2831_v3, %v2831_v3  ;;  %v431_v40 = vmul.f32 0.0078125, %v373_v38  ;;  %v432_v47 = vmul.f32 0.0078125, %v375_v0  ;;  %v494_v4 = vmul.f32 %v2836_v39, %v2836_v39 }
 0x105   : > { %1884 = vmatpush1.bf16.msra.mxu0 %v1883_v46 }
 0x106   : > { %525 = vadd.xlane.f32.xlu0 %v491_v33  ;;  %v2843_v48 = vsub.f32 %v2712_v7, %v431_v40  ;;  %1886 = vmatprep.subr.bf16.mxu0 %v1885_v53  ;;  %v2848_v60 = vsub.f32 %v2709_v6, %v432_v47  ;;  %v814_v33 = vld [vmem:[#allocation5 + $0xb8] sm:$0xff]  ;;  %v1893_v47 = vpack.c.bf16 %v818_v45, %v816_v5 }
 0x107   : > { %v379_v37 = vpop.xlane.xlu1 %378  ;;  %v377_v52 = vpop.xlane.xlu0 %376  ;;  %v1889_v0 = vpack.c.bf16 %v814_v33, %v812_v1  ;;  %v821_v1 = vld [vmem:[#allocation5 + $0xf0] sm:$0xff] }
 0x108   : > { %v495_v62 = vmul.f32 %v2843_v48, %v2843_v48  ;;  %v433_v63 = vmul.f32 0.0078125, %v377_v52  ;;  %v434_v40 = vmul.f32 0.0078125, %v379_v37  ;;  %v496_v44 = vmul.f32 %v2848_v60, %v2848_v60 }
 0x109   : > { %1888 = vmatpush1.bf16.msra.mxu0 %v1887_v58 }
 0x10a   : > { %527 = vadd.xlane.f32.xlu0 %v492_v36  ;;  %v813_v36 = vld [vmem:[#allocation5 + $0xb0] sm:$0xff]  ;;  %1890 = vmatprep.subr.bf16.mxu0 %v1889_v0  ;;  %v2861_v42 = vsub.f32 %v2720_v9, %v433_v63  ;;  %v2868_v9 = vsub.f32 %v2717_v8, %v434_v40  ;;  %v819_v63 = vld [vmem:[#allocation5 + $0xe0] sm:$0xff] }
 0x10b   : > { %v2840_v43 = vpop.xlane.xlu1 %382 }
 0x10c   : > { %v497_v53 = vmul.f32 %v2861_v42, %v2861_v42 }
 0x10e   : > { %529 = vadd.xlane.f32.xlu0 %v493_v2  ;;  %v381_v2 = vpop.xlane.xlu0 %380 }
 0x10f   : > { %v387_v51 = vpop.xlane.xlu1 %386  ;;  %v435_v55 = vmul.f32 0.0078125, %v381_v2 }
 0x110   : > { %v438_v57 = vmul.f32 0.0078125, %v387_v51 }
 0x112   : > { %v2851_v7 = vsub.f32 %v2733_v12, %v438_v57  ;;  %531 = vadd.xlane.f32.xlu0 %v494_v4  ;;  %v1891_v12 = vpack.c.bf16 %v813_v36, %v811_v35  ;;  %v815_v4 = vld [vmem:[#allocation5 + $0xc0] sm:$0xff]  ;;  %v385_v37 = vpop.xlane.xlu0 %384  ;;  %v822_v57 = vld [vmem:[#allocation5 + $0xf8] sm:$0xff]  ;;  %v2882_v35 = vsub.f32 %v2728_v11, %v435_v55  ;;  %v498_v36 = vmul.f32 %v2868_v9, %v2868_v9 }
 0x113   : > { %v391_v34 = vpop.xlane.xlu1 %390  ;;  %v1895_v51 = vpack.c.bf16 %v817_v49, %v815_v4 }
 0x114   : > { %v440_v38 = vmul.f32 0.0078125, %v391_v34  ;;  %v502_v6 = vmul.f32 %v2851_v7, %v2851_v7  ;;  %1892 = vmatpush1.bf16.msra.mxu0 %v1891_v12  ;;  %v436_v34 = vmul.f32 0.0078125, %v2840_v43  ;;  %v2445_v12 = vmov 0.0  }
 0x115   : > { %1894 = vmatprep.subr.bf16.mxu0 %v1893_v47  ;;  %899 = vmatprep.mubr.f32.mxu0 %v2445_v12  ;;  %v499_v11 = vmul.f32 %v2882_v35, %v2882_v35  ;;  %v437_v43 = vmul.f32 0.0078125, %v385_v37 }
 0x116   : > { %v2858_v41 = vsub.f32 %v2741_v14, %v440_v38  ;;  %547 = vadd.xlane.f32.xlu1 %v502_v6  ;;  %533 = vadd.xlane.f32.xlu0 %v495_v62  ;;  %v1897_v62 = vpack.c.bf16 %v822_v57, %v820_v56  ;;  %v389_v6 = vpop.xlane.xlu0 %388 }
 0x117   : > { %v395_v46 = vpop.xlane.xlu1 %394  ;;  %v439_v47 = vmul.f32 0.0078125, %v389_v6 }
 0x118   : > { %v442_v50 = vmul.f32 0.0078125, %v395_v46  ;;  %v504_v14 = vmul.f32 %v2858_v41, %v2858_v41  ;;  %1896 = vmatpush1.bf16.msra.mxu0 %v1895_v51  ;;  %v2898_v46 = vsub.f32 %v2736_v13, %v437_v43 }
 0x119   : > { %1898 = vmatprep.subr.bf16.mxu0 %v1897_v62 }
 0x11a   : > { %v2871_v52 = vsub.f32 %v2749_v16, %v442_v50  ;;  %551 = vadd.xlane.f32.xlu1 %v504_v14  ;;  %535 = vadd.xlane.f32.xlu0 %v496_v44  ;;  %v1899_v16 = vpack.c.bf16 %v821_v1, %v819_v63  ;;  %v393_v5 = vpop.xlane.xlu0 %392  ;;  %v2905_v50 = vsub.f32 %v2744_v15, %v439_v47 }
 0x11b   : > { %v399_v58 = vpop.xlane.xlu1 %398  ;;  %v441_v14 = vmul.f32 0.0078125, %v393_v5 }
 0x11c   : > { %v444_v33 = vmul.f32 0.0078125, %v399_v58  ;;  %v506_v8 = vmul.f32 %v2871_v52, %v2871_v52  ;;  %1900 = vmatpush1.bf16.msra.mxu0 %v1899_v16  ;;  %v503_v56 = vmul.f32 %v2905_v50, %v2905_v50 }
 0x11d   : > { %v2913_v55 = vsub.f32 %v2752_v17, %v441_v14 }
 0x11e   : > { %v2879_v0 = vsub.f32 %v2757_v18, %v444_v33  ;;  %555 = vadd.xlane.f32.xlu1 %v506_v8  ;;  %537 = vadd.xlane.f32.xlu0 %v497_v53  ;;  %v2890_v18 = vsub.f32 %v2725_v10, %v436_v34  ;;  %v397_v13 = vpop.xlane.xlu0 %396 }
 0x11f   : > { %v401_v38 = vpop.xlane.xlu1 %400  ;;  %v443_v57 = vmul.f32 0.0078125, %v397_v13 }
 0x120   : > { %v508_v2 = vmul.f32 %v2879_v0, %v2879_v0  ;;  %v500_v10 = vmul.f32 %v2890_v18, %v2890_v18  ;;  %v445_v62 = vmul.f32 0.0078125, %v401_v38 }
 0x121   : > { %v2920_v63 = vsub.f32 %v2760_v19, %v443_v57 }
 0x122   : > { %559 = vadd.xlane.f32.xlu1 %v508_v2  ;;  %539 = vadd.xlane.f32.xlu0 %v498_v36  ;;  %v2925_v33 = vsub.f32 %v2765_v20, %v445_v62 }
 0x123   : > { %v403_v40 = vpop.xlane.xlu1 %402  ;;  %v507_v34 = vmul.f32 %v2920_v63, %v2920_v63 }
 0x124   : > { %v446_v44 = vmul.f32 0.0078125, %v403_v40  ;;  %v509_v20 = vmul.f32 %v2925_v33, %v2925_v33 }
 0x126   : > { %v2895_v45 = vsub.f32 %v2769_v21, %v446_v44  ;;  %541 = vadd.xlane.f32.xlu0 %v499_v11  ;;  %v501_v21 = vmul.f32 %v2898_v46, %v2898_v46 }
 0x127   : > { %v405_v4 = vpop.xlane.xlu1 %404 }
 0x128   : > { %v510_v49 = vmul.f32 %v2895_v45, %v2895_v45  ;;  %v447_v8 = vmul.f32 0.0078125, %v405_v4 }
 0x12a   : > { %563 = vadd.xlane.f32.xlu1 %v510_v49  ;;  %543 = vadd.xlane.f32.xlu0 %v500_v10  ;;  %v2935_v38 = vsub.f32 %v2773_v22, %v447_v8 }
 0x12b   : > { %v407_v37 = vpop.xlane.xlu1 %406 }
 0x12c   : > { %v448_v51 = vmul.f32 0.0078125, %v407_v37  ;;  %v511_v22 = vmul.f32 %v2935_v38, %v2935_v38 }
 0x12e   : > { %v2910_v53 = vsub.f32 %v2777_v23, %v448_v51  ;;  %545 = vadd.xlane.f32.xlu0 %v501_v21  ;;  %v505_v23 = vmul.f32 %v2913_v55, %v2913_v55 }
 0x12f   : > { %v409_v15 = vpop.xlane.xlu1 %408 }
 0x130   : > { %v512_v58 = vmul.f32 %v2910_v53, %v2910_v53  ;;  %v449_v6 = vmul.f32 0.0078125, %v409_v15 }
 0x132   : > { %567 = vadd.xlane.f32.xlu1 %v512_v58  ;;  %549 = vadd.xlane.f32.xlu0 %v503_v56  ;;  %v2940_v11 = vsub.f32 %v2781_v24, %v449_v6 }
 0x133   : > { %v411_v1 = vpop.xlane.xlu1 %410 }
 0x134   : > { %v450_v17 = vmul.f32 0.0078125, %v411_v1  ;;  %v513_v24 = vmul.f32 %v2940_v11, %v2940_v11 }
 0x136   : > { %v2928_v16 = vsub.f32 %v2785_v25, %v450_v17  ;;  %553 = vadd.xlane.f32.xlu0 %v505_v23 }
 0x137   : > { %v413_v36 = vpop.xlane.xlu1 %412 }
 0x138   : > { %v514_v19 = vmul.f32 %v2928_v16, %v2928_v16  ;;  %v451_v43 = vmul.f32 0.0078125, %v413_v36 }
 0x13a   : > { %571 = vadd.xlane.f32.xlu1 %v514_v19  ;;  %557 = vadd.xlane.f32.xlu0 %v507_v34  ;;  %v2950_v10 = vsub.f32 %v2789_v26, %v451_v43 }
 0x13b   : > { %v415_v2 = vpop.xlane.xlu1 %414 }
 0x13c   : > { %v452_v25 = vmul.f32 0.0078125, %v415_v2  ;;  %v515_v14 = vmul.f32 %v2950_v10, %v2950_v10 }
 0x13e   : > { %v2943_v40 = vsub.f32 %v2793_v27, %v452_v25  ;;  %561 = vadd.xlane.f32.xlu0 %v509_v20  ;;  %v2979_v25 = vld [vmem:[%s3557_s1] ss:$0 sm:$0xff] }
 0x13f   : > { %v417_v44 = vpop.xlane.xlu1 %416 }
 0x140   : > { %v516_v5 = vmul.f32 %v2943_v40, %v2943_v40  ;;  %v453_v47 = vmul.f32 0.0078125, %v417_v44 }
 0x142   : > { %575 = vadd.xlane.f32.xlu1 %v516_v5  ;;  %565 = vadd.xlane.f32.xlu0 %v511_v22  ;;  %v2955_v49 = vsub.f32 %v2797_v28, %v453_v47  ;;  %v2985_v5 = vld [vmem:[%s3558_s2] ss:$0 sm:$0xff] }
 0x143   : > { %v419_v4 = vpop.xlane.xlu1 %418 }
 0x144   : > { %v454_v27 = vmul.f32 0.0078125, %v419_v4  ;;  %v517_v28 = vmul.f32 %v2955_v49, %v2955_v49 }
 0x146   : > { %v2958_v21 = vsub.f32 %v2801_v29, %v454_v27  ;;  %569 = vadd.xlane.f32.xlu0 %v513_v24 }
 0x147   : > { %v421_v26 = vpop.xlane.xlu1 %420 }
 0x148   : > { %v455_v37 = vmul.f32 0.0078125, %v421_v26  ;;  %v518_v13 = vmul.f32 %v2958_v21, %v2958_v21 }
 0x14a   : > { %v2965_v51 = vsub.f32 %v2805_v30, %v455_v37  ;;  %579 = vadd.xlane.f32.xlu1 %v518_v13  ;;  %573 = vadd.xlane.f32.xlu0 %v515_v14  ;;  %v1412_v37 = vld [vmem:[#allocation7] sm:$0xff]  ;;  %v1413_v13 = vld [vmem:[#allocation7 + $0x8] sm:$0xff] }
 0x14b   : > { %v423_v56 = vpop.xlane.xlu1 %422 }
 0x14c   : > { %v456_v29 = vmul.f32 0.0078125, %v423_v56  ;;  %v519_v15 = vmul.f32 %v2965_v51, %v2965_v51  ;;  %v2446_v56 = vmov 0.0|0.0  }
 0x14d   : > { %1901 = vmatprep.subr.bf16.mxu0 %v2446_v56  ;;  %1949 = vmatprep.subr.bf16.mxu1 %v2446_v56 }
 0x14e   : > { %v2970_v57 = vsub.f32 %v2809_v31, %v456_v29  ;;  %577 = vadd.xlane.f32.xlu0 %v517_v28  ;;  %v1414_v28 = vld [vmem:[#allocation7 + $0x10] sm:$0xff]  ;;  %v1902_v29 = vpack.c.bf16 %v1413_v13, %v1412_v37  ;;  %v1420_v13 = vld [vmem:[#allocation7 + $0x40] sm:$0xff] }
 0x150   : > { %v520_v58 = vmul.f32 %v2970_v57, %v2970_v57  ;;  %1965 = vmatpush1.bf16.msra.mxu1 %v1902_v29 }
 0x151   : > { %1950 = vmatprep.subr.bf16.mxu1 %v2446_v56 }
 0x152   : > { %583 = vadd.xlane.f32.xlu1 %v520_v58  ;;  %581 = vadd.xlane.f32.xlu0 %v519_v15  ;;  %v1415_v15 = vld [vmem:[#allocation7 + $0x18] sm:$0xff] }
 0x18b   : > { %v522_v30 = vpop.xlane.xlu0 %521 }
 0x18c   : > { %v585_v62 = vmul.f32 0.0078125, %v522_v30 }
 0x18e   : > { %v617_v23 = vadd.f32 1e-05, %v585_v62 }
 0x18f   : > { %v524_v1 = vpop.xlane.xlu0 %523 }
 0x190   : > { %2056 = vrsqrt.f32 %v617_v23  ;;  %v586_v17 = vmul.f32 0.0078125, %v524_v1 }
 0x192   : > { %v618_v8 = vadd.f32 1e-05, %v586_v17 }
 0x193   : > { %v526_v34 = vpop.xlane.xlu0 %525 }
 0x194   : > { %2058 = vrsqrt.f32 %v618_v8  ;;  %v587_v31 = vmul.f32 0.0078125, %v526_v34  ;;  %v1416_v8 = vld [vmem:[#allocation7 + $0x20] sm:$0xff]  ;;  %v1417_v34 = vld [vmem:[#allocation7 + $0x28] sm:$0xff] }
 0x196   : > { %v619_v36 = vadd.f32 1e-05, %v587_v31 }
 0x197   : > { %v528_v19 = vpop.xlane.xlu0 %527 }
 0x198   : > { %2060 = vrsqrt.f32 %v619_v36  ;;  %v588_v6 = vmul.f32 0.0078125, %v528_v19 }
 0x19a   : > { %v2057_v20 = vpop.eup %2056  ;;  %v620_v2 = vadd.f32 1e-05, %v588_v6 }
 0x19b   : > { %v530_v43 = vpop.xlane.xlu0 %529  ;;  %v681_v22 = vmul.f32 %v2057_v20, %v2813_v54  ;;  %v1908_v20 = vpack.c.bf16 %v1417_v34, %v1416_v8 }
 0x19c   : > { %2062 = vrsqrt.f32 %v620_v2  ;;  %v589_v44 = vmul.f32 0.0078125, %v530_v43 }
 0x19d   : > { %v720_v47 = vmul.f32 %v2979_v25, %v681_v22  ;;  %v1418_v22 = vld [vmem:[#allocation7 + $0x30] sm:$0xff] }
 0x19e   : > { %v2059_v24 = vpop.eup %2058  ;;  %v621_v4 = vadd.f32 1e-05, %v589_v44  ;;  %v1419_v44 = vld [vmem:[#allocation7 + $0x38] sm:$0xff] }
 0x19f   : > { %v532_v27 = vpop.xlane.xlu0 %531  ;;  %v759_v14 = vadd.f32 %v2985_v5, %v720_v47  ;;  %v682_v26 = vmul.f32 %v2059_v24, %v2821_v61  ;;  %v1905_v61 = vpack.c.bf16 %v1415_v15, %v1414_v28  ;;  %v1421_v28 = vld [vmem:[#allocation7 + $0x48] sm:$0xff] }
 0x1a0   : > { %2064 = vrsqrt.f32 %v621_v4  ;;  %v590_v54 = vmul.f32 0.0078125, %v532_v27 }
 0x1a1   : > { %900 = vmatmul.mubr.f32.vlgmr.msra.gmra.mrb[0].mxu0 %v759_v14  ;;  %v721_v58 = vmul.f32 %v2979_v25, %v682_v26  ;;  %1966 = vmatpush1.bf16.msra.mxu1 %v1905_v61  ;;  %v1911_v14 = vpack.c.bf16 %v1419_v44, %v1418_v22 }
 0x1a2   : > { %v2061_v30 = vpop.eup %2060  ;;  %v622_v62 = vadd.f32 1e-05, %v590_v54  ;;  %905 = vmatprep.mubr.f32.mxu0 %v2445_v12  ;;  %1903 = vmatpush1.bf16.msra.mxu0 %v1902_v29 }
 0x1a3   : > { %v534_v23 = vpop.xlane.xlu0 %533  ;;  %v760_v1 = vadd.f32 %v2985_v5, %v721_v58  ;;  %v683_v17 = vmul.f32 %v2061_v30, %v2818_v59  ;;  %1904 = vmatprep.subr.bf16.mxu0 %v2446_v56  ;;  %1951 = vmatprep.subr.bf16.mxu1 %v2446_v56  ;;  %v1914_v30 = vpack.c.bf16 %v1421_v28, %v1420_v13 }
 0x1a4   : > { %2066 = vrsqrt.f32 %v622_v62  ;;  %v591_v31 = vmul.f32 0.0078125, %v534_v23  ;;  %v1422_v23 = vld [vmem:[#allocation7 + $0x50] sm:$0xff] }
 0x1a5   : > { %906 = vmatmul.mubr.f32.gmra.mrb[2].mxu0 %v760_v1  ;;  %v722_v36 = vmul.f32 %v2979_v25, %v683_v17  ;;  %1967 = vmatpush1.bf16.msra.mxu1 %v1908_v20  ;;  %v1423_v1 = vld [vmem:[#allocation7 + $0x58] sm:$0xff] }
 0x1a6   : > { %v2063_v19 = vpop.eup %2062  ;;  %v623_v6 = vadd.f32 1e-05, %v591_v31  ;;  %911 = vmatprep.mubr.f32.mxu0 %v2445_v12  ;;  %1906 = vmatpush1.bf16.msra.mxu0 %v1905_v61  ;;  %v1917_v31 = vpack.c.bf16 %v1423_v1, %v1422_v23 }
 0x1a7   : > { %v536_v2 = vpop.xlane.xlu0 %535  ;;  %v761_v59 = vadd.f32 %v2985_v5, %v722_v36  ;;  %v684_v43 = vmul.f32 %v2063_v19, %v2826_v32  ;;  %1907 = vmatprep.subr.bf16.mxu0 %v2446_v56  ;;  %1952 = vmatprep.subr.bf16.mxu1 %v2446_v56 }
 0x1a8   : > { %v592_v47 = vmul.f32 0.0078125, %v536_v2  ;;  %2068 = vrsqrt.f32 %v623_v6  ;;  %v548_v6 = vpop.xlane.xlu1 %547 }
 0x1a9   : > { %912 = vmatmul.mubr.f32.gmra.mrb[4].mxu0 %v761_v59  ;;  %v723_v24 = vmul.f32 %v2979_v25, %v684_v43  ;;  %1968 = vmatpush1.bf16.msra.mxu1 %v1911_v14  ;;  %v1424_v59 = vld [vmem:[#allocation7 + $0x60] sm:$0xff]  ;;  %v1425_v43 = vld [vmem:[#allocation7 + $0x68] sm:$0xff] }
 0x1aa   : > { %v2065_v4 = vpop.eup %2064  ;;  %v624_v27 = vadd.f32 1e-05, %v592_v47  ;;  %917 = vmatprep.mubr.f32.mxu0 %v2445_v12  ;;  %1909 = vmatpush1.bf16.msra.mxu0 %v1908_v20 }
 0x1ab   : > { %v538_v26 = vpop.xlane.xlu0 %537  ;;  %v762_v32 = vadd.f32 %v2985_v5, %v723_v24  ;;  %v685_v37 = vmul.f32 %v2065_v4, %v2831_v3  ;;  %1910 = vmatprep.subr.bf16.mxu0 %v2446_v56  ;;  %1953 = vmatprep.subr.bf16.mxu1 %v2446_v56  ;;  %v598_v24 = vmul.f32 0.0078125, %v548_v6  ;;  %v1430_v6 = vld [vmem:[#allocation7 + $0x90] sm:$0xff] }
 0x1ac   : > { %v593_v54 = vmul.f32 0.0078125, %v538_v26  ;;  %2070 = vrsqrt.f32 %v624_v27  ;;  %v1920_v27 = vpack.c.bf16 %v1425_v43, %v1424_v59 }
 0x1ad   : > { %918 = vmatmul.mubr.f32.gmra.mrb[6].mxu0 %v762_v32  ;;  %v724_v29 = vmul.f32 %v2979_v25, %v685_v37  ;;  %1969 = vmatpush1.bf16.msra.mxu1 %v1914_v30  ;;  %v1426_v32 = vld [vmem:[#allocation7 + $0x70] sm:$0xff]  ;;  %v1427_v37 = vld [vmem:[#allocation7 + $0x78] sm:$0xff] }
 0x1ae   : > { %v2067_v15 = vpop.eup %2066  ;;  %v625_v58 = vadd.f32 1e-05, %v593_v54  ;;  %923 = vmatprep.mubr.f32.mxu0 %v2445_v12  ;;  %1912 = vmatpush1.bf16.msra.mxu0 %v1911_v14  ;;  %v630_v54 = vadd.f32 1e-05, %v598_v24 }
 0x1af   : > { %v540_v62 = vpop.xlane.xlu0 %539  ;;  %v763_v3 = vadd.f32 %v2985_v5, %v724_v29  ;;  %v686_v61 = vmul.f32 %v2067_v15, %v2836_v39  ;;  %1913 = vmatprep.subr.bf16.mxu0 %v2446_v56  ;;  %1954 = vmatprep.subr.bf16.mxu1 %v2446_v56 }
 0x1b0   : > { %v594_v17 = vmul.f32 0.0078125, %v540_v62  ;;  %2072 = vrsqrt.f32 %v625_v58  ;;  %v1923_v62 = vpack.c.bf16 %v1427_v37, %v1426_v32 }
 0x1b1   : > { %924 = vmatmul.mubr.f32.gmra.mrb[8].mxu0 %v763_v3  ;;  %v725_v8 = vmul.f32 %v2979_v25, %v686_v61  ;;  %1970 = vmatpush1.bf16.msra.mxu1 %v1917_v31  ;;  %v1428_v3 = vld [vmem:[#allocation7 + $0x80] sm:$0xff]  ;;  %v552_v61 = vpop.xlane.xlu1 %551 }
 0x1b2   : > { %v626_v34 = vadd.f32 1e-05, %v594_v17  ;;  %929 = vmatprep.mubr.f32.mxu0 %v2445_v12  ;;  %1915 = vmatpush1.bf16.msra.mxu0 %v1914_v30  ;;  %v2069_v36 = vpop.eup %2068 }
 0x1b3   : > { %v542_v19 = vpop.xlane.xlu0 %541  ;;  %v764_v39 = vadd.f32 %v2985_v5, %v725_v8  ;;  %1916 = vmatprep.subr.bf16.mxu0 %v2446_v56  ;;  %v687_v2 = vmul.f32 %v2069_v36, %v2843_v48  ;;  %1955 = vmatprep.subr.bf16.mxu1 %v2446_v56 }
 0x1b4   : > { %v595_v20 = vmul.f32 0.0078125, %v542_v19  ;;  %2074 = vrsqrt.f32 %v626_v34 }
 0x1b5   : > { %930 = vmatmul.mubr.f32.gmra.mrb[10].mxu0 %v764_v39  ;;  %v726_v44 = vmul.f32 %v2979_v25, %v687_v2  ;;  %1971 = vmatpush1.bf16.msra.mxu1 %v1920_v27 }
 0x1b6   : > { %v627_v22 = vadd.f32 1e-05, %v595_v20  ;;  %935 = vmatprep.mubr.f32.mxu0 %v2445_v12  ;;  %1918 = vmatpush1.bf16.msra.mxu0 %v1917_v31  ;;  %v2071_v47 = vpop.eup %2070  ;;  %v600_v31 = vmul.f32 0.0078125, %v552_v61  ;;  %v1431_v20 = vld [vmem:[#allocation7 + $0x98] sm:$0xff] }
 0x1b7   : > { %v544_v4 = vpop.xlane.xlu0 %543  ;;  %1919 = vmatprep.subr.bf16.mxu0 %v2446_v56  ;;  %v765_v14 = vadd.f32 %v2985_v5, %v726_v44  ;;  %v688_v26 = vmul.f32 %v2071_v47, %v2848_v60  ;;  %v1429_v60 = vld [vmem:[#allocation7 + $0x88] sm:$0xff]  ;;  %1956 = vmatprep.subr.bf16.mxu1 %v2446_v56 }
 0x1b8   : > { %2076 = vrsqrt.f32 %v627_v22  ;;  %v596_v48 = vmul.f32 0.0078125, %v544_v4  ;;  %v632_v47 = vadd.f32 1e-05, %v600_v31  ;;  %v1432_v4 = vld [vmem:[#allocation7 + $0xa0] sm:$0xff] }
 0x1b9   : > { %936 = vmatmul.mubr.f32.gmra.mrb[12].mxu0 %v765_v14  ;;  %v727_v15 = vmul.f32 %v2979_v25, %v688_v26  ;;  %1972 = vmatpush1.bf16.msra.mxu1 %v1923_v62 }
 0x1ba   : > { %v628_v13 = vadd.f32 1e-05, %v596_v48  ;;  %v2073_v28 = vpop.eup %2072  ;;  %941 = vmatprep.mubr.f32.mxu0 %v2445_v12  ;;  %1921 = vmatpush1.bf16.msra.mxu0 %v1920_v27  ;;  %v1433_v27 = vld [vmem:[#allocation7 + $0xa8] sm:$0xff]  ;;  %v556_v48 = vpop.xlane.xlu1 %555 }
 0x1bb   : > { %v546_v29 = vpop.xlane.xlu0 %545  ;;  %v689_v30 = vmul.f32 %v2073_v28, %v2861_v42  ;;  %1922 = vmatprep.subr.bf16.mxu0 %v2446_v56  ;;  %v766_v23 = vadd.f32 %v2985_v5, %v727_v15  ;;  %v1926_v42 = vpack.c.bf16 %v1429_v60, %v1428_v3  ;;  %1957 = vmatprep.subr.bf16.mxu1 %v2446_v56 }
 0x1bc   : > { %v597_v58 = vmul.f32 0.0078125, %v546_v29  ;;  %2078 = vrsqrt.f32 %v628_v13  ;;  %v1932_v37 = vpack.c.bf16 %v1433_v27, %v1432_v4  ;;  %v602_v13 = vmul.f32 0.0078125, %v556_v48 }
 0x1bd   : > { %v728_v17 = vmul.f32 %v2979_v25, %v689_v30  ;;  %2080 = vrsqrt.f32 %v630_v54  ;;  %942 = vmatmul.mubr.f32.gmra.mrb[14].mxu0 %v766_v23  ;;  %1973 = vmatpush1.bf16.msra.mxu1 %v1926_v42 }
 0x1be   : > { %v629_v1 = vadd.f32 1e-05, %v597_v58  ;;  %v2075_v8 = vpop.eup %2074  ;;  %947 = vmatprep.mubr.f32.mxu0 %v2445_v12  ;;  %1924 = vmatpush1.bf16.msra.mxu0 %v1923_v62  ;;  %v634_v3 = vadd.f32 1e-05, %v602_v13  ;;  %v560_v61 = vpop.xlane.xlu1 %559 }
 0x1bf   : > { %v550_v34 = vpop.xlane.xlu0 %549  ;;  %v767_v19 = vadd.f32 %v2985_v5, %v728_v17  ;;  %v690_v39 = vmul.f32 %v2075_v8, %v2868_v9  ;;  %1925 = vmatprep.subr.bf16.mxu0 %v2446_v56  ;;  %v1929_v9 = vpack.c.bf16 %v1431_v20, %v1430_v6  ;;  %1958 = vmatprep.subr.bf16.mxu1 %v2446_v56  ;;  %v604_v8 = vmul.f32 0.0078125, %v560_v61 }
 0x1c0   : > { %2082 = vrsqrt.f32 %v629_v1  ;;  %v599_v36 = vmul.f32 0.0078125, %v550_v34 }
 0x1c1   : > { %948 = vmatmul.mubr.f32.gmra.mrb[16].mxu0 %v767_v19  ;;  %v729_v22 = vmul.f32 %v2979_v25, %v690_v39  ;;  %1974 = vmatpush1.bf16.msra.mxu1 %v1929_v9  ;;  %v636_v19 = vadd.f32 1e-05, %v604_v8 }
 0x1c2   : > { %v2077_v2 = vpop.eup %2076  ;;  %v631_v59 = vadd.f32 1e-05, %v599_v36  ;;  %953 = vmatprep.mubr.f32.mxu0 %v2445_v12  ;;  %1927 = vmatpush1.bf16.msra.mxu0 %v1926_v42  ;;  %v564_v6 = vpop.xlane.xlu1 %563 }
 0x1c3   : > { %v554_v43 = vpop.xlane.xlu0 %553  ;;  %v691_v44 = vmul.f32 %v2077_v2, %v2882_v35  ;;  %v768_v14 = vadd.f32 %v2985_v5, %v729_v22  ;;  %1928 = vmatprep.subr.bf16.mxu0 %v2446_v56  ;;  %1959 = vmatprep.subr.bf16.mxu1 %v2446_v56  ;;  %v606_v22 = vmul.f32 0.0078125, %v564_v6 }
 0x1c4   : > { %v601_v24 = vmul.f32 0.0078125, %v554_v43  ;;  %2084 = vrsqrt.f32 %v631_v59 }
 0x1c5   : > { %v730_v26 = vmul.f32 %v2979_v25, %v691_v44  ;;  %954 = vmatmul.mubr.f32.gmra.mrb[18].mxu0 %v768_v14  ;;  %2086 = vrsqrt.f32 %v632_v47  ;;  %1975 = vmatpush1.bf16.msra.mxu1 %v1932_v37  ;;  %v638_v27 = vadd.f32 1e-05, %v606_v22 }
 0x1c6   : > { %v2079_v35 = vpop.eup %2078  ;;  %v633_v28 = vadd.f32 1e-05, %v601_v24  ;;  %959 = vmatprep.mubr.f32.mxu0 %v2445_v12  ;;  %1930 = vmatpush1.bf16.msra.mxu0 %v1929_v9 }
 0x1c7   : > { %v769_v32 = vadd.f32 %v2985_v5, %v730_v26  ;;  %v692_v54 = vmul.f32 %v2079_v35, %v2890_v18  ;;  %v2081_v29 = vpop.eup %2080  ;;  %v558_v15 = vpop.xlane.xlu0 %557  ;;  %1931 = vmatprep.subr.bf16.mxu0 %v2446_v56  ;;  %1960 = vmatprep.subr.bf16.mxu1 %v2446_v56 }
 0x1c8   : > { %2088 = vrsqrt.f32 %v633_v28  ;;  %v603_v60 = vmul.f32 0.0078125, %v558_v15  ;;  %v694_v1 = vmul.f32 %v2081_v29, %v2851_v7 }
 0x1c9   : > { %v731_v30 = vmul.f32 %v2979_v25, %v692_v54  ;;  %960 = vmatmul.mubr.f32.gmra.mrb[20].mxu0 %v769_v32  ;;  %2090 = vrsqrt.f32 %v634_v3 }
 0x1ca   : > { %v2083_v58 = vpop.eup %2082  ;;  %965 = vmatprep.mubr.f32.mxu0 %v2445_v12  ;;  %1933 = vmatpush1.bf16.msra.mxu0 %v1932_v37  ;;  %v635_v34 = vadd.f32 1e-05, %v603_v60  ;;  %v733_v31 = vmul.f32 %v2979_v25, %v694_v1 }
 0x1cb   : > { %v693_v62 = vmul.f32 %v2083_v58, %v2898_v46  ;;  %v770_v18 = vadd.f32 %v2985_v5, %v731_v30  ;;  %1934 = vmatprep.subr.bf16.mxu0 %v2446_v56  ;;  %v562_v42 = vpop.xlane.xlu0 %561 }
 0x1cc   : > { %2092 = vrsqrt.f32 %v635_v34  ;;  %v605_v39 = vmul.f32 0.0078125, %v562_v42  ;;  %v772_v20 = vadd.f32 %v2985_v5, %v733_v31 }
 0x1cd   : > { %v732_v23 = vmul.f32 %v2979_v25, %v693_v62  ;;  %966 = vmatmul.mubr.f32.gmra.mrb[22].mxu0 %v770_v18  ;;  %2094 = vrsqrt.f32 %v636_v19 }
 0x1ce   : > { %v2085_v17 = vpop.eup %2084  ;;  %971 = vmatprep.mubr.f32.mxu0 %v2445_v12  ;;  %v637_v44 = vadd.f32 1e-05, %v605_v39 }
 0x1cf   : > { %v771_v46 = vadd.f32 %v2985_v5, %v732_v23  ;;  %v695_v36 = vmul.f32 %v2085_v17, %v2905_v50  ;;  %v2087_v7 = vpop.eup %2086  ;;  %v566_v50 = vpop.xlane.xlu0 %565 }
 0x1d0   : > { %v696_v59 = vmul.f32 %v2087_v7, %v2858_v41  ;;  %2096 = vrsqrt.f32 %v637_v44  ;;  %v607_v48 = vmul.f32 0.0078125, %v566_v50  ;;  %v568_v41 = vpop.xlane.xlu1 %567 }
 0x1d1   : > { %972 = vmatmul.mubr.f32.gmra.mrb[24].mxu0 %v771_v46  ;;  %v734_v2 = vmul.f32 %v2979_v25, %v695_v36  ;;  %2098 = vrsqrt.f32 %v638_v27  ;;  %v608_v37 = vmul.f32 0.0078125, %v568_v41  ;;  %v1435_v27 = vld [vmem:[#allocation7 + $0xb8] sm:$0xff] }
 0x1d2   : > { %977 = vmatprep.mubr.f32.mxu0 %v2445_v12  ;;  %v2089_v43 = vpop.eup %2088  ;;  %v735_v24 = vmul.f32 %v2979_v25, %v696_v59  ;;  %v639_v13 = vadd.f32 1e-05, %v607_v48 }
 0x1d3   : > { %v773_v47 = vadd.f32 %v2985_v5, %v734_v2  ;;  %v697_v9 = vmul.f32 %v2089_v43, %v2913_v55  ;;  %v2091_v4 = vpop.eup %2090  ;;  %v570_v55 = vpop.xlane.xlu0 %569  ;;  %v640_v58 = vadd.f32 1e-05, %v608_v37  ;;  %v1436_v37 = vld [vmem:[#allocation7 + $0xc0] sm:$0xff] }
 0x1d4   : > { %v774_v14 = vadd.f32 %v2985_v5, %v735_v24  ;;  %v698_v35 = vmul.f32 %v2091_v4, %v2871_v52  ;;  %2100 = vrsqrt.f32 %v639_v13  ;;  %v609_v30 = vmul.f32 0.0078125, %v570_v55  ;;  %v572_v52 = vpop.xlane.xlu1 %571  ;;  %v1434_v4 = vld [vmem:[#allocation7 + $0xb0] sm:$0xff]  ;;  %v1437_v13 = vld [vmem:[#allocation7 + $0xc8] sm:$0xff] }
 0x1d5   : > { %978 = vmatmul.mubr.f32.gmra.mrb[26].mxu0 %v772_v20  ;;  %v736_v26 = vmul.f32 %v2979_v25, %v697_v9  ;;  %2102 = vrsqrt.f32 %v640_v58  ;;  %v610_v61 = vmul.f32 0.0078125, %v572_v52  ;;  %v1935_v48 = vpack.c.bf16 %v1435_v27, %v1434_v4  ;;  %v1438_v52 = vld [vmem:[#allocation7 + $0xd0] sm:$0xff] }
 0x1d6   : > { %983 = vmatprep.mubr.f32.mxu0 %v2445_v12  ;;  %v2093_v32 = vpop.eup %2092  ;;  %v737_v54 = vmul.f32 %v2979_v25, %v698_v35  ;;  %v641_v23 = vadd.f32 1e-05, %v609_v30  ;;  %v1938_v55 = vpack.c.bf16 %v1437_v13, %v1436_v37 }
 0x1d7   : > { %v775_v28 = vadd.f32 %v2985_v5, %v736_v26  ;;  %v699_v29 = vmul.f32 %v2093_v32, %v2920_v63  ;;  %v2095_v15 = vpop.eup %2094  ;;  %v574_v63 = vpop.xlane.xlu0 %573  ;;  %v642_v34 = vadd.f32 1e-05, %v610_v61  ;;  %1936 = vmatpush1.bf16.msra.mxu0 %v1935_v48  ;;  %1976 = vmatpush1.bf16.msra.mxu1 %v1935_v48 }
 0x1d8   : > { %v776_v62 = vadd.f32 %v2985_v5, %v737_v54  ;;  %v700_v60 = vmul.f32 %v2095_v15, %v2879_v0  ;;  %2104 = vrsqrt.f32 %v641_v23  ;;  %v611_v42 = vmul.f32 0.0078125, %v574_v63  ;;  %v576_v0 = vpop.xlane.xlu1 %575  ;;  %1937 = vmatprep.subr.bf16.mxu0 %v2446_v56  ;;  %1961 = vmatprep.subr.bf16.mxu1 %v2446_v56 }
 0x1d9   : > { %984 = vmatmul.mubr.f32.gmra.mrb[28].mxu0 %v773_v47  ;;  %v738_v3 = vmul.f32 %v2979_v25, %v699_v29  ;;  %2106 = vrsqrt.f32 %v642_v34  ;;  %v612_v39 = vmul.f32 0.0078125, %v576_v0 }
 0x1da   : > { %989 = vmatprep.mubr.f32.mxu0 %v2445_v12  ;;  %v2097_v18 = vpop.eup %2096  ;;  %v739_v17 = vmul.f32 %v2979_v25, %v700_v60  ;;  %v643_v6 = vadd.f32 1e-05, %v611_v42 }
 0x1db   : > { %v777_v1 = vadd.f32 %v2985_v5, %v738_v3  ;;  %v701_v46 = vmul.f32 %v2097_v18, %v2925_v33  ;;  %v2099_v8 = vpop.eup %2098  ;;  %v578_v33 = vpop.xlane.xlu0 %577  ;;  %v644_v22 = vadd.f32 1e-05, %v612_v39  ;;  %1939 = vmatpush1.bf16.msra.mxu0 %v1938_v55  ;;  %1977 = vmatpush1.bf16.msra.mxu1 %v1938_v55 }
 0x1dc   : > { %v778_v31 = vadd.f32 %v2985_v5, %v739_v17  ;;  %v702_v7 = vmul.f32 %v2099_v8, %v2895_v45  ;;  %2108 = vrsqrt.f32 %v643_v6  ;;  %v613_v44 = vmul.f32 0.0078125, %v578_v33  ;;  %v580_v45 = vpop.xlane.xlu1 %579  ;;  %1940 = vmatprep.subr.bf16.mxu0 %v2446_v56  ;;  %1962 = vmatprep.subr.bf16.mxu1 %v2446_v56  ;;  %v1441_v17 = vld [vmem:[#allocation7 + $0xe8] sm:$0xff] }
 0x1dd   : > { %990 = vmatmul.mubr.f32.gmra.mrb[30].mxu0 %v774_v14  ;;  %v740_v36 = vmul.f32 %v2979_v25, %v701_v46  ;;  %2110 = vrsqrt.f32 %v644_v22 }
 0x1de   : > { %995 = vmatprep.mubr.f32.mxu0 %v2445_v12  ;;  %v2101_v19 = vpop.eup %2100  ;;  %v741_v2 = vmul.f32 %v2979_v25, %v702_v7  ;;  %v645_v41 = vadd.f32 1e-05, %v613_v44 }
 0x1df   : > { %v779_v20 = vadd.f32 %v2985_v5, %v740_v36  ;;  %v703_v59 = vmul.f32 %v2101_v19, %v2935_v38  ;;  %v2103_v43 = vpop.eup %2102  ;;  %v614_v38 = vmul.f32 0.0078125, %v580_v45  ;;  %v582_v14 = vpop.xlane.xlu0 %581  ;;  %v1443_v36 = vld [vmem:[#allocation7 + $0xf8] sm:$0xff] }
 0x1e0   : > { %v780_v50 = vadd.f32 %v2985_v5, %v741_v2  ;;  %v704_v24 = vmul.f32 %v2103_v43, %v2910_v53  ;;  %2112 = vrsqrt.f32 %v645_v41  ;;  %v615_v54 = vmul.f32 0.0078125, %v582_v14  ;;  %v584_v29 = vpop.xlane.xlu1 %583 }
 0x1e1   : > { %996 = vmatmul.mubr.f32.gmra.mrb[32].mxu0 %v775_v28  ;;  %v742_v47 = vmul.f32 %v2979_v25, %v703_v59  ;;  %v646_v28 = vadd.f32 1e-05, %v614_v38  ;;  %v616_v60 = vmul.f32 0.0078125, %v584_v29 }
 0x1e2   : > { %1001 = vmatprep.mubr.f32.mxu0 %v2445_v12  ;;  %v2105_v9 = vpop.eup %2104  ;;  %v743_v35 = vmul.f32 %v2979_v25, %v704_v24  ;;  %v647_v18 = vadd.f32 1e-05, %v615_v54  ;;  %v825_v24 = vlaneseq }
 0x1e3   : > { %v781_v26 = vadd.f32 %v2985_v5, %v742_v47  ;;  %v705_v32 = vmul.f32 %v2105_v9, %v2940_v11  ;;  %v2107_v53 = vpop.eup %2106  ;;  %2114 = vrsqrt.f32 %v646_v28  ;;  %v648_v8 = vadd.f32 1e-05, %v616_v60 }
 0x1e4   : > { %v782_v15 = vadd.f32 %v2985_v5, %v743_v35  ;;  %v706_v58 = vmul.f32 %v2107_v53, %v2928_v16  ;;  %2116 = vrsqrt.f32 %v647_v18  ;;  %v826_v9 = vshrl.u32 %v825_v24, 7 }
 0x1e5   : > { %1002 = vmatmul.mubr.f32.gmra.mrb[34].mxu0 %v776_v62  ;;  %v744_v11 = vmul.f32 %v2979_v25, %v705_v32  ;;  %v1439_v62 = vld [vmem:[#allocation7 + $0xd8] sm:$0xff]  ;;  %2118 = vrsqrt.f32 %v648_v8 }
 0x1e6   : > { %1007 = vmatprep.mubr.f32.mxu0 %v2445_v12  ;;  %v2109_v30 = vpop.eup %2108  ;;  %v1941_v3 = vpack.c.bf16 %v1439_v62, %v1438_v52  ;;  %v745_v16 = vmul.f32 %v2979_v25, %v706_v58  ;;  %v827_v4 = vsub.s32 0, %v826_v9  ;;  %v831_v27 = vsub.s32 1, %v826_v9 }
 0x1e7   : > { %v783_v61 = vadd.f32 %v2985_v5, %v744_v11  ;;  %v707_v23 = vmul.f32 %v2109_v30, %v2950_v10  ;;  %v2111_v63 = vpop.eup %2110 }
 0x1e8   : > { %1942 = vmatpush1.bf16.msra.mxu0 %v1941_v3  ;;  %1978 = vmatpush1.bf16.msra.mxu1 %v1941_v3  ;;  %v784_v34 = vadd.f32 %v2985_v5, %v745_v16  ;;  %v708_v10 = vmul.f32 %v2111_v63, %v2943_v40 }
 0x1e9   : > { %1008 = vmatmul.mubr.f32.gmra.mrb[36].mxu0 %v777_v1  ;;  %1943 = vmatprep.subr.bf16.mxu0 %v2446_v56  ;;  %v1440_v1 = vld [vmem:[#allocation7 + $0xe0] sm:$0xff]  ;;  %v746_v42 = vmul.f32 %v2979_v25, %v707_v23 }
 0x1ea   : > { %1013 = vmatprep.mubr.f32.mxu0 %v2445_v12  ;;  %1963 = vmatprep.subr.bf16.mxu1 %v2446_v56  ;;  %v1944_v46 = vpack.c.bf16 %v1441_v17, %v1440_v1  ;;  %v2113_v0 = vpop.eup %2112  ;;  %v747_v39 = vmul.f32 %v2979_v25, %v708_v10 }
 0x1eb   : > { %v785_v19 = vadd.f32 %v2985_v5, %v746_v42  ;;  %v709_v40 = vmul.f32 %v2113_v0, %v2955_v49 }
 0x1ec   : > { %1945 = vmatpush1.bf16.msra.mxu0 %v1944_v46  ;;  %1979 = vmatpush1.bf16.msra.mxu1 %v1944_v46  ;;  %v786_v33 = vadd.f32 %v2985_v5, %v747_v39 }
 0x1ed   : > { %1014 = vmatmul.mubr.f32.gmra.mrb[38].mxu0 %v778_v31  ;;  %1946 = vmatprep.subr.bf16.mxu0 %v2446_v56  ;;  %v1442_v31 = vld [vmem:[#allocation7 + $0xf0] sm:$0xff]  ;;  %v2115_v6 = vpop.eup %2114 }
 0x1ee   : > { %1019 = vmatprep.mubr.f32.mxu0 %v2445_v12  ;;  %1964 = vmatprep.subr.bf16.mxu1 %v2446_v56  ;;  %v1947_v7 = vpack.c.bf16 %v1443_v36, %v1442_v31  ;;  %v748_v56 = vmul.f32 %v2979_v25, %v709_v40  ;;  %v2117_v2 = vpop.eup %2116 }
 0x1ef   : > { %v711_v43 = vmul.f32 %v2117_v2, %v2965_v51  ;;  %v2119_v22 = vpop.eup %2118 }
 0x1f0   : > { %1948 = vmatpush1.bf16.msra.mxu0 %v1947_v7  ;;  %1980 = vmatpush1.bf16.msra.mxu1 %v1947_v7  ;;  %v787_v59 = vadd.f32 %v2985_v5, %v748_v56 }
 0x1f1   : > { %1020 = vmatmul.mubr.f32.gmra.mrb[40].mxu0 %v779_v20  ;;  %v710_v20 = vmul.f32 %v2115_v6, %v2958_v21  ;;  %v750_v45 = vmul.f32 %v2979_v25, %v711_v43  ;;  %v712_v21 = vmul.f32 %v2119_v22, %v2970_v57  ;;  %v823_v57 = vld [vmem:[%s3560_s4] sm:$0x3] }
 0x1f2   : > { %1025 = vmatprep.mubr.f32.mxu0 %v2445_v12  ;;  %v3148_v48 = vrot.slane %v823_v57, %v827_v4  ;;  %v3150_v38 = vrot.slane %v823_v57, %v831_v27 }
 0x1f3   : > { %v749_v49 = vmul.f32 %v2979_v25, %v710_v20  ;;  %v751_v47 = vmul.f32 %v2979_v25, %v712_v21 }
 0x1f5   : > { %1026 = vmatmul.mubr.f32.gmra.mrb[42].mxu0 %v780_v50  ;;  %v788_v44 = vadd.f32 %v2985_v5, %v749_v49  ;;  %v789_v50 = vadd.f32 %v2985_v5, %v750_v45  ;;  %v790_v51 = vadd.f32 %v2985_v5, %v751_v47 }
 0x1f6   : > { %1031 = vmatprep.mubr.f32.mxu0 %v2445_v12 }
 0x1f9   : > { %1032 = vmatmul.mubr.f32.gmra.mrb[44].mxu0 %v781_v26 }
 0x1fa   : > { %1037 = vmatprep.mubr.f32.mxu0 %v2445_v12 }
 0x1fd   : > { %1038 = vmatmul.mubr.f32.gmra.mrb[46].mxu0 %v782_v15 }
 0x1fe   : > { %1043 = vmatprep.mubr.f32.mxu0 %v2445_v12 }
 0x201   : > { %1044 = vmatmul.mubr.f32.gmra.mrb[48].mxu0 %v783_v61 }
 0x202   : > { %1049 = vmatprep.mubr.f32.mxu0 %v2445_v12 }
 0x205   : > { %1050 = vmatmul.mubr.f32.gmra.mrb[50].mxu0 %v784_v34 }
 0x206   : > { %1055 = vmatprep.mubr.f32.mxu0 %v2445_v12 }
 0x209   : > { %1056 = vmatmul.mubr.f32.gmra.mrb[52].mxu0 %v785_v19 }
 0x20a   : > { %1061 = vmatprep.mubr.f32.mxu0 %v2445_v12 }
 0x20d   : > { %1062 = vmatmul.mubr.f32.gmra.mrb[54].mxu0 %v786_v33 }
 0x20e   : > { %1067 = vmatprep.mubr.f32.mxu0 %v2445_v12 }
 0x211   : > { %1068 = vmatmul.mubr.f32.gmra.mrb[56].mxu0 %v787_v59 }
 0x212   : > { %1073 = vmatprep.mubr.f32.mxu0 %v2445_v12 }
 0x215   : > { %1074 = vmatmul.mubr.f32.gmra.mrb[58].mxu0 %v788_v44 }
 0x216   : > { %1079 = vmatprep.mubr.f32.mxu0 %v2445_v12 }
 0x219   : > { %1080 = vmatmul.mubr.f32.gmra.mrb[60].mxu0 %v789_v50 }
 0x21a   : > { %1085 = vmatprep.mubr.f32.mxu0 %v2445_v12 }
 0x21d   : > { %1086 = vmatmul.mubr.f32.gmra.mrb[62].mxu0 %v790_v51 }
 0x274   : > { %v901_v41 = vpop.f32.mrb[0].mxu0 }
 0x275   : > { %v902_v25 = vadd.f32 %v901_v41, %v3148_v48  ;;  %v903_v14 = vpop.f32.mrb[1].mxu0 }
 0x276   : > { %v904_v12 = vadd.f32 %v903_v14, %v3150_v38 }
 0x277   : > { %v1156_v5 = vmul.f32 0.70710677, %v902_v25  ;;  %v1092_v34 = vmul.f32 0.5, %v902_v25 }
 0x278   : > { %v1157_v26 = vmul.f32 0.70710677, %v904_v12  ;;  %v907_v35 = vpop.f32.mrb[2].mxu0  ;;  %v1093_v1 = vmul.f32 0.5, %v904_v12 }
 0x279   : > { %2120 = verf.f32 %v1156_v5  ;;  %v908_v32 = vadd.f32 %v907_v35, %v3148_v48  ;;  %v909_v53 = vpop.f32.mrb[3].mxu0 }
 0x27a   : > { %2122 = verf.f32 %v1157_v26  ;;  %v910_v37 = vadd.f32 %v909_v53, %v3150_v38 }
 0x27b   : > { %v1158_v13 = vmul.f32 0.70710677, %v908_v32  ;;  %v1094_v2 = vmul.f32 0.5, %v908_v32 }
 0x27c   : > { %v1159_v55 = vmul.f32 0.70710677, %v910_v37  ;;  %v913_v28 = vpop.f32.mrb[4].mxu0  ;;  %v1095_v6 = vmul.f32 0.5, %v910_v37 }
 0x27d   : > { %2124 = verf.f32 %v1158_v13  ;;  %v914_v54 = vadd.f32 %v913_v28, %v3148_v48  ;;  %v915_v29 = vpop.f32.mrb[5].mxu0 }
 0x27e   : > { %2126 = verf.f32 %v1159_v55  ;;  %v916_v15 = vadd.f32 %v915_v29, %v3150_v38 }
 0x27f   : > { %v1160_v11 = vmul.f32 0.70710677, %v914_v54  ;;  %v1096_v9 = vmul.f32 0.5, %v914_v54 }
 0x280   : > { %v1161_v58 = vmul.f32 0.70710677, %v916_v15  ;;  %v919_v30 = vpop.f32.mrb[6].mxu0  ;;  %v1097_v47 = vmul.f32 0.5, %v916_v15 }
 0x281   : > { %2128 = verf.f32 %v1160_v11  ;;  %v3159_v52 = vadd.f32 %v919_v30, %v3148_v48  ;;  %v921_v62 = vpop.f32.mrb[7].mxu0 }
 0x282   : > { %2130 = verf.f32 %v1161_v58  ;;  %v922_v3 = vadd.f32 %v921_v62, %v3150_v38 }
 0x283   : > { %v2121_v60 = vpop.eup %2120  ;;  %v1162_v18 = vmul.f32 0.70710677, %v3159_v52  ;;  %v1098_v37 = vmul.f32 0.5, %v3159_v52 }
 0x284   : > { %v2123_v61 = vpop.eup %2122  ;;  %v1284_v16 = vadd.f32 1.0, %v2121_v60  ;;  %v1163_v23 = vmul.f32 0.70710677, %v922_v3  ;;  %v925_v63 = vpop.f32.mrb[8].mxu0  ;;  %v1099_v35 = vmul.f32 0.5, %v922_v3 }
 0x285   : > { %v1285_v17 = vadd.f32 1.0, %v2123_v61  ;;  %2132 = verf.f32 %v1162_v18  ;;  %v3164_v46 = vadd.f32 %v925_v63, %v3148_v48  ;;  %v927_v8 = vpop.f32.mrb[9].mxu0 }
 0x286   : > { %2134 = verf.f32 %v1163_v23  ;;  %v928_v42 = vadd.f32 %v927_v8, %v3150_v38  ;;  %v1348_v7 = vmul.f32 %v1284_v16, %v1092_v34 }
 0x287   : > { %v2125_v10 = vpop.eup %2124  ;;  %v1164_v0 = vmul.f32 0.70710677, %v3164_v46  ;;  %v1349_v31 = vmul.f32 %v1285_v17, %v1093_v1  ;;  %v1100_v60 = vmul.f32 0.5, %v3164_v46 }
 0x288   : > { %v2127_v36 = vpop.eup %2126  ;;  %v1286_v19 = vadd.f32 1.0, %v2125_v10  ;;  %v1165_v39 = vmul.f32 0.70710677, %v928_v42  ;;  %v931_v40 = vpop.f32.mrb[10].mxu0  ;;  %v1101_v3 = vmul.f32 0.5, %v928_v42 }
 0x289   : > { %v1287_v33 = vadd.f32 1.0, %v2127_v36  ;;  %2136 = verf.f32 %v1164_v0  ;;  %v3169_v56 = vadd.f32 %v931_v40, %v3148_v48  ;;  %v933_v20 = vpop.f32.mrb[11].mxu0  ;;  %1515 = vmatprep.mubr.f32.mxu0 %v1349_v31 }
 0x28a   : > { %2138 = verf.f32 %v1165_v39  ;;  %v934_v59 = vadd.f32 %v933_v20, %v3150_v38  ;;  %1516 = vmatmul.mubr.f32.vlgmr.msra.gmra.mrb[64].mxu0 %v1348_v7  ;;  %v1350_v50 = vmul.f32 %v1286_v19, %v1094_v2 }
 0x28b   : > { %v2129_v49 = vpop.eup %2128  ;;  %v1166_v43 = vmul.f32 0.70710677, %v3169_v56  ;;  %v1351_v22 = vmul.f32 %v1287_v33, %v1095_v6  ;;  %v1102_v31 = vmul.f32 0.5, %v3169_v56 }
 0x28c   : > { %v2131_v44 = vpop.eup %2130  ;;  %v1288_v45 = vadd.f32 1.0, %v2129_v49  ;;  %v1167_v21 = vmul.f32 0.70710677, %v934_v59  ;;  %v937_v24 = vpop.f32.mrb[12].mxu0  ;;  %v1103_v42 = vmul.f32 0.5, %v934_v59 }
 0x28d   : > { %v1289_v51 = vadd.f32 1.0, %v2131_v44  ;;  %2140 = verf.f32 %v1166_v43  ;;  %1520 = vmatprep.mubr.f32.mxu0 %v1351_v22  ;;  %v3174_v4 = vadd.f32 %v937_v24, %v3148_v48  ;;  %v939_v57 = vpop.f32.mrb[13].mxu0 }
 0x28e   : > { %2142 = verf.f32 %v1167_v21  ;;  %1521 = vmatmul.mubr.f32.gmra.mrb[66].mxu0 %v1350_v50  ;;  %v940_v41 = vadd.f32 %v939_v57, %v3150_v38  ;;  %v1352_v26 = vmul.f32 %v1288_v45, %v1096_v9 }
 0x28f   : > { %v2133_v27 = vpop.eup %2132  ;;  %v1353_v25 = vmul.f32 %v1289_v51, %v1097_v47  ;;  %v1168_v5 = vmul.f32 0.70710677, %v3174_v4  ;;  %v1104_v45 = vmul.f32 0.5, %v3174_v4 }
 0x290   : > { %v2135_v14 = vpop.eup %2134  ;;  %v1290_v12 = vadd.f32 1.0, %v2133_v27  ;;  %v1169_v53 = vmul.f32 0.70710677, %v940_v41  ;;  %v943_v13 = vpop.f32.mrb[14].mxu0  ;;  %v1105_v56 = vmul.f32 0.5, %v940_v41 }
 0x291   : > { %v1291_v32 = vadd.f32 1.0, %v2135_v14  ;;  %1525 = vmatprep.mubr.f32.mxu0 %v1353_v25  ;;  %2144 = verf.f32 %v1168_v5  ;;  %v3180_v28 = vadd.f32 %v943_v13, %v3148_v48  ;;  %v945_v54 = vpop.f32.mrb[15].mxu0 }
 0x292   : > { %1526 = vmatmul.mubr.f32.gmra.mrb[68].mxu0 %v1352_v26  ;;  %2146 = verf.f32 %v1169_v53  ;;  %v946_v58 = vadd.f32 %v945_v54, %v3150_v38  ;;  %v1354_v30 = vmul.f32 %v1290_v12, %v1098_v37 }
 0x293   : > { %v2137_v55 = vpop.eup %2136  ;;  %v1355_v29 = vmul.f32 %v1291_v32, %v1099_v35  ;;  %v1170_v62 = vmul.f32 0.70710677, %v3180_v28  ;;  %v1106_v35 = vmul.f32 0.5, %v3180_v28 }
 0x294   : > { %v2139_v15 = vpop.eup %2138  ;;  %v1292_v11 = vadd.f32 1.0, %v2137_v55  ;;  %v1171_v18 = vmul.f32 0.70710677, %v946_v58  ;;  %v949_v61 = vpop.f32.mrb[16].mxu0  ;;  %v1107_v4 = vmul.f32 0.5, %v946_v58 }
 0x295   : > { %1530 = vmatprep.mubr.f32.mxu0 %v1355_v29  ;;  %v1293_v52 = vadd.f32 1.0, %v2139_v15  ;;  %2148 = verf.f32 %v1170_v62  ;;  %v3186_v23 = vadd.f32 %v949_v61, %v3148_v48  ;;  %v951_v63 = vpop.f32.mrb[17].mxu0 }
 0x296   : > { %1531 = vmatmul.mubr.f32.gmra.mrb[70].mxu0 %v1354_v30  ;;  %2150 = verf.f32 %v1171_v18  ;;  %v952_v34 = vadd.f32 %v951_v63, %v3150_v38  ;;  %v1356_v10 = vmul.f32 %v1292_v11, %v1100_v60 }
 0x297   : > { %v2141_v16 = vpop.eup %2140  ;;  %v1357_v1 = vmul.f32 %v1293_v52, %v1101_v3  ;;  %v1172_v46 = vmul.f32 0.70710677, %v3186_v23  ;;  %v1108_v3 = vmul.f32 0.5, %v3186_v23 }
 0x298   : > { %v2143_v17 = vpop.eup %2142  ;;  %v1294_v8 = vadd.f32 1.0, %v2141_v16  ;;  %v1173_v36 = vmul.f32 0.70710677, %v952_v34  ;;  %v955_v7 = vpop.f32.mrb[18].mxu0  ;;  %v1109_v58 = vmul.f32 0.5, %v952_v34 }
 0x299   : > { %v1295_v0 = vadd.f32 1.0, %v2143_v17  ;;  %1535 = vmatprep.mubr.f32.mxu1 %v1357_v1  ;;  %2152 = verf.f32 %v1172_v46  ;;  %v3192_v19 = vadd.f32 %v955_v7, %v3148_v48  ;;  %v957_v39 = vpop.f32.mrb[19].mxu0 }
 0x29a   : > { %1536 = vmatmul.mubr.f32.vlgmr.msra.gmra.mrb[0].mxu1 %v1356_v10  ;;  %2154 = verf.f32 %v1173_v36  ;;  %v958_v33 = vadd.f32 %v957_v39, %v3150_v38  ;;  %v1358_v20 = vmul.f32 %v1294_v8, %v1102_v31 }
 0x29b   : > { %v1359_v40 = vmul.f32 %v1295_v0, %v1103_v42  ;;  %v2145_v6 = vpop.eup %2144  ;;  %v1174_v49 = vmul.f32 0.70710677, %v3192_v19  ;;  %v1110_v0 = vmul.f32 0.5, %v3192_v19 }
 0x29c   : > { %v2147_v2 = vpop.eup %2146  ;;  %v1296_v59 = vadd.f32 1.0, %v2145_v6  ;;  %v1175_v22 = vmul.f32 0.70710677, %v958_v33  ;;  %v961_v44 = vpop.f32.mrb[20].mxu0  ;;  %v1111_v34 = vmul.f32 0.5, %v958_v33 }
 0x29d   : > { %1540 = vmatprep.mubr.f32.mxu1 %v1359_v40  ;;  %v1297_v43 = vadd.f32 1.0, %v2147_v2  ;;  %2156 = verf.f32 %v1174_v49  ;;  %v3198_v21 = vadd.f32 %v961_v44, %v3148_v48  ;;  %v963_v50 = vpop.f32.mrb[21].mxu0 }
 0x29e   : > { %1541 = vmatmul.mubr.f32.gmra.mrb[2].mxu1 %v1358_v20  ;;  %2158 = verf.f32 %v1175_v22  ;;  %v3201_v47 = vadd.f32 %v963_v50, %v3150_v38  ;;  %v1360_v57 = vmul.f32 %v1296_v59, %v1104_v45 }
 0x29f   : > { %v1361_v51 = vmul.f32 %v1297_v43, %v1105_v56  ;;  %v2149_v24 = vpop.eup %2148  ;;  %v1176_v9 = vmul.f32 0.70710677, %v3198_v21  ;;  %v1112_v56 = vmul.f32 0.5, %v3198_v21 }
 0x2a0   : > { %v2151_v27 = vpop.eup %2150  ;;  %v1298_v41 = vadd.f32 1.0, %v2149_v24  ;;  %v1177_v25 = vmul.f32 0.70710677, %v3201_v47  ;;  %v967_v14 = vpop.f32.mrb[22].mxu0  ;;  %v1113_v2 = vmul.f32 0.5, %v3201_v47 }
 0x2a1   : > { %1545 = vmatprep.mubr.f32.mxu1 %v1361_v51  ;;  %v1299_v12 = vadd.f32 1.0, %v2151_v27  ;;  %2160 = verf.f32 %v1176_v9  ;;  %v3206_v5 = vadd.f32 %v967_v14, %v3148_v48  ;;  %v969_v26 = vpop.f32.mrb[23].mxu0 }
 0x2a2   : > { %1546 = vmatmul.mubr.f32.gmra.mrb[4].mxu1 %v1360_v57  ;;  %2162 = verf.f32 %v1177_v25  ;;  %v3210_v32 = vadd.f32 %v969_v26, %v3150_v38  ;;  %v1362_v11 = vmul.f32 %v1298_v41, %v1106_v35 }
 0x2a3   : > { %v2153_v53 = vpop.eup %2152  ;;  %v1178_v37 = vmul.f32 0.70710677, %v3206_v5  ;;  %v1363_v13 = vmul.f32 %v1299_v12, %v1107_v4  ;;  %v1114_v25 = vmul.f32 0.5, %v3206_v5 }
 0x2a4   : > { %v2155_v55 = vpop.eup %2154  ;;  %v1300_v54 = vadd.f32 1.0, %v2153_v53  ;;  %v1179_v29 = vmul.f32 0.70710677, %v3210_v32  ;;  %v973_v15 = vpop.f32.mrb[24].mxu0  ;;  %v1115_v57 = vmul.f32 0.5, %v3210_v32 }
 0x2a5   : > { %v1301_v30 = vadd.f32 1.0, %v2155_v55  ;;  %2164 = verf.f32 %v1178_v37  ;;  %v3215_v62 = vadd.f32 %v973_v15, %v3148_v48  ;;  %v975_v28 = vpop.f32.mrb[25].mxu0  ;;  %1550 = vmatprep.mubr.f32.mxu1 %v1363_v13 }
 0x2a6   : > { %2166 = verf.f32 %v1179_v29  ;;  %v3219_v52 = vadd.f32 %v975_v28, %v3150_v38  ;;  %1551 = vmatmul.mubr.f32.gmra.mrb[6].mxu1 %v1362_v11  ;;  %v1364_v8 = vmul.f32 %v1300_v54, %v1108_v3 }
 0x2a7   : > { %v2157_v60 = vpop.eup %2156  ;;  %v1180_v18 = vmul.f32 0.70710677, %v3215_v62  ;;  %v1365_v61 = vmul.f32 %v1301_v30, %v1109_v58  ;;  %v1116_v15 = vmul.f32 0.5, %v3215_v62 }
 0x2a8   : > { %v2159_v16 = vpop.eup %2158  ;;  %v1302_v63 = vadd.f32 1.0, %v2157_v60  ;;  %v1181_v1 = vmul.f32 0.70710677, %v3219_v52  ;;  %v979_v17 = vpop.f32.mrb[26].mxu0  ;;  %v1117_v55 = vmul.f32 0.5, %v3219_v52 }
 0x2a9   : > { %v1303_v10 = vadd.f32 1.0, %v2159_v16  ;;  %2168 = verf.f32 %v1180_v18  ;;  %v3224_v23 = vadd.f32 %v979_v17, %v3148_v48  ;;  %v981_v42 = vpop.f32.mrb[27].mxu0  ;;  %1555 = vmatprep.mubr.f32.mxu1 %v1365_v61 }
 0x2aa   : > { %2170 = verf.f32 %v1181_v1  ;;  %v3228_v46 = vadd.f32 %v981_v42, %v3150_v38  ;;  %1556 = vmatmul.mubr.f32.gmra.mrb[8].mxu1 %v1364_v8  ;;  %v1366_v20 = vmul.f32 %v1302_v63, %v1110_v0 }
 0x2ab   : > { %v2161_v31 = vpop.eup %2160  ;;  %v1182_v36 = vmul.f32 0.70710677, %v3224_v23  ;;  %v1367_v7 = vmul.f32 %v1303_v10, %v1111_v34  ;;  %v1118_v17 = vmul.f32 0.5, %v3224_v23 }
 0x2ac   : > { %v2163_v39 = vpop.eup %2162  ;;  %v1304_v40 = vadd.f32 1.0, %v2161_v31  ;;  %v1183_v6 = vmul.f32 0.70710677, %v3228_v46  ;;  %v985_v33 = vpop.f32.mrb[28].mxu0  ;;  %v1119_v16 = vmul.f32 0.5, %v3228_v46 }
 0x2ad   : > { %v1305_v59 = vadd.f32 1.0, %v2163_v39  ;;  %2172 = verf.f32 %v1182_v36  ;;  %v3234_v19 = vadd.f32 %v985_v33, %v3148_v48  ;;  %v987_v49 = vpop.f32.mrb[29].mxu0  ;;  %1560 = vmatprep.mubr.f32.mxu1 %v1367_v7 }
 0x2ae   : > { %2174 = verf.f32 %v1183_v6  ;;  %v3238_v43 = vadd.f32 %v987_v49, %v3150_v38  ;;  %1561 = vmatmul.mubr.f32.gmra.mrb[10].mxu1 %v1366_v20  ;;  %v1368_v9 = vmul.f32 %v1304_v40, %v1112_v56 }
 0x2af   : > { %v2165_v22 = vpop.eup %2164  ;;  %v1184_v44 = vmul.f32 0.70710677, %v3234_v19  ;;  %v1369_v45 = vmul.f32 %v1305_v59, %v1113_v2  ;;  %v1120_v33 = vmul.f32 0.5, %v3234_v19 }
 0x2b0   : > { %v2167_v50 = vpop.eup %2166  ;;  %v1306_v47 = vadd.f32 1.0, %v2165_v22  ;;  %v1185_v51 = vmul.f32 0.70710677, %v3238_v43  ;;  %v991_v24 = vpop.f32.mrb[30].mxu0  ;;  %v1121_v39 = vmul.f32 0.5, %v3238_v43 }
 0x2b1   : > { %v1307_v27 = vadd.f32 1.0, %v2167_v50  ;;  %2176 = verf.f32 %v1184_v44  ;;  %v3244_v21 = vadd.f32 %v991_v24, %v3148_v48  ;;  %v993_v41 = vpop.f32.mrb[31].mxu0  ;;  %1565 = vmatprep.mubr.f32.mxu1 %v1369_v45 }
 0x2b2   : > { %2178 = verf.f32 %v1185_v51  ;;  %v3248_v14 = vadd.f32 %v993_v41, %v3150_v38  ;;  %1566 = vmatmul.mubr.f32.gmra.mrb[12].mxu1 %v1368_v9  ;;  %v1370_v13 = vmul.f32 %v1306_v47, %v1114_v25 }
 0x2b3   : > { %v2169_v4 = vpop.eup %2168  ;;  %v1186_v12 = vmul.f32 0.70710677, %v3244_v21  ;;  %v1371_v26 = vmul.f32 %v1307_v27, %v1115_v57  ;;  %v1122_v24 = vmul.f32 0.5, %v3244_v21 }
 0x2b4   : > { %v2171_v35 = vpop.eup %2170  ;;  %v1308_v32 = vadd.f32 1.0, %v2169_v4  ;;  %v1187_v53 = vmul.f32 0.70710677, %v3248_v14  ;;  %v997_v37 = vpop.f32.mrb[32].mxu0  ;;  %v1123_v50 = vmul.f32 0.5, %v3248_v14 }
 0x2b5   : > { %v1309_v54 = vadd.f32 1.0, %v2171_v35  ;;  %2180 = verf.f32 %v1186_v12  ;;  %v3254_v5 = vadd.f32 %v997_v37, %v3148_v48  ;;  %v999_v29 = vpop.f32.mrb[33].mxu0  ;;  %1570 = vmatprep.mubr.f32.mxu1 %v1371_v26 }
 0x2b6   : > { %2182 = verf.f32 %v1187_v53  ;;  %v3258_v11 = vadd.f32 %v999_v29, %v3150_v38  ;;  %1571 = vmatmul.mubr.f32.gmra.mrb[14].mxu1 %v1370_v13  ;;  %v1372_v61 = vmul.f32 %v1308_v32, %v1116_v15 }
 0x2b7   : > { %v2173_v58 = vpop.eup %2172  ;;  %v1188_v30 = vmul.f32 0.70710677, %v3254_v5  ;;  %v1373_v28 = vmul.f32 %v1309_v54, %v1117_v55  ;;  %v1124_v37 = vmul.f32 0.5, %v3254_v5 }
 0x2b8   : > { %v2175_v3 = vpop.eup %2174  ;;  %v1310_v52 = vadd.f32 1.0, %v2173_v58  ;;  %v1189_v60 = vmul.f32 0.70710677, %v3258_v11  ;;  %v1003_v18 = vpop.f32.mrb[34].mxu0  ;;  %v1125_v35 = vmul.f32 0.5, %v3258_v11 }
 0x2b9   : > { %v1311_v63 = vadd.f32 1.0, %v2175_v3  ;;  %2184 = verf.f32 %v1188_v30  ;;  %v3264_v62 = vadd.f32 %v1003_v18, %v3148_v48  ;;  %v1005_v1 = vpop.f32.mrb[35].mxu0  ;;  %1575 = vmatprep.mubr.f32.mxu1 %v1373_v28 }
 0x2ba   : > { %2186 = verf.f32 %v1189_v60  ;;  %v3268_v8 = vadd.f32 %v1005_v1, %v3150_v38  ;;  %1576 = vmatmul.mubr.f32.gmra.mrb[16].mxu1 %v1372_v61  ;;  %v1374_v7 = vmul.f32 %v1310_v52, %v1118_v17 }
 0x2bb   : > { %v2177_v34 = vpop.eup %2176  ;;  %v1190_v10 = vmul.f32 0.70710677, %v3264_v62  ;;  %v1375_v42 = vmul.f32 %v1311_v63, %v1119_v16  ;;  %v1126_v18 = vmul.f32 0.5, %v3264_v62 }
 0x2bc   : > { %v2179_v0 = vpop.eup %2178  ;;  %v1312_v46 = vadd.f32 1.0, %v2177_v34  ;;  %v1191_v31 = vmul.f32 0.70710677, %v3268_v8  ;;  %v1009_v36 = vpop.f32.mrb[36].mxu0  ;;  %v1127_v3 = vmul.f32 0.5, %v3268_v8 }
 0x2bd   : > { %v1313_v40 = vadd.f32 1.0, %v2179_v0  ;;  %2188 = verf.f32 %v1190_v10  ;;  %v3274_v23 = vadd.f32 %v1009_v36, %v3148_v48  ;;  %v1011_v6 = vpop.f32.mrb[37].mxu0  ;;  %1580 = vmatprep.mubr.f32.mxu1 %v1375_v42 }
 0x2be   : > { %2190 = verf.f32 %v1191_v31  ;;  %v3278_v20 = vadd.f32 %v1011_v6, %v3150_v38  ;;  %1581 = vmatmul.mubr.f32.gmra.mrb[18].mxu1 %v1374_v7  ;;  %v1376_v45 = vmul.f32 %v1312_v46, %v1120_v33 }
 0x2bf   : > { %v2181_v2 = vpop.eup %2180  ;;  %v1192_v59 = vmul.f32 0.70710677, %v3274_v23  ;;  %v1377_v49 = vmul.f32 %v1313_v40, %v1121_v39  ;;  %v1128_v36 = vmul.f32 0.5, %v3274_v23 }
 0x2c0   : > { %v2183_v56 = vpop.eup %2182  ;;  %v1314_v43 = vadd.f32 1.0, %v2181_v2  ;;  %v1193_v22 = vmul.f32 0.70710677, %v3278_v20  ;;  %v1015_v44 = vpop.f32.mrb[38].mxu0  ;;  %v1129_v0 = vmul.f32 0.5, %v3278_v20 }
 0x2c1   : > { %v1315_v47 = vadd.f32 1.0, %v2183_v56  ;;  %2192 = verf.f32 %v1192_v59  ;;  %v3284_v19 = vadd.f32 %v1015_v44, %v3148_v48  ;;  %v1017_v51 = vpop.f32.mrb[39].mxu0  ;;  %1585 = vmatprep.mubr.f32.mxu1 %v1377_v49 }
 0x2c2   : > { %2194 = verf.f32 %v1193_v22  ;;  %v3288_v9 = vadd.f32 %v1017_v51, %v3150_v38  ;;  %1586 = vmatmul.mubr.f32.gmra.mrb[20].mxu1 %v1376_v45  ;;  %v1378_v26 = vmul.f32 %v1314_v43, %v1122_v24 }
 0x2c3   : > { %v2185_v57 = vpop.eup %2184  ;;  %v1194_v27 = vmul.f32 0.70710677, %v3284_v19  ;;  %v1379_v41 = vmul.f32 %v1315_v47, %v1123_v50  ;;  %v1130_v44 = vmul.f32 0.5, %v3284_v19 }
 0x2c4   : > { %v2187_v25 = vpop.eup %2186  ;;  %v1316_v14 = vadd.f32 1.0, %v2185_v57  ;;  %v1195_v4 = vmul.f32 0.70710677, %v3288_v9  ;;  %v1021_v12 = vpop.f32.mrb[40].mxu0  ;;  %v1131_v56 = vmul.f32 0.5, %v3288_v9 }
 0x2c5   : > { %v1317_v32 = vadd.f32 1.0, %v2187_v25  ;;  %2196 = verf.f32 %v1194_v27  ;;  %v3294_v21 = vadd.f32 %v1021_v12, %v3148_v48  ;;  %v1023_v53 = vpop.f32.mrb[41].mxu0  ;;  %1590 = vmatprep.mubr.f32.mxu1 %v1379_v41 }
 0x2c6   : > { %2198 = verf.f32 %v1195_v4  ;;  %v3298_v13 = vadd.f32 %v1023_v53, %v3150_v38  ;;  %1591 = vmatmul.mubr.f32.gmra.mrb[22].mxu1 %v1378_v26  ;;  %v1380_v28 = vmul.f32 %v1316_v14, %v1124_v37 }
 0x2c7   : > { %v2189_v55 = vpop.eup %2188  ;;  %v1196_v54 = vmul.f32 0.70710677, %v3294_v21  ;;  %v1381_v29 = vmul.f32 %v1317_v32, %v1125_v35  ;;  %v1132_v12 = vmul.f32 0.5, %v3294_v21 }
 0x2c8   : > { %v2191_v15 = vpop.eup %2190  ;;  %v1318_v11 = vadd.f32 1.0, %v2189_v55  ;;  %v1197_v58 = vmul.f32 0.70710677, %v3298_v13  ;;  %v1027_v30 = vpop.f32.mrb[42].mxu0  ;;  %v1133_v25 = vmul.f32 0.5, %v3298_v13 }
 0x2c9   : > { %v1319_v52 = vadd.f32 1.0, %v2191_v15  ;;  %2200 = verf.f32 %v1196_v54  ;;  %v3304_v5 = vadd.f32 %v1027_v30, %v3148_v48  ;;  %v1029_v60 = vpop.f32.mrb[43].mxu0  ;;  %1595 = vmatprep.mubr.f32.mxu1 %v1381_v29 }
 0x2ca   : > { %2202 = verf.f32 %v1197_v58  ;;  %v3308_v61 = vadd.f32 %v1029_v60, %v3150_v38  ;;  %1596 = vmatmul.mubr.f32.gmra.mrb[24].mxu1 %v1380_v28  ;;  %v1382_v42 = vmul.f32 %v1318_v11, %v1126_v18 }
 0x2cb   : > { %v2193_v16 = vpop.eup %2192  ;;  %v1198_v63 = vmul.f32 0.70710677, %v3304_v5  ;;  %v1383_v1 = vmul.f32 %v1319_v52, %v1127_v3  ;;  %v1134_v30 = vmul.f32 0.5, %v3304_v5 }
 0x2cc   : > { %v2195_v17 = vpop.eup %2194  ;;  %v1320_v8 = vadd.f32 1.0, %v2193_v16  ;;  %v1199_v34 = vmul.f32 0.70710677, %v3308_v61  ;;  %v1033_v10 = vpop.f32.mrb[44].mxu0  ;;  %v1135_v15 = vmul.f32 0.5, %v3308_v61 }
 0x2cd   : > { %v1321_v46 = vadd.f32 1.0, %v2195_v17  ;;  %2204 = verf.f32 %v1198_v63  ;;  %v3314_v62 = vadd.f32 %v1033_v10, %v3148_v48  ;;  %v1035_v31 = vpop.f32.mrb[45].mxu0  ;;  %1600 = vmatprep.mubr.f32.mxu1 %v1383_v1 }
 0x2ce   : > { %2206 = verf.f32 %v1199_v34  ;;  %v3318_v7 = vadd.f32 %v1035_v31, %v3150_v38  ;;  %1601 = vmatmul.mubr.f32.gmra.mrb[26].mxu1 %v1382_v42  ;;  %v1384_v49 = vmul.f32 %v1320_v8, %v1128_v36 }
 0x2cf   : > { %v2197_v39 = vpop.eup %2196  ;;  %v1200_v40 = vmul.f32 0.70710677, %v3314_v62  ;;  %v1385_v6 = vmul.f32 %v1321_v46, %v1129_v0  ;;  %v1136_v10 = vmul.f32 0.5, %v3314_v62 }
 0x2d0   : > { %v2199_v33 = vpop.eup %2198  ;;  %v1322_v20 = vadd.f32 1.0, %v2197_v39  ;;  %v1201_v2 = vmul.f32 0.70710677, %v3318_v7  ;;  %v1039_v59 = vpop.f32.mrb[46].mxu0  ;;  %v1137_v17 = vmul.f32 0.5, %v3318_v7 }
 0x2d1   : > { %v1323_v43 = vadd.f32 1.0, %v2199_v33  ;;  %2208 = verf.f32 %v1200_v40  ;;  %v3324_v23 = vadd.f32 %v1039_v59, %v3148_v48  ;;  %v1041_v22 = vpop.f32.mrb[47].mxu0  ;;  %1605 = vmatprep.mubr.f32.mxu1 %v1385_v6 }
 0x2d2   : > { %2210 = verf.f32 %v1201_v2  ;;  %v3328_v45 = vadd.f32 %v1041_v22, %v3150_v38  ;;  %1606 = vmatmul.mubr.f32.gmra.mrb[28].mxu1 %v1384_v49  ;;  %v1386_v41 = vmul.f32 %v1322_v20, %v1130_v44 }
 0x2d3   : > { %v2201_v50 = vpop.eup %2200  ;;  %v1202_v47 = vmul.f32 0.70710677, %v3324_v23  ;;  %v1387_v51 = vmul.f32 %v1323_v43, %v1131_v56  ;;  %v1138_v59 = vmul.f32 0.5, %v3324_v23 }
 0x2d4   : > { %v2203_v24 = vpop.eup %2202  ;;  %v1324_v9 = vadd.f32 1.0, %v2201_v50  ;;  %v1203_v57 = vmul.f32 0.70710677, %v3328_v45  ;;  %v1045_v27 = vpop.f32.mrb[48].mxu0  ;;  %v1139_v33 = vmul.f32 0.5, %v3328_v45 }
 0x2d5   : > { %v1325_v14 = vadd.f32 1.0, %v2203_v24  ;;  %2212 = verf.f32 %v1202_v47  ;;  %v3334_v19 = vadd.f32 %v1045_v27, %v3148_v48  ;;  %v1047_v4 = vpop.f32.mrb[49].mxu0  ;;  %1610 = vmatprep.mubr.f32.mxu1 %v1387_v51 }
 0x2d6   : > { %2214 = verf.f32 %v1203_v57  ;;  %v3338_v26 = vadd.f32 %v1047_v4, %v3150_v38  ;;  %1611 = vmatmul.mubr.f32.gmra.mrb[30].mxu1 %v1386_v41  ;;  %v1388_v29 = vmul.f32 %v1324_v9, %v1132_v12 }
 0x2d7   : > { %v2205_v35 = vpop.eup %2204  ;;  %v1204_v32 = vmul.f32 0.70710677, %v3334_v19  ;;  %v1389_v53 = vmul.f32 %v1325_v14, %v1133_v25  ;;  %v1140_v27 = vmul.f32 0.5, %v3334_v19 }
 0x2d8   : > { %v2207_v37 = vpop.eup %2206  ;;  %v1326_v13 = vadd.f32 1.0, %v2205_v35  ;;  %v1205_v55 = vmul.f32 0.70710677, %v3338_v26  ;;  %v1051_v54 = vpop.f32.mrb[50].mxu0  ;;  %v1141_v24 = vmul.f32 0.5, %v3338_v26 }
 0x2d9   : > { %v1327_v11 = vadd.f32 1.0, %v2207_v37  ;;  %2216 = verf.f32 %v1204_v32  ;;  %v3344_v21 = vadd.f32 %v1051_v54, %v3148_v48  ;;  %v1053_v58 = vpop.f32.mrb[51].mxu0  ;;  %1615 = vmatprep.mubr.f32.mxu1 %v1389_v53 }
 0x2da   : > { %2218 = verf.f32 %v1205_v55  ;;  %v3348_v28 = vadd.f32 %v1053_v58, %v3150_v38  ;;  %1616 = vmatmul.mubr.f32.gmra.mrb[32].mxu1 %v1388_v29  ;;  %v1390_v1 = vmul.f32 %v1326_v13, %v1134_v30 }
 0x2db   : > { %v2209_v3 = vpop.eup %2208  ;;  %v1206_v52 = vmul.f32 0.70710677, %v3344_v21  ;;  %v1391_v60 = vmul.f32 %v1327_v11, %v1135_v15  ;;  %v1142_v54 = vmul.f32 0.5, %v3344_v21 }
 0x2dc   : > { %v2211_v18 = vpop.eup %2210  ;;  %v1328_v61 = vadd.f32 1.0, %v2209_v3  ;;  %v1207_v16 = vmul.f32 0.70710677, %v3348_v28  ;;  %v1057_v63 = vpop.f32.mrb[52].mxu0  ;;  %v1143_v37 = vmul.f32 0.5, %v3348_v28 }
 0x2dd   : > { %v1329_v8 = vadd.f32 1.0, %v2211_v18  ;;  %2220 = verf.f32 %v1206_v52  ;;  %v3354_v5 = vadd.f32 %v1057_v63, %v3148_v48  ;;  %v1059_v34 = vpop.f32.mrb[53].mxu0  ;;  %1620 = vmatprep.mubr.f32.mxu1 %v1391_v60 }
 0x2de   : > { %2222 = verf.f32 %v1207_v16  ;;  %v3358_v42 = vadd.f32 %v1059_v34, %v3150_v38  ;;  %1621 = vmatmul.mubr.f32.gmra.mrb[34].mxu1 %v1390_v1  ;;  %v1392_v6 = vmul.f32 %v1328_v61, %v1136_v10 }
 0x2df   : > { %v2213_v0 = vpop.eup %2212  ;;  %v1208_v46 = vmul.f32 0.70710677, %v3354_v5  ;;  %v1393_v31 = vmul.f32 %v1329_v8, %v1137_v17  ;;  %v1144_v63 = vmul.f32 0.5, %v3354_v5 }
 0x2e0   : > { %v2215_v36 = vpop.eup %2214  ;;  %v1330_v7 = vadd.f32 1.0, %v2213_v0  ;;  %v1209_v39 = vmul.f32 0.70710677, %v3358_v42  ;;  %v1063_v40 = vpop.f32.mrb[54].mxu0  ;;  %v1145_v18 = vmul.f32 0.5, %v3358_v42 }
 0x2e1   : > { %v1331_v20 = vadd.f32 1.0, %v2215_v36  ;;  %2224 = verf.f32 %v1208_v46  ;;  %v3364_v62 = vadd.f32 %v1063_v40, %v3148_v48  ;;  %v1065_v2 = vpop.f32.mrb[55].mxu0  ;;  %1625 = vmatprep.mubr.f32.mxu1 %v1393_v31 }
 0x2e2   : > { %2226 = verf.f32 %v1209_v39  ;;  %v3368_v49 = vadd.f32 %v1065_v2, %v3150_v38  ;;  %1626 = vmatmul.mubr.f32.gmra.mrb[36].mxu1 %v1392_v6  ;;  %v1394_v51 = vmul.f32 %v1330_v7, %v1138_v59 }
 0x2e3   : > { %v2217_v56 = vpop.eup %2216  ;;  %v1210_v43 = vmul.f32 0.70710677, %v3364_v62  ;;  %v1395_v22 = vmul.f32 %v1331_v20, %v1139_v33  ;;  %v1146_v5 = vmul.f32 0.5, %v3364_v62 }
 0x2e4   : > { %v2219_v44 = vpop.eup %2218  ;;  %v1332_v45 = vadd.f32 1.0, %v2217_v56  ;;  %v1211_v50 = vmul.f32 0.70710677, %v3368_v49  ;;  %v1069_v47 = vpop.f32.mrb[56].mxu0  ;;  %v1147_v36 = vmul.f32 0.5, %v3368_v49 }
 0x2e5   : > { %v1333_v9 = vadd.f32 1.0, %v2219_v44  ;;  %2228 = verf.f32 %v1210_v43  ;;  %v3374_v23 = vadd.f32 %v1069_v47, %v3148_v48  ;;  %v1071_v57 = vpop.f32.mrb[57].mxu0  ;;  %1630 = vmatprep.mubr.f32.mxu1 %v1395_v22 }
 0x2e6   : > { %2230 = verf.f32 %v1211_v50  ;;  %v3378_v41 = vadd.f32 %v1071_v57, %v3150_v38  ;;  %1631 = vmatmul.mubr.f32.gmra.mrb[38].mxu1 %v1394_v51  ;;  %v1396_v53 = vmul.f32 %v1332_v45, %v1140_v27 }
 0x2e7   : > { %v2221_v25 = vpop.eup %2220  ;;  %v1212_v14 = vmul.f32 0.70710677, %v3374_v23  ;;  %v1397_v4 = vmul.f32 %v1333_v9, %v1141_v24 }
 0x2e8   : > { %v2223_v12 = vpop.eup %2222  ;;  %v1334_v26 = vadd.f32 1.0, %v2221_v25  ;;  %v1213_v35 = vmul.f32 0.70710677, %v3378_v41  ;;  %v1075_v32 = vpop.f32.mrb[58].mxu0  ;;  %v1149_v49 = vmul.f32 0.5, %v3378_v41 }
 0x2e9   : > { %v1335_v13 = vadd.f32 1.0, %v2223_v12  ;;  %2232 = verf.f32 %v1212_v14  ;;  %v3384_v19 = vadd.f32 %v1075_v32, %v3148_v48  ;;  %v1077_v55 = vpop.f32.mrb[59].mxu0  ;;  %1635 = vmatprep.mubr.f32.mxu1 %v1397_v4 }
 0x2ea   : > { %2234 = verf.f32 %v1213_v35  ;;  %v1078_v29 = vadd.f32 %v1077_v55, %v3150_v38  ;;  %1636 = vmatmul.mubr.f32.gmra.mrb[40].mxu1 %v1396_v53  ;;  %v1398_v60 = vmul.f32 %v1334_v26, %v1142_v54 }
 0x2eb   : > { %v2225_v15 = vpop.eup %2224  ;;  %v1214_v11 = vmul.f32 0.70710677, %v3384_v19  ;;  %v1399_v58 = vmul.f32 %v1335_v13, %v1143_v37  ;;  %v1150_v9 = vmul.f32 0.5, %v3384_v19 }
 0x2ec   : > { %v2227_v30 = vpop.eup %2226  ;;  %v1336_v3 = vadd.f32 1.0, %v2225_v15  ;;  %v1215_v28 = vmul.f32 0.70710677, %v1078_v29  ;;  %v1081_v52 = vpop.f32.mrb[60].mxu0  ;;  %v1151_v51 = vmul.f32 0.5, %v1078_v29 }
 0x2ed   : > { %v1337_v61 = vadd.f32 1.0, %v2227_v30  ;;  %2236 = verf.f32 %v1214_v11  ;;  %v1082_v16 = vadd.f32 %v1081_v52, %v3148_v48  ;;  %v1083_v21 = vpop.f32.mrb[61].mxu0  ;;  %1640 = vmatprep.mubr.f32.mxu1 %v1399_v58  ;;  %v3403_v15 = vld [vmem:[%s3562_s6] ss:$0 sm:$0xff] }
 0x2ee   : > { %2238 = verf.f32 %v1215_v28  ;;  %v1084_v1 = vadd.f32 %v1083_v21, %v3150_v38  ;;  %1641 = vmatmul.mubr.f32.gmra.mrb[42].mxu1 %v1398_v60  ;;  %v1400_v42 = vmul.f32 %v1336_v3, %v1144_v63  ;;  %v2248_v3 = vld [vmem:[%s2674_s15] sm:$0xff] }
 0x2ef   : > { %v2229_v17 = vpop.eup %2228  ;;  %v1216_v8 = vmul.f32 0.70710677, %v1082_v16  ;;  %v1401_v34 = vmul.f32 %v1337_v61, %v1145_v18  ;;  %v1152_v12 = vmul.f32 0.5, %v1082_v16  ;;  %v2249_v61 = vld [vmem:[%s2674_s15 + $0x8] sm:$0xff] }
 0x2f0   : > { %v2231_v10 = vpop.eup %2230  ;;  %v1338_v0 = vadd.f32 1.0, %v2229_v17  ;;  %v1217_v46 = vmul.f32 0.70710677, %v1084_v1  ;;  %v1087_v31 = vpop.f32.mrb[62].mxu0  ;;  %v1153_v4 = vmul.f32 0.5, %v1084_v1  ;;  %v2250_v17 = vld [vmem:[%s2674_s15 + $0x10] sm:$0xff] }
 0x2f1   : > { %v1339_v7 = vadd.f32 1.0, %v2231_v10  ;;  %2240 = verf.f32 %v1216_v8  ;;  %v1088_v39 = vadd.f32 %v1087_v31, %v3148_v48  ;;  %v1089_v40 = vpop.f32.mrb[63].mxu0  ;;  %1645 = vmatprep.mubr.f32.mxu1 %v1401_v34  ;;  %v1148_v48 = vmul.f32 0.5, %v3374_v23 }
 0x2f2   : > { %2242 = verf.f32 %v1217_v46  ;;  %v1090_v6 = vadd.f32 %v1089_v40, %v3150_v38  ;;  %1646 = vmatmul.mubr.f32.gmra.mrb[44].mxu1 %v1400_v42  ;;  %v1402_v22 = vmul.f32 %v1338_v0, %v1146_v5  ;;  %v2251_v46 = vld [vmem:[%s2674_s15 + $0x18] sm:$0xff] }
 0x2f3   : > { %v2233_v33 = vpop.eup %2232  ;;  %v1218_v20 = vmul.f32 0.70710677, %v1088_v39  ;;  %v1403_v2 = vmul.f32 %v1339_v7, %v1147_v36  ;;  %v1154_v55 = vmul.f32 0.5, %v1088_v39  ;;  %v2252_v39 = vld [vmem:[%s2674_s15 + $0x20] sm:$0xff] }
 0x2f4   : > { %v2235_v59 = vpop.eup %2234  ;;  %v1340_v56 = vadd.f32 1.0, %v2233_v33  ;;  %v1219_v43 = vmul.f32 0.70710677, %v1090_v6  ;;  %v1155_v13 = vmul.f32 0.5, %v1090_v6 }
 0x2f5   : > { %v1341_v44 = vadd.f32 1.0, %v2235_v59  ;;  %2244 = verf.f32 %v1218_v20  ;;  %1650 = vmatprep.mubr.f32.mxu1 %v1403_v2  ;;  %v2253_v20 = vld [vmem:[%s2674_s15 + $0x28] sm:$0xff] }
 0x2f6   : > { %2246 = verf.f32 %v1219_v43  ;;  %1651 = vmatmul.mubr.f32.gmra.mrb[46].mxu1 %v1402_v22  ;;  %v1404_v47 = vmul.f32 %v1340_v56, %v1148_v48  ;;  %v2254_v22 = vld [vmem:[%s2674_s15 + $0x30] sm:$0xff] }
 0x2f7   : > { %v2237_v62 = vpop.eup %2236  ;;  %v1405_v45 = vmul.f32 %v1341_v44, %v1149_v49 }
 0x2f8   : > { %v2239_v38 = vpop.eup %2238  ;;  %v1342_v50 = vadd.f32 1.0, %v2237_v62 }
 0x2f9   : > { %v1343_v24 = vadd.f32 1.0, %v2239_v38  ;;  %1655 = vmatprep.mubr.f32.mxu1 %v1405_v45  ;;  %v2255_v45 = vld [vmem:[%s2674_s15 + $0x38] sm:$0xff] }
 0x2fa   : > { %1656 = vmatmul.mubr.f32.gmra.mrb[48].mxu1 %v1404_v47  ;;  %v1406_v14 = vmul.f32 %v1342_v50, %v1150_v9 }
 0x2fb   : > { %v2241_v57 = vpop.eup %2240  ;;  %v1407_v27 = vmul.f32 %v1343_v24, %v1151_v51  ;;  %v2256_v24 = vld [vmem:[%s2674_s15 + $0x40] sm:$0xff] }
 0x2fc   : > { %v2243_v41 = vpop.eup %2242  ;;  %v1344_v25 = vadd.f32 1.0, %v2241_v57 }
 0x2fd   : > { %v1345_v23 = vadd.f32 1.0, %v2243_v41  ;;  %1660 = vmatprep.mubr.f32.mxu1 %v1407_v27 }
 0x2fe   : > { %1661 = vmatmul.mubr.f32.gmra.mrb[50].mxu1 %v1406_v14  ;;  %v1408_v37 = vmul.f32 %v1344_v25, %v1152_v12  ;;  %v2257_v25 = vld [vmem:[%s2674_s15 + $0x48] sm:$0xff] }
 0x2ff   : > { %v2245_v26 = vpop.eup %2244  ;;  %v1409_v35 = vmul.f32 %v1345_v23, %v1153_v4 }
 0x300   : > { %v2247_v32 = vpop.eup %2246  ;;  %v1346_v53 = vadd.f32 1.0, %v2245_v26  ;;  %v2258_v26 = vld [vmem:[%s2674_s15 + $0x50] sm:$0xff] }
 0x301   : > { %v1347_v19 = vadd.f32 1.0, %v2247_v32  ;;  %1665 = vmatprep.mubr.f32.mxu1 %v1409_v35 }
 0x302   : > { %1666 = vmatmul.mubr.f32.gmra.mrb[52].mxu1 %v1408_v37  ;;  %v1410_v29 = vmul.f32 %v1346_v53, %v1154_v55 }
 0x303   : > { %v1411_v54 = vmul.f32 %v1347_v19, %v1155_v13  ;;  %v2259_v13 = vld [vmem:[%s2674_s15 + $0x58] sm:$0xff] }
 0x305   : > { %1670 = vmatprep.mubr.f32.mxu1 %v1411_v54 }
 0x306   : > { %1671 = vmatmul.mubr.f32.gmra.mrb[54].mxu1 %v1410_v29 }
 0x35d   : > { %v1517_v11 = vpop.f32.mrb[64].mxu0 }
 0x35e   : > { %v1518_v58 = vadd.f32 %v3403_v15, %v1517_v11  ;;  %v1519_v30 = vpop.f32.mrb[65].mxu0  ;;  %v2260_v11 = vld [vmem:[%s2674_s15 + $0x60] sm:$0xff] }
 0x360   : > { %v1676_v28 = vadd.f32 %v2248_v3, %v1518_v58 }
 0x361   : > { %v1522_v52 = vpop.f32.mrb[66].mxu0 }
 0x362   : > { %1708 = vst [vmem:[%s3409_s21] sm:$0xff] %v1676_v28  ;;  %v1523_v60 = vadd.f32 %v3403_v15, %v1522_v52  ;;  %v1524_v18 = vpop.f32.mrb[67].mxu0  ;;  %v2261_v52 = vld [vmem:[%s2674_s15 + $0x68] sm:$0xff] }
 0x364   : > { %v1677_v16 = vadd.f32 %v2249_v61, %v1523_v60 }
 0x365   : > { %v1527_v21 = vpop.f32.mrb[68].mxu0 }
 0x366   : > { %1709 = vst [vmem:[%s3409_s21 + $0x8] sm:$0xff] %v1677_v16  ;;  %v1528_v63 = vadd.f32 %v3403_v15, %v1527_v21  ;;  %v1529_v1 = vpop.f32.mrb[69].mxu0  ;;  %v2262_v21 = vld [vmem:[%s2674_s15 + $0x70] sm:$0xff] }
 0x368   : > { %v1678_v8 = vadd.f32 %v2250_v17, %v1528_v63 }
 0x369   : > { %v1532_v34 = vpop.f32.mrb[70].mxu0 }
 0x36a   : > { %1710 = vst [vmem:[%s3409_s21 + $0x10] sm:$0xff] %v1678_v8  ;;  %v1533_v10 = vadd.f32 %v3403_v15, %v1532_v34  ;;  %v1534_v0 = vpop.f32.mrb[71].mxu0  ;;  %v2263_v34 = vld [vmem:[%s2674_s15 + $0x78] sm:$0xff] }
 0x36c   : > { %v1679_v31 = vadd.f32 %v2251_v46, %v1533_v10 }
 0x36d   : > { %v1537_v42 = vpop.f32.mrb[0].mxu1 }
 0x36e   : > { %1711 = vst [vmem:[%s3409_s21 + $0x18] sm:$0xff] %v1679_v31  ;;  %v1538_v36 = vadd.f32 %v3403_v15, %v1537_v42  ;;  %v1539_v7 = vpop.f32.mrb[1].mxu1  ;;  %v2264_v42 = vld [vmem:[%s2674_s15 + $0x80] sm:$0xff] }
 0x370   : > { %v1680_v40 = vadd.f32 %v2252_v39, %v1538_v36 }
 0x371   : > { %v1542_v5 = vpop.f32.mrb[2].mxu1 }
 0x372   : > { %1712 = vst [vmem:[%s3409_s21 + $0x20] sm:$0xff] %v1680_v40  ;;  %v1543_v6 = vadd.f32 %v3403_v15, %v1542_v5  ;;  %v1544_v33 = vpop.f32.mrb[3].mxu1  ;;  %v2265_v5 = vld [vmem:[%s2674_s15 + $0x88] sm:$0xff] }
 0x374   : > { %v1681_v2 = vadd.f32 %v2253_v20, %v1543_v6 }
 0x375   : > { %v1547_v59 = vpop.f32.mrb[4].mxu1 }
 0x376   : > { %1713 = vst [vmem:[%s3409_s21 + $0x28] sm:$0xff] %v1681_v2  ;;  %v1548_v56 = vadd.f32 %v3403_v15, %v1547_v59  ;;  %v1549_v43 = vpop.f32.mrb[5].mxu1  ;;  %v2266_v59 = vld [vmem:[%s2674_s15 + $0x90] sm:$0xff] }
 0x378   : > { %v1682_v49 = vadd.f32 %v2254_v22, %v1548_v56 }
 0x379   : > { %v1552_v44 = vpop.f32.mrb[6].mxu1 }
 0x37a   : > { %1714 = vst [vmem:[%s3409_s21 + $0x30] sm:$0xff] %v1682_v49  ;;  %v1553_v48 = vadd.f32 %v3403_v15, %v1552_v44  ;;  %v1554_v62 = vpop.f32.mrb[7].mxu1  ;;  %v2267_v44 = vld [vmem:[%s2674_s15 + $0x98] sm:$0xff] }
 0x37c   : > { %v1683_v38 = vadd.f32 %v2255_v45, %v1553_v48 }
 0x37d   : > { %v1557_v50 = vpop.f32.mrb[8].mxu1 }
 0x37e   : > { %1715 = vst [vmem:[%s3409_s21 + $0x38] sm:$0xff] %v1683_v38  ;;  %v1558_v47 = vadd.f32 %v3403_v15, %v1557_v50  ;;  %v1559_v51 = vpop.f32.mrb[9].mxu1  ;;  %v2268_v50 = vld [vmem:[%s2674_s15 + $0xa0] sm:$0xff] }
 0x380   : > { %v1684_v9 = vadd.f32 %v2256_v24, %v1558_v47 }
 0x381   : > { %v1562_v57 = vpop.f32.mrb[10].mxu1 }
 0x382   : > { %1716 = vst [vmem:[%s3409_s21 + $0x40] sm:$0xff] %v1684_v9  ;;  %v1563_v27 = vadd.f32 %v3403_v15, %v1562_v57  ;;  %v1564_v41 = vpop.f32.mrb[11].mxu1  ;;  %v2269_v57 = vld [vmem:[%s2674_s15 + $0xa8] sm:$0xff] }
 0x384   : > { %v1685_v14 = vadd.f32 %v2257_v25, %v1563_v27 }
 0x385   : > { %v1567_v4 = vpop.f32.mrb[12].mxu1 }
 0x386   : > { %1717 = vst [vmem:[%s3409_s21 + $0x48] sm:$0xff] %v1685_v14  ;;  %v1568_v23 = vadd.f32 %v3403_v15, %v1567_v4  ;;  %v1569_v12 = vpop.f32.mrb[13].mxu1  ;;  %v2270_v4 = vld [vmem:[%s2674_s15 + $0xb0] sm:$0xff] }
 0x388   : > { %v1686_v35 = vadd.f32 %v2258_v26, %v1568_v23 }
 0x389   : > { %v1572_v32 = vpop.f32.mrb[14].mxu1 }
 0x38a   : > { %1718 = vst [vmem:[%s3409_s21 + $0x50] sm:$0xff] %v1686_v35  ;;  %v1573_v53 = vadd.f32 %v3403_v15, %v1572_v32  ;;  %v1574_v37 = vpop.f32.mrb[15].mxu1  ;;  %v2271_v32 = vld [vmem:[%s2674_s15 + $0xb8] sm:$0xff] }
 0x38c   : > { %v1687_v19 = vadd.f32 %v2259_v13, %v1573_v53 }
 0x38d   : > { %v1577_v55 = vpop.f32.mrb[16].mxu1 }
 0x38e   : > { %1719 = vst [vmem:[%s3409_s21 + $0x58] sm:$0xff] %v1687_v19  ;;  %v1578_v54 = vadd.f32 %v3403_v15, %v1577_v55  ;;  %v1579_v29 = vpop.f32.mrb[17].mxu1  ;;  %v2272_v55 = vld [vmem:[%s2674_s15 + $0xc0] sm:$0xff] }
 0x390   : > { %v1688_v58 = vadd.f32 %v2260_v11, %v1578_v54 }
 0x391   : > { %v1582_v30 = vpop.f32.mrb[18].mxu1 }
 0x392   : > { %1720 = vst [vmem:[%s3409_s21 + $0x60] sm:$0xff] %v1688_v58  ;;  %v1583_v3 = vadd.f32 %v3403_v15, %v1582_v30  ;;  %v1584_v28 = vpop.f32.mrb[19].mxu1  ;;  %v2273_v30 = vld [vmem:[%s2674_s15 + $0xc8] sm:$0xff] }
 0x394   : > { %v1689_v60 = vadd.f32 %v2261_v52, %v1583_v3 }
 0x395   : > { %v1587_v18 = vpop.f32.mrb[20].mxu1 }
 0x396   : > { %1721 = vst [vmem:[%s3409_s21 + $0x68] sm:$0xff] %v1689_v60  ;;  %v1588_v61 = vadd.f32 %v3403_v15, %v1587_v18  ;;  %v1589_v16 = vpop.f32.mrb[21].mxu1  ;;  %v2274_v18 = vld [vmem:[%s2674_s15 + $0xd0] sm:$0xff] }
 0x398   : > { %v1690_v63 = vadd.f32 %v2262_v21, %v1588_v61 }
 0x399   : > { %v1592_v1 = vpop.f32.mrb[22].mxu1 }
 0x39a   : > { %1722 = vst [vmem:[%s3409_s21 + $0x70] sm:$0xff] %v1690_v63  ;;  %v1593_v17 = vadd.f32 %v3403_v15, %v1592_v1  ;;  %v1594_v8 = vpop.f32.mrb[23].mxu1  ;;  %v2275_v1 = vld [vmem:[%s2674_s15 + $0xd8] sm:$0xff] }
 0x39c   : > { %v1691_v10 = vadd.f32 %v2263_v34, %v1593_v17 }
 0x39d   : > { %v1597_v0 = vpop.f32.mrb[24].mxu1 }
 0x39e   : > { %1723 = vst [vmem:[%s3409_s21 + $0x78] sm:$0xff] %v1691_v10  ;;  %v1598_v46 = vadd.f32 %v3403_v15, %v1597_v0  ;;  %v1599_v31 = vpop.f32.mrb[25].mxu1  ;;  %v2276_v0 = vld [vmem:[%s2674_s15 + $0xe0] sm:$0xff] }
 0x3a0   : > { %v1692_v36 = vadd.f32 %v2264_v42, %v1598_v46 }
 0x3a1   : > { %v1602_v7 = vpop.f32.mrb[26].mxu1 }
 0x3a2   : > { %1724 = vst [vmem:[%s3409_s21 + $0x80] sm:$0xff] %v1692_v36  ;;  %v1603_v39 = vadd.f32 %v3403_v15, %v1602_v7  ;;  %v1604_v40 = vpop.f32.mrb[27].mxu1  ;;  %v2277_v7 = vld [vmem:[%s2674_s15 + $0xe8] sm:$0xff] }
 0x3a4   : > { %v1693_v6 = vadd.f32 %v2265_v5, %v1603_v39 }
 0x3a5   : > { %v1607_v33 = vpop.f32.mrb[28].mxu1 }
 0x3a6   : > { %1725 = vst [vmem:[%s3409_s21 + $0x88] sm:$0xff] %v1693_v6  ;;  %v1608_v20 = vadd.f32 %v3403_v15, %v1607_v33  ;;  %v1609_v2 = vpop.f32.mrb[29].mxu1  ;;  %v2278_v33 = vld [vmem:[%s2674_s15 + $0xf0] sm:$0xff] }
 0x3a8   : > { %v1694_v56 = vadd.f32 %v2266_v59, %v1608_v20 }
 0x3a9   : > { %v1612_v43 = vpop.f32.mrb[30].mxu1 }
 0x3aa   : > { %1726 = vst [vmem:[%s3409_s21 + $0x90] sm:$0xff] %v1694_v56  ;;  %v1613_v22 = vadd.f32 %v3403_v15, %v1612_v43  ;;  %v1614_v49 = vpop.f32.mrb[31].mxu1  ;;  %v2279_v43 = vld [vmem:[%s2674_s15 + $0xf8] sm:$0xff] }
 0x3ac   : > { %v1695_v48 = vadd.f32 %v2267_v44, %v1613_v22 }
 0x3ad   : > { %v1617_v62 = vpop.f32.mrb[32].mxu1 }
 0x3ae   : > { %1727 = vst [vmem:[%s3409_s21 + $0x98] sm:$0xff] %v1695_v48  ;;  %v1618_v45 = vadd.f32 %v3403_v15, %v1617_v62  ;;  %v1619_v38 = vpop.f32.mrb[33].mxu1 }
 0x3b0   : > { %v1696_v47 = vadd.f32 %v2268_v50, %v1618_v45 }
 0x3b1   : > { %v1622_v51 = vpop.f32.mrb[34].mxu1 }
 0x3b2   : > { %1728 = vst [vmem:[%s3409_s21 + $0xa0] sm:$0xff] %v1696_v47  ;;  %v1623_v24 = vadd.f32 %v3403_v15, %v1622_v51  ;;  %v1624_v9 = vpop.f32.mrb[35].mxu1 }
 0x3b4   : > { %v1697_v27 = vadd.f32 %v2269_v57, %v1623_v24 }
 0x3b5   : > { %v1627_v41 = vpop.f32.mrb[36].mxu1 }
 0x3b6   : > { %1729 = vst [vmem:[%s3409_s21 + $0xa8] sm:$0xff] %v1697_v27  ;;  %v1628_v25 = vadd.f32 %v3403_v15, %v1627_v41  ;;  %v1629_v14 = vpop.f32.mrb[37].mxu1 }
 0x3b8   : > { %v1698_v23 = vadd.f32 %v2270_v4, %v1628_v25 }
 0x3b9   : > { %v1632_v12 = vpop.f32.mrb[38].mxu1 }
 0x3ba   : > { %1730 = vst [vmem:[%s3409_s21 + $0xb0] sm:$0xff] %v1698_v23  ;;  %v1633_v26 = vadd.f32 %v3403_v15, %v1632_v12  ;;  %v1634_v35 = vpop.f32.mrb[39].mxu1 }
 0x3bc   : > { %v1699_v53 = vadd.f32 %v2271_v32, %v1633_v26 }
 0x3bd   : > { %v1637_v37 = vpop.f32.mrb[40].mxu1 }
 0x3be   : > { %1731 = vst [vmem:[%s3409_s21 + $0xb8] sm:$0xff] %v1699_v53  ;;  %v1638_v13 = vadd.f32 %v3403_v15, %v1637_v37  ;;  %v1639_v19 = vpop.f32.mrb[41].mxu1 }
 0x3c0   : > { %v1700_v54 = vadd.f32 %v2272_v55, %v1638_v13 }
 0x3c1   : > { %v1642_v29 = vpop.f32.mrb[42].mxu1 }
 0x3c2   : > { %1732 = vst [vmem:[%s3409_s21 + $0xc0] sm:$0xff] %v1700_v54  ;;  %v1643_v11 = vadd.f32 %v3403_v15, %v1642_v29  ;;  %v1644_v58 = vpop.f32.mrb[43].mxu1 }
 0x3c4   : > { %v1701_v3 = vadd.f32 %v2273_v30, %v1643_v11 }
 0x3c5   : > { %v1647_v28 = vpop.f32.mrb[44].mxu1 }
 0x3c6   : > { %1733 = vst [vmem:[%s3409_s21 + $0xc8] sm:$0xff] %v1701_v3  ;;  %v1648_v52 = vadd.f32 %v3403_v15, %v1647_v28  ;;  %v1649_v60 = vpop.f32.mrb[45].mxu1 }
 0x3c8   : > { %v1702_v61 = vadd.f32 %v2274_v18, %v1648_v52 }
 0x3c9   : > { %v1652_v16 = vpop.f32.mrb[46].mxu1 }
 0x3ca   : > { %1734 = vst [vmem:[%s3409_s21 + $0xd0] sm:$0xff] %v1702_v61  ;;  %v1653_v21 = vadd.f32 %v3403_v15, %v1652_v16  ;;  %v1654_v63 = vpop.f32.mrb[47].mxu1 }
 0x3cc   : > { %v1703_v17 = vadd.f32 %v2275_v1, %v1653_v21 }
 0x3cd   : > { %v1657_v8 = vpop.f32.mrb[48].mxu1 }
 0x3ce   : > { %1735 = vst [vmem:[%s3409_s21 + $0xd8] sm:$0xff] %v1703_v17  ;;  %v1658_v34 = vadd.f32 %v3403_v15, %v1657_v8  ;;  %v1659_v10 = vpop.f32.mrb[49].mxu1 }
 0x3d0   : > { %v1704_v46 = vadd.f32 %v2276_v0, %v1658_v34 }
 0x3d1   : > { %v1662_v31 = vpop.f32.mrb[50].mxu1 }
 0x3d2   : > { %1736 = vst [vmem:[%s3409_s21 + $0xe0] sm:$0xff] %v1704_v46  ;;  %v1663_v42 = vadd.f32 %v3403_v15, %v1662_v31  ;;  %v1664_v36 = vpop.f32.mrb[51].mxu1 }
 0x3d4   : > { %v1705_v39 = vadd.f32 %v2277_v7, %v1663_v42 }
 0x3d5   : > { %v1667_v40 = vpop.f32.mrb[52].mxu1 }
 0x3d6   : > { %1737 = vst [vmem:[%s3409_s21 + $0xe8] sm:$0xff] %v1705_v39  ;;  %v1668_v5 = vadd.f32 %v3403_v15, %v1667_v40  ;;  %v1669_v6 = vpop.f32.mrb[53].mxu1 }
 0x3d8   : > { %v1706_v20 = vadd.f32 %v2278_v33, %v1668_v5 }
 0x3d9   : > { %v1672_v2 = vpop.f32.mrb[54].mxu1 }
 0x3da   : > { %1738 = vst [vmem:[%s3409_s21 + $0xf0] sm:$0xff] %v1706_v20  ;;  %v1673_v59 = vadd.f32 %v3403_v15, %v1672_v2  ;;  %v1674_v56 = vpop.f32.mrb[55].mxu1 }
 0x3dc   : > { %v1707_v22 = vadd.f32 %v2279_v43, %v1673_v59 }
 0x3de   : > { %1739 = vst [vmem:[%s3409_s21 + $0xf8] sm:$0xff] %v1707_v22 }
 0x3df   : > { %2379 = shalt.err (!%p2376_p2)
}
 0x3e0   : > { %s2380_s15 = scalar_lea.hbm %s3508_s9, 4096  ;;  %s2384_s21 = scalar_lea.hbm %s3563_s7, 8192 }
 0x3e1   : > { %p2381_p13 = scmp.ne.s32.totalorder %s3508_s9, %s2380_s15  ;;  %p2385_p4 = scmp.lt.u32.totalorder %s3508_s9, %s3563_s7 }
 0x3e2   : > { %p2386_p7 = scmp.lt.u32.totalorder %s2384_s21, %s2380_s15  ;;  %p2388_p11 = scmp.lt.u32.totalorder %s2380_s15, %s3508_s9 }
 0x3e3   : > { %p2382_p6 = pnand %p2381_p13, %p3579_p0 }
 0x3e4   : > { %p2387_p8 = por %p2386_p7, %p2385_p4 }
 0x3e5   : > { %p2383_p10 = pneg %p2382_p6 }
 0x3e6   : > { %p2389_p1 = por %p2388_p11, %p2387_p8 }
 0x3e8   : > { %p2390_p3 = pnand %p2389_p1, %p2383_p10 }
 0x3ea   : > { %2393 = shalt.err (!%p2390_p3)
}
 0x3eb   : > { %s2448_s30 = smov 128   ;;  %s2449_s23 = smov 8  }
 0x3ec   : > { %1991 = dma.vmem_to_hbm [thread:$0]  (%p3579_p0), %s3510_s29, 4096, %s3508_s9, %s1741_s28, %s2448_s30, %s2448_s30, %s2449_s23  }
 0x3ed PF: > { %s1769_s11 = sand.u32 1, %s2424_s24   ;;  %p3580_p5 = scmp.ne.s32.totalorder %s3569_s8, 0 }
 0x3ee   : > { %p3581_p9 = scmp.ge.s32.totalorder %s2436_s27, 2  ;;  %s1770_s10 = scalar_lea.sflag [#allocation4], %s1769_s11 }
 0x3f0   : > { %p2005_p12 = pnand %p3581_p9, %p3580_p5 }
 0x3f2   : > { %2419 = dma.done.wait (!%p2005_p12), %s1770_s10, 4096  }
 0x3f3   : > { %2421 = vsyncadd (!%p2005_p12), %s1770_s10, 4294963200  ;;  %p21_p2 = scmp.ge.s32.totalorder %s2603_s13, 4   ;;  %s3582_s24 = smov %s2428_s25 }
 0x3f4   : > { %s3583_s25 = smov %s2432_s26  ;;  %s3584_s26 = smov %s2612_s17 }
 0x3f5   : > { %s3585_s27 = smov %s2603_s13  ;;  %23 = sbr.rel (!%p21_p2) target bundleno = 6 (0x6), region = 101 }
 0x3fc   :  { %1775 = vsyncpa [#allocation3], 1 }
 0x3fd   :  { %1777 = vsyncpa [#allocation3 + $0x1], 1 }
 0x3fe   :  { %1778 = vsyncpa [#allocation6], 1 }
 0x3ff   :  { %1779 = vsyncpa [#allocation4], 1 }
 0x400   :  { %1781 = vsyncpa [#allocation4 + $0x1], 1 }

</bundles_post_ra>
